<compile_context>
chip_gen: v6e
topology: v6e:2x2x1
jax: 0.10.0
libtpu: 0.0.40
codegen_flags: <defaults>
</compile_context>

<pallas_src>
import jax
import jax.numpy as jnp
from jax import lax
from jax.experimental import pallas as pl
from jax.experimental.pallas import tpu as pltpu


def _round_up(n, m):
    return ((n + m - 1) // m) * m


def _basicblock_kernel(x_ref, w1_ref, w2_ref, o_ref, xin_ref, mid_ref, acc_ref):
    # x_ref  : (1, H, W, CP)       bf16  channel-padded input (1 batch elem, no spatial pad)
    # w1_ref : (3, 3, CP, PP)      bf16  conv1 weights (HWIO, channel padded)
    # w2_ref : (3, 3, PP, PP)      bf16  conv2 weights
    # o_ref  : (1, H, W, PP)       f32   output (channel padded; PP == 128k -> lane-dense)
    # xin_ref: VMEM (H+2, W+2, CP) f32   zero-halo upcast input (conv1 source + residual)
    # mid_ref: VMEM (H+2, W+2, PP) f32   zero-halo conv1 activation (conv2 source)
    # acc_ref: VMEM (H*W, PP)      f32   shared matmul accumulator
    H, W, PP = o_ref.shape[1], o_ref.shape[2], o_ref.shape[3]
    CP = x_ref.shape[3]

    def zero_halo(ref, c):
        # Zero only the 1-pixel halo ring; the interior is fully rewritten
        # below on every grid step.
        ref[0:1, :, :] = jnp.zeros((1, W + 2, c), jnp.float32)
        ref[H + 1:H + 2, :, :] = jnp.zeros((1, W + 2, c), jnp.float32)
        ref[:, 0:1, :] = jnp.zeros((H + 2, 1, c), jnp.float32)
        ref[:, W + 1:W + 2, :] = jnp.zeros((H + 2, 1, c), jnp.float32)

    zero_halo(xin_ref, CP)
    zero_halo(mid_ref, PP)

    # Upcast the bf16 input once into f32 VMEM (interior of the padded scratch);
    # all shifted-window slicing below happens on f32, casting back to bf16
    # only at the MXU input.
    xin_ref[1:H + 1, 1:W + 1, :] = x_ref[0].astype(jnp.float32)

    def conv3x3_accumulate(src_ref, w_ref, k):
        # 9 shifted windows, each a (H*W, k) x (k, PP) bf16 matmul with f32
        # accumulation in VMEM.  First tap assigns -> no accumulator memset.
        tap = 0
        for kh in range(3):
            for kw in range(3):
                win = src_ref[kh:kh + H, kw:kw + W, :]               # (H, W, k) f32
                lhs = win.reshape(H * W, k).astype(jnp.bfloat16)     # layout-free reshape
                contrib = jnp.dot(lhs, w_ref[kh, kw, :, :],
                                  preferred_element_type=jnp.float32)
                if tap == 0:
                    acc_ref[...] = contrib
                else:
                    acc_ref[...] += contrib
                tap += 1

    # ---- conv1 (3x3, pad=1, stride=1, no bias) + ReLU -> mid interior ----
    conv3x3_accumulate(xin_ref, w1_ref, CP)
    mid_ref[1:H + 1, 1:W + 1, :] = jnp.maximum(acc_ref[...], 0.0).reshape(H, W, PP)

    # ---- conv2 (3x3, pad=1, stride=1, no bias) ----
    conv3x3_accumulate(mid_ref, w2_ref, PP)

    # ---- residual add (downsample=None => inplanes == planes) + final ReLU ----
    residual = xin_ref[1:H + 1, 1:W + 1, :].reshape(H * W, CP)
    out = jnp.maximum(acc_ref[...] + residual, 0.0)
    o_ref[...] = out.reshape(1, H, W, PP).astype(o_ref.dtype)


def basic_block_forward(x_nchw, w1_oihw, w2_oihw):
    """x_nchw: (N, Cin, H, W) float32. w*_oihw: PyTorch-layout conv weights (no bias)."""
    N, Cin, H, W = x_nchw.shape
    P = w1_oihw.shape[0]
    assert w1_oihw.shape == (P, Cin, 3, 3)
    assert w2_oihw.shape == (P, P, 3, 3)
    assert Cin == P, "downsample=None requires inplanes == planes"

    CP = _round_up(Cin, 128)   # padded input channels (lane-dense)
    PP = _round_up(P, 128)     # padded output channels
    assert CP == PP            # needed for the in-kernel residual add

    # Layout glue: NCHW -> NHWC, channel pad to 128, bf16.  Spatial halo is
    # built inside the kernel (no padded HBM copy).
    x_nhwc = jnp.transpose(x_nchw, (0, 2, 3, 1))
    xc = jnp.pad(x_nhwc, ((0, 0), (0, 0), (0, 0), (0, CP - Cin))).astype(jnp.bfloat16)
    w1 = jnp.pad(jnp.transpose(w1_oihw, (2, 3, 1, 0)),               # -> (3,3,Cin,P)
                 ((0, 0), (0, 0), (0, CP - Cin), (0, PP - P))).astype(jnp.bfloat16)
    w2 = jnp.pad(jnp.transpose(w2_oihw, (2, 3, 1, 0)),
                 ((0, 0), (0, 0), (0, PP - P), (0, PP - P))).astype(jnp.bfloat16)

    flops = 2 * 9 * N * H * W * PP * (CP + PP)
    bytes_accessed = (int(xc.size) * 2 + int(w1.size) * 2 + int(w2.size) * 2
                      + N * H * W * PP * 4)

    out_padded = pl.pallas_call(
        _basicblock_kernel,
        out_shape=jax.ShapeDtypeStruct((N, H, W, PP), x_nchw.dtype),
        grid_spec=pltpu.PrefetchScalarGridSpec(
            num_scalar_prefetch=0,
            grid=(N,),
            in_specs=[
                pl.BlockSpec((1, H, W, CP), lambda n: (n, 0, 0, 0)),
                pl.BlockSpec((3, 3, CP, PP), lambda n: (0, 0, 0, 0)),  # resident weights
                pl.BlockSpec((3, 3, PP, PP), lambda n: (0, 0, 0, 0)),  # resident weights
            ],
            out_specs=pl.BlockSpec((1, H, W, PP), lambda n: (n, 0, 0, 0)),
            scratch_shapes=[
                pltpu.VMEM((H + 2, W + 2, CP), jnp.float32),   # zero-halo upcast input
                pltpu.VMEM((H + 2, W + 2, PP), jnp.float32),   # zero-halo conv1 act
                pltpu.VMEM((H * W, PP), jnp.float32),          # shared accumulator
            ],
        ),
        compiler_params=pltpu.CompilerParams(
            dimension_semantics=("parallel",),
            vmem_limit_bytes=32 * 1024 * 1024,
        ),
        cost_estimate=pl.CostEstimate(
            flops=flops, transcendentals=0, bytes_accessed=bytes_accessed),
    )(xc, w1, w2)

    # Drop channel padding and return NCHW for PyTorch-compatible output.
    return jnp.transpose(out_padded[..., :P], (0, 3, 1, 2))


def _reference_forward(x_nchw, w1_oihw, w2_oihw):
    """Pure-JAX f32 reference (lax conv) mirroring the PyTorch forward."""
    dn = lax.conv_dimension_numbers(x_nchw.shape, w1_oihw.shape,
                                    ("NCHW", "OIHW", "NCHW"))
    out = lax.conv_general_dilated(x_nchw, w1_oihw, (1, 1), ((1, 1), (1, 1)),
                                   dimension_numbers=dn)
    out = jnp.maximum(out, 0.0)
    out = lax.conv_general_dilated(out, w2_oihw, (1, 1), ((1, 1), (1, 1)),
                                   dimension_numbers=dn)
    out = out + x_nchw
    return jnp.maximum(out, 0.0)


if __name__ == "__main__":
    # Small shapes: batch=2, inplanes=planes=4, spatial=16 (stride=1, dilation=1).
    N, C, H, W = 2, 4, 16, 16
    P = C  # planes == inplanes (downsample=None)

    key = jax.random.PRNGKey(0)
    kx, k1, k2 = jax.random.split(key, 3)
    x = jax.random.normal(kx, (N, C, H, W), dtype=jnp.float32)
    # Deterministic synthetic conv weights in PyTorch OIHW layout, no bias.
    w1 = jax.random.normal(k1, (P, C, 3, 3), dtype=jnp.float32) * 0.1
    w2 = jax.random.normal(k2, (P, P, 3, 3), dtype=jnp.float32) * 0.1

    out = jax.block_until_ready(basic_block_forward(x, w1, w2))
    ref = jax.block_until_ready(_reference_forward(x, w1, w2))

    assert out.shape == (N, P, H, W)
    # Kernel quantizes activations/weights to bf16 (f32 accumulation), so the
    # comparison against the pure-f32 reference uses bf16-level tolerance.
    assert jnp.allclose(out, ref, atol=5e-2, rtol=5e-2), "mismatch vs reference"

    print("KERNEL_OK")
</pallas_src>

<mosaic_0001>
module attributes {stable_mosaic.version = 11 : i64} {
  func.func @_basicblock_kernel(%arg0: i32, %arg1: memref<1x16x16x128xbf16, #tpu.memory_space<vmem>>, %arg2: memref<3x3x128x128xbf16, #tpu.memory_space<vmem>>, %arg3: memref<3x3x128x128xbf16, #tpu.memory_space<vmem>>, %arg4: memref<1x16x16x128xf32, #tpu.memory_space<vmem>>, %arg5: memref<18x18x128xf32, #tpu.memory_space<vmem>>, %arg6: memref<18x18x128xf32, #tpu.memory_space<vmem>>, %arg7: memref<256x128xf32, #tpu.memory_space<vmem>>) attributes {dimension_semantics = [#tpu.dimension_semantics<parallel>], iteration_bounds = array<i64: 2>, scalar_prefetch = 0 : i64, scratch_operands = 3 : i64, tpu.core_type = #tpu.core_type<tc>, window_params = [{transform_indices = @transform_0, window_bounds = array<i64: 1, 16, 16, 128>}, {pipeline_mode = #tpu.pipeline_mode<synchronous>, transform_indices = @transform_1, window_bounds = array<i64: 3, 3, 128, 128>}, {pipeline_mode = #tpu.pipeline_mode<synchronous>, transform_indices = @transform_2, window_bounds = array<i64: 3, 3, 128, 128>}, {transform_indices = @transform_3, window_bounds = array<i64: 1, 16, 16, 128>}]} {
    %cst = arith.constant 0.000000e+00 : f32
    %0 = vector.broadcast %cst : f32 to vector<1x18x128xf32>
    %c0 = arith.constant 0 : index
    %c0_0 = arith.constant 0 : index
    %c0_1 = arith.constant 0 : index
    %1 = vector.load %arg5[%c0, %c0_0, %c0_1] : memref<18x18x128xf32, #tpu.memory_space<vmem>>, vector<1x18x128xf32>
    tpu.vector_store %arg5[%c0, %c0_0, %c0_1], %0 {strides = array<i32>} : memref<18x18x128xf32, #tpu.memory_space<vmem>>, vector<1x18x128xf32>,
    %cst_2 = arith.constant 0.000000e+00 : f32
    %2 = vector.broadcast %cst_2 : f32 to vector<1x18x128xf32>
    %c17 = arith.constant 17 : index
    %c0_3 = arith.constant 0 : index
    %c0_4 = arith.constant 0 : index
    %3 = vector.load %arg5[%c17, %c0_3, %c0_4] : memref<18x18x128xf32, #tpu.memory_space<vmem>>, vector<1x18x128xf32>
    tpu.vector_store %arg5[%c17, %c0_3, %c0_4], %2 {strides = array<i32>} : memref<18x18x128xf32, #tpu.memory_space<vmem>>, vector<1x18x128xf32>,
    %cst_5 = arith.constant 0.000000e+00 : f32
    %4 = vector.broadcast %cst_5 : f32 to vector<18x1x128xf32>
    %c0_6 = arith.constant 0 : index
    %c0_7 = arith.constant 0 : index
    %c0_8 = arith.constant 0 : index
    %5 = vector.load %arg5[%c0_6, %c0_7, %c0_8] : memref<18x18x128xf32, #tpu.memory_space<vmem>>, vector<18x1x128xf32>
    tpu.vector_store %arg5[%c0_6, %c0_7, %c0_8], %4 {strides = array<i32>} : memref<18x18x128xf32, #tpu.memory_space<vmem>>, vector<18x1x128xf32>,
    %cst_9 = arith.constant 0.000000e+00 : f32
    %6 = vector.broadcast %cst_9 : f32 to vector<18x1x128xf32>
    %c0_10 = arith.constant 0 : index
    %c17_11 = arith.constant 17 : index
    %c0_12 = arith.constant 0 : index
    %7 = vector.load %arg5[%c0_10, %c17_11, %c0_12] : memref<18x18x128xf32, #tpu.memory_space<vmem>>, vector<18x1x128xf32>
    tpu.vector_store %arg5[%c0_10, %c17_11, %c0_12], %6 {strides = array<i32>} : memref<18x18x128xf32, #tpu.memory_space<vmem>>, vector<18x1x128xf32>,
    %cst_13 = arith.constant 0.000000e+00 : f32
    %8 = vector.broadcast %cst_13 : f32 to vector<1x18x128xf32>
    %c0_14 = arith.constant 0 : index
    %c0_15 = arith.constant 0 : index
    %c0_16 = arith.constant 0 : index
    %9 = vector.load %arg6[%c0_14, %c0_15, %c0_16] : memref<18x18x128xf32, #tpu.memory_space<vmem>>, vector<1x18x128xf32>
    tpu.vector_store %arg6[%c0_14, %c0_15, %c0_16], %8 {strides = array<i32>} : memref<18x18x128xf32, #tpu.memory_space<vmem>>, vector<1x18x128xf32>,
    %cst_17 = arith.constant 0.000000e+00 : f32
    %10 = vector.broadcast %cst_17 : f32 to vector<1x18x128xf32>
    %c17_18 = arith.constant 17 : index
    %c0_19 = arith.constant 0 : index
    %c0_20 = arith.constant 0 : index
    %11 = vector.load %arg6[%c17_18, %c0_19, %c0_20] : memref<18x18x128xf32, #tpu.memory_space<vmem>>, vector<1x18x128xf32>
    tpu.vector_store %arg6[%c17_18, %c0_19, %c0_20], %10 {strides = array<i32>} : memref<18x18x128xf32, #tpu.memory_space<vmem>>, vector<1x18x128xf32>,
    %cst_21 = arith.constant 0.000000e+00 : f32
    %12 = vector.broadcast %cst_21 : f32 to vector<18x1x128xf32>
    %c0_22 = arith.constant 0 : index
    %c0_23 = arith.constant 0 : index
    %c0_24 = arith.constant 0 : index
    %13 = vector.load %arg6[%c0_22, %c0_23, %c0_24] : memref<18x18x128xf32, #tpu.memory_space<vmem>>, vector<18x1x128xf32>
    tpu.vector_store %arg6[%c0_22, %c0_23, %c0_24], %12 {strides = array<i32>} : memref<18x18x128xf32, #tpu.memory_space<vmem>>, vector<18x1x128xf32>,
    %cst_25 = arith.constant 0.000000e+00 : f32
    %14 = vector.broadcast %cst_25 : f32 to vector<18x1x128xf32>
    %c0_26 = arith.constant 0 : index
    %c17_27 = arith.constant 17 : index
    %c0_28 = arith.constant 0 : index
    %15 = vector.load %arg6[%c0_26, %c17_27, %c0_28] : memref<18x18x128xf32, #tpu.memory_space<vmem>>, vector<18x1x128xf32>
    tpu.vector_store %arg6[%c0_26, %c17_27, %c0_28], %14 {strides = array<i32>} : memref<18x18x128xf32, #tpu.memory_space<vmem>>, vector<18x1x128xf32>,
    %c0_29 = arith.constant 0 : index
    %c0_30 = arith.constant 0 : index
    %c0_31 = arith.constant 0 : index
    %c0_32 = arith.constant 0 : index
    %16 = vector.load %arg1[%c0_29, %c0_30, %c0_31, %c0_32] : memref<1x16x16x128xbf16, #tpu.memory_space<vmem>>, vector<1x16x16x128xbf16>
    %17 = vector.shape_cast %16 : vector<1x16x16x128xbf16> to vector<16x16x128xbf16>
    %18 = arith.extf %17 : vector<16x16x128xbf16> to vector<16x16x128xf32>
    %c1 = arith.constant 1 : index
    %c1_33 = arith.constant 1 : index
    %c0_34 = arith.constant 0 : index
    %19 = vector.load %arg5[%c1, %c1_33, %c0_34] : memref<18x18x128xf32, #tpu.memory_space<vmem>>, vector<16x16x128xf32>
    tpu.vector_store %arg5[%c1, %c1_33, %c0_34], %18 {strides = array<i32>} : memref<18x18x128xf32, #tpu.memory_space<vmem>>, vector<16x16x128xf32>,
    %c0_35 = arith.constant 0 : index
    %c0_36 = arith.constant 0 : index
    %c0_37 = arith.constant 0 : index
    %20 = vector.load %arg5[%c0_35, %c0_36, %c0_37] : memref<18x18x128xf32, #tpu.memory_space<vmem>>, vector<16x16x128xf32>
    %21 = vector.shape_cast %20 : vector<16x16x128xf32> to vector<256x128xf32>
    %22 = arith.truncf %21 : vector<256x128xf32> to vector<256x128xbf16>
    %c0_38 = arith.constant 0 : index
    %c0_39 = arith.constant 0 : index
    %c0_40 = arith.constant 0 : index
    %c0_41 = arith.constant 0 : index
    %23 = vector.load %arg2[%c0_38, %c0_39, %c0_40, %c0_41] : memref<3x3x128x128xbf16, #tpu.memory_space<vmem>>, vector<1x1x128x128xbf16>
    %24 = vector.shape_cast %23 : vector<1x1x128x128xbf16> to vector<128x128xbf16>
    %cst_42 = arith.constant dense<0.000000e+00> : vector<256x128xf32>
    %25 = tpu.matmul %22, %24, %cst_42 {dimension_numbers = #tpu.dot_dimension_numbers<[1], [0], [0], [1], [0, 0, 1, 1], [], []>} : vector<256x128xbf16>, vector<128x128xbf16>, vector<256x128xf32> -> vector<256x128xf32>
    %c0_43 = arith.constant 0 : index
    %c0_44 = arith.constant 0 : index
    %26 = vector.load %arg7[%c0_43, %c0_44] : memref<256x128xf32, #tpu.memory_space<vmem>>, vector<256x128xf32>
    tpu.vector_store %arg7[%c0_43, %c0_44], %25 {strides = array<i32>} : memref<256x128xf32, #tpu.memory_space<vmem>>, vector<256x128xf32>,
    %c0_45 = arith.constant 0 : index
    %c1_46 = arith.constant 1 : index
    %c0_47 = arith.constant 0 : index
    %27 = vector.load %arg5[%c0_45, %c1_46, %c0_47] : memref<18x18x128xf32, #tpu.memory_space<vmem>>, vector<16x16x128xf32>
    %28 = vector.shape_cast %27 : vector<16x16x128xf32> to vector<256x128xf32>
    %29 = arith.truncf %28 : vector<256x128xf32> to vector<256x128xbf16>
    %c0_48 = arith.constant 0 : index
    %c1_49 = arith.constant 1 : index
    %c0_50 = arith.constant 0 : index
    %c0_51 = arith.constant 0 : index
    %30 = vector.load %arg2[%c0_48, %c1_49, %c0_50, %c0_51] : memref<3x3x128x128xbf16, #tpu.memory_space<vmem>>, vector<1x1x128x128xbf16>
    %31 = vector.shape_cast %30 : vector<1x1x128x128xbf16> to vector<128x128xbf16>
    %cst_52 = arith.constant dense<0.000000e+00> : vector<256x128xf32>
    %32 = tpu.matmul %29, %31, %cst_52 {dimension_numbers = #tpu.dot_dimension_numbers<[1], [0], [0], [1], [0, 0, 1, 1], [], []>} : vector<256x128xbf16>, vector<128x128xbf16>, vector<256x128xf32> -> vector<256x128xf32>
    %c0_53 = arith.constant 0 : index
    %c0_54 = arith.constant 0 : index
    %33 = vector.load %arg7[%c0_53, %c0_54] : memref<256x128xf32, #tpu.memory_space<vmem>>, vector<256x128xf32>
    %34 = arith.addf %33, %32 : vector<256x128xf32>
    %c0_55 = arith.constant 0 : index
    %c0_56 = arith.constant 0 : index
    %35 = vector.load %arg7[%c0_55, %c0_56] : memref<256x128xf32, #tpu.memory_space<vmem>>, vector<256x128xf32>
    tpu.vector_store %arg7[%c0_55, %c0_56], %34 {strides = array<i32>} : memref<256x128xf32, #tpu.memory_space<vmem>>, vector<256x128xf32>,
    %c0_57 = arith.constant 0 : index
    %c2 = arith.constant 2 : index
    %c0_58 = arith.constant 0 : index
    %36 = vector.load %arg5[%c0_57, %c2, %c0_58] : memref<18x18x128xf32, #tpu.memory_space<vmem>>, vector<16x16x128xf32>
    %37 = vector.shape_cast %36 : vector<16x16x128xf32> to vector<256x128xf32>
    %38 = arith.truncf %37 : vector<256x128xf32> to vector<256x128xbf16>
    %c0_59 = arith.constant 0 : index
    %c2_60 = arith.constant 2 : index
    %c0_61 = arith.constant 0 : index
    %c0_62 = arith.constant 0 : index
    %39 = vector.load %arg2[%c0_59, %c2_60, %c0_61, %c0_62] : memref<3x3x128x128xbf16, #tpu.memory_space<vmem>>, vector<1x1x128x128xbf16>
    %40 = vector.shape_cast %39 : vector<1x1x128x128xbf16> to vector<128x128xbf16>
    %cst_63 = arith.constant dense<0.000000e+00> : vector<256x128xf32>
    %41 = tpu.matmul %38, %40, %cst_63 {dimension_numbers = #tpu.dot_dimension_numbers<[1], [0], [0], [1], [0, 0, 1, 1], [], []>} : vector<256x128xbf16>, vector<128x128xbf16>, vector<256x128xf32> -> vector<256x128xf32>
    %c0_64 = arith.constant 0 : index
    %c0_65 = arith.constant 0 : index
    %42 = vector.load %arg7[%c0_64, %c0_65] : memref<256x128xf32, #tpu.memory_space<vmem>>, vector<256x128xf32>
    %43 = arith.addf %42, %41 : vector<256x128xf32>
    %c0_66 = arith.constant 0 : index
    %c0_67 = arith.constant 0 : index
    %44 = vector.load %arg7[%c0_66, %c0_67] : memref<256x128xf32, #tpu.memory_space<vmem>>, vector<256x128xf32>
    tpu.vector_store %arg7[%c0_66, %c0_67], %43 {strides = array<i32>} : memref<256x128xf32, #tpu.memory_space<vmem>>, vector<256x128xf32>,
    %c1_68 = arith.constant 1 : index
    %c0_69 = arith.constant 0 : index
    %c0_70 = arith.constant 0 : index
    %45 = vector.load %arg5[%c1_68, %c0_69, %c0_70] : memref<18x18x128xf32, #tpu.memory_space<vmem>>, vector<16x16x128xf32>
    %46 = vector.shape_cast %45 : vector<16x16x128xf32> to vector<256x128xf32>
    %47 = arith.truncf %46 : vector<256x128xf32> to vector<256x128xbf16>
    %c1_71 = arith.constant 1 : index
    %c0_72 = arith.constant 0 : index
    %c0_73 = arith.constant 0 : index
    %c0_74 = arith.constant 0 : index
    %48 = vector.load %arg2[%c1_71, %c0_72, %c0_73, %c0_74] : memref<3x3x128x128xbf16, #tpu.memory_space<vmem>>, vector<1x1x128x128xbf16>
    %49 = vector.shape_cast %48 : vector<1x1x128x128xbf16> to vector<128x128xbf16>
    %cst_75 = arith.constant dense<0.000000e+00> : vector<256x128xf32>
    %50 = tpu.matmul %47, %49, %cst_75 {dimension_numbers = #tpu.dot_dimension_numbers<[1], [0], [0], [1], [0, 0, 1, 1], [], []>} : vector<256x128xbf16>, vector<128x128xbf16>, vector<256x128xf32> -> vector<256x128xf32>
    %c0_76 = arith.constant 0 : index
    %c0_77 = arith.constant 0 : index
    %51 = vector.load %arg7[%c0_76, %c0_77] : memref<256x128xf32, #tpu.memory_space<vmem>>, vector<256x128xf32>
    %52 = arith.addf %51, %50 : vector<256x128xf32>
    %c0_78 = arith.constant 0 : index
    %c0_79 = arith.constant 0 : index
    %53 = vector.load %arg7[%c0_78, %c0_79] : memref<256x128xf32, #tpu.memory_space<vmem>>, vector<256x128xf32>
    tpu.vector_store %arg7[%c0_78, %c0_79], %52 {strides = array<i32>} : memref<256x128xf32, #tpu.memory_space<vmem>>, vector<256x128xf32>,
    %c1_80 = arith.constant 1 : index
    %c1_81 = arith.constant 1 : index
    %c0_82 = arith.constant 0 : index
    %54 = vector.load %arg5[%c1_80, %c1_81, %c0_82] : memref<18x18x128xf32, #tpu.memory_space<vmem>>, vector<16x16x128xf32>
    %55 = vector.shape_cast %54 : vector<16x16x128xf32> to vector<256x128xf32>
    %56 = arith.truncf %55 : vector<256x128xf32> to vector<256x128xbf16>
    %c1_83 = arith.constant 1 : index
    %c1_84 = arith.constant 1 : index
    %c0_85 = arith.constant 0 : index
    %c0_86 = arith.constant 0 : index
    %57 = vector.load %arg2[%c1_83, %c1_84, %c0_85, %c0_86] : memref<3x3x128x128xbf16, #tpu.memory_space<vmem>>, vector<1x1x128x128xbf16>
    %58 = vector.shape_cast %57 : vector<1x1x128x128xbf16> to vector<128x128xbf16>
    %cst_87 = arith.constant dense<0.000000e+00> : vector<256x128xf32>
    %59 = tpu.matmul %56, %58, %cst_87 {dimension_numbers = #tpu.dot_dimension_numbers<[1], [0], [0], [1], [0, 0, 1, 1], [], []>} : vector<256x128xbf16>, vector<128x128xbf16>, vector<256x128xf32> -> vector<256x128xf32>
    %c0_88 = arith.constant 0 : index
    %c0_89 = arith.constant 0 : index
    %60 = vector.load %arg7[%c0_88, %c0_89] : memref<256x128xf32, #tpu.memory_space<vmem>>, vector<256x128xf32>
    %61 = arith.addf %60, %59 : vector<256x128xf32>
    %c0_90 = arith.constant 0 : index
    %c0_91 = arith.constant 0 : index
    %62 = vector.load %arg7[%c0_90, %c0_91] : memref<256x128xf32, #tpu.memory_space<vmem>>, vector<256x128xf32>
    tpu.vector_store %arg7[%c0_90, %c0_91], %61 {strides = array<i32>} : memref<256x128xf32, #tpu.memory_space<vmem>>, vector<256x128xf32>,
    %c1_92 = arith.constant 1 : index
    %c2_93 = arith.constant 2 : index
    %c0_94 = arith.constant 0 : index
    %63 = vector.load %arg5[%c1_92, %c2_93, %c0_94] : memref<18x18x128xf32, #tpu.memory_space<vmem>>, vector<16x16x128xf32>
    %64 = vector.shape_cast %63 : vector<16x16x128xf32> to vector<256x128xf32>
    %65 = arith.truncf %64 : vector<256x128xf32> to vector<256x128xbf16>
    %c1_95 = arith.constant 1 : index
    %c2_96 = arith.constant 2 : index
    %c0_97 = arith.constant 0 : index
    %c0_98 = arith.constant 0 : index
    %66 = vector.load %arg2[%c1_95, %c2_96, %c0_97, %c0_98] : memref<3x3x128x128xbf16, #tpu.memory_space<vmem>>, vector<1x1x128x128xbf16>
    %67 = vector.shape_cast %66 : vector<1x1x128x128xbf16> to vector<128x128xbf16>
    %cst_99 = arith.constant dense<0.000000e+00> : vector<256x128xf32>
    %68 = tpu.matmul %65, %67, %cst_99 {dimension_numbers = #tpu.dot_dimension_numbers<[1], [0], [0], [1], [0, 0, 1, 1], [], []>} : vector<256x128xbf16>, vector<128x128xbf16>, vector<256x128xf32> -> vector<256x128xf32>
    %c0_100 = arith.constant 0 : index
    %c0_101 = arith.constant 0 : index
    %69 = vector.load %arg7[%c0_100, %c0_101] : memref<256x128xf32, #tpu.memory_space<vmem>>, vector<256x128xf32>
    %70 = arith.addf %69, %68 : vector<256x128xf32>
    %c0_102 = arith.constant 0 : index
    %c0_103 = arith.constant 0 : index
    %71 = vector.load %arg7[%c0_102, %c0_103] : memref<256x128xf32, #tpu.memory_space<vmem>>, vector<256x128xf32>
    tpu.vector_store %arg7[%c0_102, %c0_103], %70 {strides = array<i32>} : memref<256x128xf32, #tpu.memory_space<vmem>>, vector<256x128xf32>,
    %c2_104 = arith.constant 2 : index
    %c0_105 = arith.constant 0 : index
    %c0_106 = arith.constant 0 : index
    %72 = vector.load %arg5[%c2_104, %c0_105, %c0_106] : memref<18x18x128xf32, #tpu.memory_space<vmem>>, vector<16x16x128xf32>
    %73 = vector.shape_cast %72 : vector<16x16x128xf32> to vector<256x128xf32>
    %74 = arith.truncf %73 : vector<256x128xf32> to vector<256x128xbf16>
    %c2_107 = arith.constant 2 : index
    %c0_108 = arith.constant 0 : index
    %c0_109 = arith.constant 0 : index
    %c0_110 = arith.constant 0 : index
    %75 = vector.load %arg2[%c2_107, %c0_108, %c0_109, %c0_110] : memref<3x3x128x128xbf16, #tpu.memory_space<vmem>>, vector<1x1x128x128xbf16>
    %76 = vector.shape_cast %75 : vector<1x1x128x128xbf16> to vector<128x128xbf16>
    %cst_111 = arith.constant dense<0.000000e+00> : vector<256x128xf32>
    %77 = tpu.matmul %74, %76, %cst_111 {dimension_numbers = #tpu.dot_dimension_numbers<[1], [0], [0], [1], [0, 0, 1, 1], [], []>} : vector<256x128xbf16>, vector<128x128xbf16>, vector<256x128xf32> -> vector<256x128xf32>
    %c0_112 = arith.constant 0 : index
    %c0_113 = arith.constant 0 : index
    %78 = vector.load %arg7[%c0_112, %c0_113] : memref<256x128xf32, #tpu.memory_space<vmem>>, vector<256x128xf32>
    %79 = arith.addf %78, %77 : vector<256x128xf32>
    %c0_114 = arith.constant 0 : index
    %c0_115 = arith.constant 0 : index
    %80 = vector.load %arg7[%c0_114, %c0_115] : memref<256x128xf32, #tpu.memory_space<vmem>>, vector<256x128xf32>
    tpu.vector_store %arg7[%c0_114, %c0_115], %79 {strides = array<i32>} : memref<256x128xf32, #tpu.memory_space<vmem>>, vector<256x128xf32>,
    %c2_116 = arith.constant 2 : index
    %c1_117 = arith.constant 1 : index
    %c0_118 = arith.constant 0 : index
    %81 = vector.load %arg5[%c2_116, %c1_117, %c0_118] : memref<18x18x128xf32, #tpu.memory_space<vmem>>, vector<16x16x128xf32>
    %82 = vector.shape_cast %81 : vector<16x16x128xf32> to vector<256x128xf32>
    %83 = arith.truncf %82 : vector<256x128xf32> to vector<256x128xbf16>
    %c2_119 = arith.constant 2 : index
    %c1_120 = arith.constant 1 : index
    %c0_121 = arith.constant 0 : index
    %c0_122 = arith.constant 0 : index
    %84 = vector.load %arg2[%c2_119, %c1_120, %c0_121, %c0_122] : memref<3x3x128x128xbf16, #tpu.memory_space<vmem>>, vector<1x1x128x128xbf16>
    %85 = vector.shape_cast %84 : vector<1x1x128x128xbf16> to vector<128x128xbf16>
    %cst_123 = arith.constant dense<0.000000e+00> : vector<256x128xf32>
    %86 = tpu.matmul %83, %85, %cst_123 {dimension_numbers = #tpu.dot_dimension_numbers<[1], [0], [0], [1], [0, 0, 1, 1], [], []>} : vector<256x128xbf16>, vector<128x128xbf16>, vector<256x128xf32> -> vector<256x128xf32>
    %c0_124 = arith.constant 0 : index
    %c0_125 = arith.constant 0 : index
    %87 = vector.load %arg7[%c0_124, %c0_125] : memref<256x128xf32, #tpu.memory_space<vmem>>, vector<256x128xf32>
    %88 = arith.addf %87, %86 : vector<256x128xf32>
    %c0_126 = arith.constant 0 : index
    %c0_127 = arith.constant 0 : index
    %89 = vector.load %arg7[%c0_126, %c0_127] : memref<256x128xf32, #tpu.memory_space<vmem>>, vector<256x128xf32>
    tpu.vector_store %arg7[%c0_126, %c0_127], %88 {strides = array<i32>} : memref<256x128xf32, #tpu.memory_space<vmem>>, vector<256x128xf32>,
    %c2_128 = arith.constant 2 : index
    %c2_129 = arith.constant 2 : index
    %c0_130 = arith.constant 0 : index
    %90 = vector.load %arg5[%c2_128, %c2_129, %c0_130] : memref<18x18x128xf32, #tpu.memory_space<vmem>>, vector<16x16x128xf32>
    %91 = vector.shape_cast %90 : vector<16x16x128xf32> to vector<256x128xf32>
    %92 = arith.truncf %91 : vector<256x128xf32> to vector<256x128xbf16>
    %c2_131 = arith.constant 2 : index
    %c2_132 = arith.constant 2 : index
    %c0_133 = arith.constant 0 : index
    %c0_134 = arith.constant 0 : index
    %93 = vector.load %arg2[%c2_131, %c2_132, %c0_133, %c0_134] : memref<3x3x128x128xbf16, #tpu.memory_space<vmem>>, vector<1x1x128x128xbf16>
    %94 = vector.shape_cast %93 : vector<1x1x128x128xbf16> to vector<128x128xbf16>
    %cst_135 = arith.constant dense<0.000000e+00> : vector<256x128xf32>
    %95 = tpu.matmul %92, %94, %cst_135 {dimension_numbers = #tpu.dot_dimension_numbers<[1], [0], [0], [1], [0, 0, 1, 1], [], []>} : vector<256x128xbf16>, vector<128x128xbf16>, vector<256x128xf32> -> vector<256x128xf32>
    %c0_136 = arith.constant 0 : index
    %c0_137 = arith.constant 0 : index
    %96 = vector.load %arg7[%c0_136, %c0_137] : memref<256x128xf32, #tpu.memory_space<vmem>>, vector<256x128xf32>
    %97 = arith.addf %96, %95 : vector<256x128xf32>
    %c0_138 = arith.constant 0 : index
    %c0_139 = arith.constant 0 : index
    %98 = vector.load %arg7[%c0_138, %c0_139] : memref<256x128xf32, #tpu.memory_space<vmem>>, vector<256x128xf32>
    tpu.vector_store %arg7[%c0_138, %c0_139], %97 {strides = array<i32>} : memref<256x128xf32, #tpu.memory_space<vmem>>, vector<256x128xf32>,
    %c0_140 = arith.constant 0 : index
    %c0_141 = arith.constant 0 : index
    %99 = vector.load %arg7[%c0_140, %c0_141] : memref<256x128xf32, #tpu.memory_space<vmem>>, vector<256x128xf32>
    %cst_142 = arith.constant 0.000000e+00 : f32
    %100 = vector.broadcast %cst_142 : f32 to vector<256x128xf32>
    %101 = arith.maximumf %99, %100 : vector<256x128xf32>
    %102 = vector.shape_cast %101 : vector<256x128xf32> to vector<16x16x128xf32>
    %c1_143 = arith.constant 1 : index
    %c1_144 = arith.constant 1 : index
    %c0_145 = arith.constant 0 : index
    %103 = vector.load %arg6[%c1_143, %c1_144, %c0_145] : memref<18x18x128xf32, #tpu.memory_space<vmem>>, vector<16x16x128xf32>
    tpu.vector_store %arg6[%c1_143, %c1_144, %c0_145], %102 {strides = array<i32>} : memref<18x18x128xf32, #tpu.memory_space<vmem>>, vector<16x16x128xf32>,
    %c0_146 = arith.constant 0 : index
    %c0_147 = arith.constant 0 : index
    %c0_148 = arith.constant 0 : index
    %104 = vector.load %arg6[%c0_146, %c0_147, %c0_148] : memref<18x18x128xf32, #tpu.memory_space<vmem>>, vector<16x16x128xf32>
    %105 = vector.shape_cast %104 : vector<16x16x128xf32> to vector<256x128xf32>
    %106 = arith.truncf %105 : vector<256x128xf32> to vector<256x128xbf16>
    %c0_149 = arith.constant 0 : index
    %c0_150 = arith.constant 0 : index
    %c0_151 = arith.constant 0 : index
    %c0_152 = arith.constant 0 : index
    %107 = vector.load %arg3[%c0_149, %c0_150, %c0_151, %c0_152] : memref<3x3x128x128xbf16, #tpu.memory_space<vmem>>, vector<1x1x128x128xbf16>
    %108 = vector.shape_cast %107 : vector<1x1x128x128xbf16> to vector<128x128xbf16>
    %cst_153 = arith.constant dense<0.000000e+00> : vector<256x128xf32>
    %109 = tpu.matmul %106, %108, %cst_153 {dimension_numbers = #tpu.dot_dimension_numbers<[1], [0], [0], [1], [0, 0, 1, 1], [], []>} : vector<256x128xbf16>, vector<128x128xbf16>, vector<256x128xf32> -> vector<256x128xf32>
    %c0_154 = arith.constant 0 : index
    %c0_155 = arith.constant 0 : index
    %110 = vector.load %arg7[%c0_154, %c0_155] : memref<256x128xf32, #tpu.memory_space<vmem>>, vector<256x128xf32>
    tpu.vector_store %arg7[%c0_154, %c0_155], %109 {strides = array<i32>} : memref<256x128xf32, #tpu.memory_space<vmem>>, vector<256x128xf32>,
    %c0_156 = arith.constant 0 : index
    %c1_157 = arith.constant 1 : index
    %c0_158 = arith.constant 0 : index
    %111 = vector.load %arg6[%c0_156, %c1_157, %c0_158] : memref<18x18x128xf32, #tpu.memory_space<vmem>>, vector<16x16x128xf32>
    %112 = vector.shape_cast %111 : vector<16x16x128xf32> to vector<256x128xf32>
    %113 = arith.truncf %112 : vector<256x128xf32> to vector<256x128xbf16>
    %c0_159 = arith.constant 0 : index
    %c1_160 = arith.constant 1 : index
    %c0_161 = arith.constant 0 : index
    %c0_162 = arith.constant 0 : index
    %114 = vector.load %arg3[%c0_159, %c1_160, %c0_161, %c0_162] : memref<3x3x128x128xbf16, #tpu.memory_space<vmem>>, vector<1x1x128x128xbf16>
    %115 = vector.shape_cast %114 : vector<1x1x128x128xbf16> to vector<128x128xbf16>
    %cst_163 = arith.constant dense<0.000000e+00> : vector<256x128xf32>
    %116 = tpu.matmul %113, %115, %cst_163 {dimension_numbers = #tpu.dot_dimension_numbers<[1], [0], [0], [1], [0, 0, 1, 1], [], []>} : vector<256x128xbf16>, vector<128x128xbf16>, vector<256x128xf32> -> vector<256x128xf32>
    %c0_164 = arith.constant 0 : index
    %c0_165 = arith.constant 0 : index
    %117 = vector.load %arg7[%c0_164, %c0_165] : memref<256x128xf32, #tpu.memory_space<vmem>>, vector<256x128xf32>
    %118 = arith.addf %117, %116 : vector<256x128xf32>
    %c0_166 = arith.constant 0 : index
    %c0_167 = arith.constant 0 : index
    %119 = vector.load %arg7[%c0_166, %c0_167] : memref<256x128xf32, #tpu.memory_space<vmem>>, vector<256x128xf32>
    tpu.vector_store %arg7[%c0_166, %c0_167], %118 {strides = array<i32>} : memref<256x128xf32, #tpu.memory_space<vmem>>, vector<256x128xf32>,
    %c0_168 = arith.constant 0 : index
    %c2_169 = arith.constant 2 : index
    %c0_170 = arith.constant 0 : index
    %120 = vector.load %arg6[%c0_168, %c2_169, %c0_170] : memref<18x18x128xf32, #tpu.memory_space<vmem>>, vector<16x16x128xf32>
    %121 = vector.shape_cast %120 : vector<16x16x128xf32> to vector<256x128xf32>
    %122 = arith.truncf %121 : vector<256x128xf32> to vector<256x128xbf16>
    %c0_171 = arith.constant 0 : index
    %c2_172 = arith.constant 2 : index
    %c0_173 = arith.constant 0 : index
    %c0_174 = arith.constant 0 : index
    %123 = vector.load %arg3[%c0_171, %c2_172, %c0_173, %c0_174] : memref<3x3x128x128xbf16, #tpu.memory_space<vmem>>, vector<1x1x128x128xbf16>
    %124 = vector.shape_cast %123 : vector<1x1x128x128xbf16> to vector<128x128xbf16>
    %cst_175 = arith.constant dense<0.000000e+00> : vector<256x128xf32>
    %125 = tpu.matmul %122, %124, %cst_175 {dimension_numbers = #tpu.dot_dimension_numbers<[1], [0], [0], [1], [0, 0, 1, 1], [], []>} : vector<256x128xbf16>, vector<128x128xbf16>, vector<256x128xf32> -> vector<256x128xf32>
    %c0_176 = arith.constant 0 : index
    %c0_177 = arith.constant 0 : index
    %126 = vector.load %arg7[%c0_176, %c0_177] : memref<256x128xf32, #tpu.memory_space<vmem>>, vector<256x128xf32>
    %127 = arith.addf %126, %125 : vector<256x128xf32>
    %c0_178 = arith.constant 0 : index
    %c0_179 = arith.constant 0 : index
    %128 = vector.load %arg7[%c0_178, %c0_179] : memref<256x128xf32, #tpu.memory_space<vmem>>, vector<256x128xf32>
    tpu.vector_store %arg7[%c0_178, %c0_179], %127 {strides = array<i32>} : memref<256x128xf32, #tpu.memory_space<vmem>>, vector<256x128xf32>,
    %c1_180 = arith.constant 1 : index
    %c0_181 = arith.constant 0 : index
    %c0_182 = arith.constant 0 : index
    %129 = vector.load %arg6[%c1_180, %c0_181, %c0_182] : memref<18x18x128xf32, #tpu.memory_space<vmem>>, vector<16x16x128xf32>
    %130 = vector.shape_cast %129 : vector<16x16x128xf32> to vector<256x128xf32>
    %131 = arith.truncf %130 : vector<256x128xf32> to vector<256x128xbf16>
    %c1_183 = arith.constant 1 : index
    %c0_184 = arith.constant 0 : index
    %c0_185 = arith.constant 0 : index
    %c0_186 = arith.constant 0 : index
    %132 = vector.load %arg3[%c1_183, %c0_184, %c0_185, %c0_186] : memref<3x3x128x128xbf16, #tpu.memory_space<vmem>>, vector<1x1x128x128xbf16>
    %133 = vector.shape_cast %132 : vector<1x1x128x128xbf16> to vector<128x128xbf16>
    %cst_187 = arith.constant dense<0.000000e+00> : vector<256x128xf32>
    %134 = tpu.matmul %131, %133, %cst_187 {dimension_numbers = #tpu.dot_dimension_numbers<[1], [0], [0], [1], [0, 0, 1, 1], [], []>} : vector<256x128xbf16>, vector<128x128xbf16>, vector<256x128xf32> -> vector<256x128xf32>
    %c0_188 = arith.constant 0 : index
    %c0_189 = arith.constant 0 : index
    %135 = vector.load %arg7[%c0_188, %c0_189] : memref<256x128xf32, #tpu.memory_space<vmem>>, vector<256x128xf32>
    %136 = arith.addf %135, %134 : vector<256x128xf32>
    %c0_190 = arith.constant 0 : index
    %c0_191 = arith.constant 0 : index
    %137 = vector.load %arg7[%c0_190, %c0_191] : memref<256x128xf32, #tpu.memory_space<vmem>>, vector<256x128xf32>
    tpu.vector_store %arg7[%c0_190, %c0_191], %136 {strides = array<i32>} : memref<256x128xf32, #tpu.memory_space<vmem>>, vector<256x128xf32>,
    %c1_192 = arith.constant 1 : index
    %c1_193 = arith.constant 1 : index
    %c0_194 = arith.constant 0 : index
    %138 = vector.load %arg6[%c1_192, %c1_193, %c0_194] : memref<18x18x128xf32, #tpu.memory_space<vmem>>, vector<16x16x128xf32>
    %139 = vector.shape_cast %138 : vector<16x16x128xf32> to vector<256x128xf32>
    %140 = arith.truncf %139 : vector<256x128xf32> to vector<256x128xbf16>
    %c1_195 = arith.constant 1 : index
    %c1_196 = arith.constant 1 : index
    %c0_197 = arith.constant 0 : index
    %c0_198 = arith.constant 0 : index
    %141 = vector.load %arg3[%c1_195, %c1_196, %c0_197, %c0_198] : memref<3x3x128x128xbf16, #tpu.memory_space<vmem>>, vector<1x1x128x128xbf16>
    %142 = vector.shape_cast %141 : vector<1x1x128x128xbf16> to vector<128x128xbf16>
    %cst_199 = arith.constant dense<0.000000e+00> : vector<256x128xf32>
    %143 = tpu.matmul %140, %142, %cst_199 {dimension_numbers = #tpu.dot_dimension_numbers<[1], [0], [0], [1], [0, 0, 1, 1], [], []>} : vector<256x128xbf16>, vector<128x128xbf16>, vector<256x128xf32> -> vector<256x128xf32>
    %c0_200 = arith.constant 0 : index
    %c0_201 = arith.constant 0 : index
    %144 = vector.load %arg7[%c0_200, %c0_201] : memref<256x128xf32, #tpu.memory_space<vmem>>, vector<256x128xf32>
    %145 = arith.addf %144, %143 : vector<256x128xf32>
    %c0_202 = arith.constant 0 : index
    %c0_203 = arith.constant 0 : index
    %146 = vector.load %arg7[%c0_202, %c0_203] : memref<256x128xf32, #tpu.memory_space<vmem>>, vector<256x128xf32>
    tpu.vector_store %arg7[%c0_202, %c0_203], %145 {strides = array<i32>} : memref<256x128xf32, #tpu.memory_space<vmem>>, vector<256x128xf32>,
    %c1_204 = arith.constant 1 : index
    %c2_205 = arith.constant 2 : index
    %c0_206 = arith.constant 0 : index
    %147 = vector.load %arg6[%c1_204, %c2_205, %c0_206] : memref<18x18x128xf32, #tpu.memory_space<vmem>>, vector<16x16x128xf32>
    %148 = vector.shape_cast %147 : vector<16x16x128xf32> to vector<256x128xf32>
    %149 = arith.truncf %148 : vector<256x128xf32> to vector<256x128xbf16>
    %c1_207 = arith.constant 1 : index
    %c2_208 = arith.constant 2 : index
    %c0_209 = arith.constant 0 : index
    %c0_210 = arith.constant 0 : index
    %150 = vector.load %arg3[%c1_207, %c2_208, %c0_209, %c0_210] : memref<3x3x128x128xbf16, #tpu.memory_space<vmem>>, vector<1x1x128x128xbf16>
    %151 = vector.shape_cast %150 : vector<1x1x128x128xbf16> to vector<128x128xbf16>
    %cst_211 = arith.constant dense<0.000000e+00> : vector<256x128xf32>
    %152 = tpu.matmul %149, %151, %cst_211 {dimension_numbers = #tpu.dot_dimension_numbers<[1], [0], [0], [1], [0, 0, 1, 1], [], []>} : vector<256x128xbf16>, vector<128x128xbf16>, vector<256x128xf32> -> vector<256x128xf32>
    %c0_212 = arith.constant 0 : index
    %c0_213 = arith.constant 0 : index
    %153 = vector.load %arg7[%c0_212, %c0_213] : memref<256x128xf32, #tpu.memory_space<vmem>>, vector<256x128xf32>
    %154 = arith.addf %153, %152 : vector<256x128xf32>
    %c0_214 = arith.constant 0 : index
    %c0_215 = arith.constant 0 : index
    %155 = vector.load %arg7[%c0_214, %c0_215] : memref<256x128xf32, #tpu.memory_space<vmem>>, vector<256x128xf32>
    tpu.vector_store %arg7[%c0_214, %c0_215], %154 {strides = array<i32>} : memref<256x128xf32, #tpu.memory_space<vmem>>, vector<256x128xf32>,
    %c2_216 = arith.constant 2 : index
    %c0_217 = arith.constant 0 : index
    %c0_218 = arith.constant 0 : index
    %156 = vector.load %arg6[%c2_216, %c0_217, %c0_218] : memref<18x18x128xf32, #tpu.memory_space<vmem>>, vector<16x16x128xf32>
    %157 = vector.shape_cast %156 : vector<16x16x128xf32> to vector<256x128xf32>
    %158 = arith.truncf %157 : vector<256x128xf32> to vector<256x128xbf16>
    %c2_219 = arith.constant 2 : index
    %c0_220 = arith.constant 0 : index
    %c0_221 = arith.constant 0 : index
    %c0_222 = arith.constant 0 : index
    %159 = vector.load %arg3[%c2_219, %c0_220, %c0_221, %c0_222] : memref<3x3x128x128xbf16, #tpu.memory_space<vmem>>, vector<1x1x128x128xbf16>
    %160 = vector.shape_cast %159 : vector<1x1x128x128xbf16> to vector<128x128xbf16>
    %cst_223 = arith.constant dense<0.000000e+00> : vector<256x128xf32>
    %161 = tpu.matmul %158, %160, %cst_223 {dimension_numbers = #tpu.dot_dimension_numbers<[1], [0], [0], [1], [0, 0, 1, 1], [], []>} : vector<256x128xbf16>, vector<128x128xbf16>, vector<256x128xf32> -> vector<256x128xf32>
    %c0_224 = arith.constant 0 : index
    %c0_225 = arith.constant 0 : index
    %162 = vector.load %arg7[%c0_224, %c0_225] : memref<256x128xf32, #tpu.memory_space<vmem>>, vector<256x128xf32>
    %163 = arith.addf %162, %161 : vector<256x128xf32>
    %c0_226 = arith.constant 0 : index
    %c0_227 = arith.constant 0 : index
    %164 = vector.load %arg7[%c0_226, %c0_227] : memref<256x128xf32, #tpu.memory_space<vmem>>, vector<256x128xf32>
    tpu.vector_store %arg7[%c0_226, %c0_227], %163 {strides = array<i32>} : memref<256x128xf32, #tpu.memory_space<vmem>>, vector<256x128xf32>,
    %c2_228 = arith.constant 2 : index
    %c1_229 = arith.constant 1 : index
    %c0_230 = arith.constant 0 : index
    %165 = vector.load %arg6[%c2_228, %c1_229, %c0_230] : memref<18x18x128xf32, #tpu.memory_space<vmem>>, vector<16x16x128xf32>
    %166 = vector.shape_cast %165 : vector<16x16x128xf32> to vector<256x128xf32>
    %167 = arith.truncf %166 : vector<256x128xf32> to vector<256x128xbf16>
    %c2_231 = arith.constant 2 : index
    %c1_232 = arith.constant 1 : index
    %c0_233 = arith.constant 0 : index
    %c0_234 = arith.constant 0 : index
    %168 = vector.load %arg3[%c2_231, %c1_232, %c0_233, %c0_234] : memref<3x3x128x128xbf16, #tpu.memory_space<vmem>>, vector<1x1x128x128xbf16>
    %169 = vector.shape_cast %168 : vector<1x1x128x128xbf16> to vector<128x128xbf16>
    %cst_235 = arith.constant dense<0.000000e+00> : vector<256x128xf32>
    %170 = tpu.matmul %167, %169, %cst_235 {dimension_numbers = #tpu.dot_dimension_numbers<[1], [0], [0], [1], [0, 0, 1, 1], [], []>} : vector<256x128xbf16>, vector<128x128xbf16>, vector<256x128xf32> -> vector<256x128xf32>
    %c0_236 = arith.constant 0 : index
    %c0_237 = arith.constant 0 : index
    %171 = vector.load %arg7[%c0_236, %c0_237] : memref<256x128xf32, #tpu.memory_space<vmem>>, vector<256x128xf32>
    %172 = arith.addf %171, %170 : vector<256x128xf32>
    %c0_238 = arith.constant 0 : index
    %c0_239 = arith.constant 0 : index
    %173 = vector.load %arg7[%c0_238, %c0_239] : memref<256x128xf32, #tpu.memory_space<vmem>>, vector<256x128xf32>
    tpu.vector_store %arg7[%c0_238, %c0_239], %172 {strides = array<i32>} : memref<256x128xf32, #tpu.memory_space<vmem>>, vector<256x128xf32>,
    %c2_240 = arith.constant 2 : index
    %c2_241 = arith.constant 2 : index
    %c0_242 = arith.constant 0 : index
    %174 = vector.load %arg6[%c2_240, %c2_241, %c0_242] : memref<18x18x128xf32, #tpu.memory_space<vmem>>, vector<16x16x128xf32>
    %175 = vector.shape_cast %174 : vector<16x16x128xf32> to vector<256x128xf32>
    %176 = arith.truncf %175 : vector<256x128xf32> to vector<256x128xbf16>
    %c2_243 = arith.constant 2 : index
    %c2_244 = arith.constant 2 : index
    %c0_245 = arith.constant 0 : index
    %c0_246 = arith.constant 0 : index
    %177 = vector.load %arg3[%c2_243, %c2_244, %c0_245, %c0_246] : memref<3x3x128x128xbf16, #tpu.memory_space<vmem>>, vector<1x1x128x128xbf16>
    %178 = vector.shape_cast %177 : vector<1x1x128x128xbf16> to vector<128x128xbf16>
    %cst_247 = arith.constant dense<0.000000e+00> : vector<256x128xf32>
    %179 = tpu.matmul %176, %178, %cst_247 {dimension_numbers = #tpu.dot_dimension_numbers<[1], [0], [0], [1], [0, 0, 1, 1], [], []>} : vector<256x128xbf16>, vector<128x128xbf16>, vector<256x128xf32> -> vector<256x128xf32>
    %c0_248 = arith.constant 0 : index
    %c0_249 = arith.constant 0 : index
    %180 = vector.load %arg7[%c0_248, %c0_249] : memref<256x128xf32, #tpu.memory_space<vmem>>, vector<256x128xf32>
    %181 = arith.addf %180, %179 : vector<256x128xf32>
    %c0_250 = arith.constant 0 : index
    %c0_251 = arith.constant 0 : index
    %182 = vector.load %arg7[%c0_250, %c0_251] : memref<256x128xf32, #tpu.memory_space<vmem>>, vector<256x128xf32>
    tpu.vector_store %arg7[%c0_250, %c0_251], %181 {strides = array<i32>} : memref<256x128xf32, #tpu.memory_space<vmem>>, vector<256x128xf32>,
    %c1_252 = arith.constant 1 : index
    %c1_253 = arith.constant 1 : index
    %c0_254 = arith.constant 0 : index
    %183 = vector.load %arg5[%c1_252, %c1_253, %c0_254] : memref<18x18x128xf32, #tpu.memory_space<vmem>>, vector<16x16x128xf32>
    %184 = vector.shape_cast %183 : vector<16x16x128xf32> to vector<256x128xf32>
    %c0_255 = arith.constant 0 : index
    %c0_256 = arith.constant 0 : index
    %185 = vector.load %arg7[%c0_255, %c0_256] : memref<256x128xf32, #tpu.memory_space<vmem>>, vector<256x128xf32>
    %186 = arith.addf %185, %184 : vector<256x128xf32>
    %cst_257 = arith.constant 0.000000e+00 : f32
    %187 = vector.broadcast %cst_257 : f32 to vector<256x128xf32>
    %188 = arith.maximumf %186, %187 : vector<256x128xf32>
    %189 = vector.shape_cast %188 : vector<256x128xf32> to vector<1x16x16x128xf32>
    %c0_258 = arith.constant 0 : index
    %c0_259 = arith.constant 0 : index
    %c0_260 = arith.constant 0 : index
    %c0_261 = arith.constant 0 : index
    %190 = vector.load %arg4[%c0_258, %c0_259, %c0_260, %c0_261] : memref<1x16x16x128xf32, #tpu.memory_space<vmem>>, vector<1x16x16x128xf32>
    tpu.vector_store %arg4[%c0_258, %c0_259, %c0_260, %c0_261], %189 {strides = array<i32>} : memref<1x16x16x128xf32, #tpu.memory_space<vmem>>, vector<1x16x16x128xf32>,
    return
  }
  func.func @transform_0(%arg0: i32) -> (i32, i32, i32, i32) {
    %c0_i32 = arith.constant 0 : i32
    %c0_i32_0 = arith.constant 0 : i32
    %c0_i32_1 = arith.constant 0 : i32
    %c0_i32_2 = arith.constant 0 : i32
    return %arg0, %c0_i32, %c0_i32_0, %c0_i32_1 : i32, i32, i32, i32
  }
  func.func @transform_1(%arg0: i32) -> (i32, i32, i32, i32) {
    %c0_i32 = arith.constant 0 : i32
    %c0_i32_0 = arith.constant 0 : i32
    %c0_i32_1 = arith.constant 0 : i32
    %c0_i32_2 = arith.constant 0 : i32
    %c0_i32_3 = arith.constant 0 : i32
    return %c0_i32, %c0_i32_0, %c0_i32_1, %c0_i32_2 : i32, i32, i32, i32
  }
  func.func @transform_2(%arg0: i32) -> (i32, i32, i32, i32) {
    %c0_i32 = arith.constant 0 : i32
    %c0_i32_0 = arith.constant 0 : i32
    %c0_i32_1 = arith.constant 0 : i32
    %c0_i32_2 = arith.constant 0 : i32
    %c0_i32_3 = arith.constant 0 : i32
    return %c0_i32, %c0_i32_0, %c0_i32_1, %c0_i32_2 : i32, i32, i32, i32
  }
  func.func @transform_3(%arg0: i32) -> (i32, i32, i32, i32) {
    %c0_i32 = arith.constant 0 : i32
    %c0_i32_0 = arith.constant 0 : i32
    %c0_i32_1 = arith.constant 0 : i32
    %c0_i32_2 = arith.constant 0 : i32
    return %arg0, %c0_i32, %c0_i32_0, %c0_i32_1 : i32, i32, i32, i32
  }
}

</mosaic_0001>

<bundles_post_ra>
// kernel: tpu_custom_call.1
= control target key start
LH: loop header
LB: loop body
LE: loop exit
PB: predicated region body
PF: predicated region fallthrough
CT: control target
= control target key end

     0   :  { %8 = vsyncpa [#allocation6], 0  ;;  %s11136_s0 = inlined_call_operand.hbm [shape: bf16[2,16,16,128], index: 0, kind: input, shape index: {}]   ;;  %s11137_s1 = inlined_call_operand.hbm [shape: bf16[3,3,128,128], index: 1, kind: input, shape index: {}]   ;;  %s11138_s2 = inlined_call_operand.hbm [shape: bf16[3,3,128,128], index: 2, kind: input, shape index: {}]   ;;  %s11139_s3 = inlined_call_operand.hbm [shape: f32[2,16,16,128], index: 3, kind: output, shape index: {}]  }
   0x1   :  { %10 = vsyncpa [#allocation6 + $0x1], 0 }
   0x2   :  { %11 = vsyncpa [#allocation9], 0 }
   0x3   :  { %12 = vsyncpa [#allocation7], 0 }
   0x4   :  { %14 = vsyncpa [#allocation7 + $0x1], 0  ;;  %s9249_s12 = smov 0   ;;  %s9251_s13 = smov 0  }
   0x5   :  { %s9253_s14 = smov 0   ;;  %s9255_s15 = smov 0  }
   0x6 LB: > { %s9270_s16 = sadd.s32 4294967295, %s9218_s15   ;;  %s7297_s17 = sadd.s32 4294967294, %s9218_s15   ;;  %s9218_s15 = sphi %s9255_s15, %s11437_s15   ;;  %s9214_s14 = sphi %s9253_s14, %s11436_s14   ;;  %s9210_s13 = sphi %s9251_s13, %s11435_s13   ;;  %s9206_s12 = sphi %s9249_s12, %s11434_s12  }
   0x7   : > { %p40_p0 = scmp.ne.s32.totalorder %s9210_s13, %s9206_s12  ;;  %p11140_p1 = scmp.eq.s32.totalorder %s9270_s16, 0 }
   0x8   : > { %p106_p2 = scmp.eq.s32.totalorder %s9270_s16, 1  ;;  %p112_p3 = scmp.eq.s32.totalorder %s7297_s17, 1 }
   0x9   : > { %p9279_p4 = por %p11140_p1, %p40_p0  ;;  %p7298_p5 = scmp.ge.s32.totalorder %s9218_s15, 1 }
   0xa   : > { %p9284_p6 = por %p112_p3, %p40_p0  ;;  %p119_p7 = scmp.lt.s32.totalorder %s9218_s15, 3 }
   0xb   : > { %s11145_s18 = scalar_select %p9279_p4, 1, 0 }
   0xc   : > { %s11146_s19 = scalar_select %p9284_p6, 1, 0 }
   0xd   : > { %p9289_p8 = pnand %p7298_p5, %p119_p7  ;;  %s9220_s21 = smov [#allocation8]  }
   0xe   : > { %s131_s22 = sshll.u32 %s9220_s21, 4  ;;  %s9221_s24 = smov [#allocation10]   ;;  %s132_s22 = int_to_ptr.vmem [resolvable:$true] %s131_s22 }
   0xf   : > { %s11147_s20 = scalar_select %p9289_p8, 1, 0 }
  0x10   : > { %p8848_p9 = pneg %p9289_p8  ;;  %s144_s25 = sshll.u32 %s9221_s24, 4  ;;  %s145_s25 = int_to_ptr.vmem [resolvable:$true] %s144_s25 }
  0x11   : > { %s9081_s26 = scalar_lea.vmem %s132_s22, 9216  ;;  %p9089_p5 = scmp.lt.s32.totalorder %s132_s22, %s132_s22 }
  0x12   : > { %p9298_p11 = pnand %p8848_p9, %p11140_p1  ;;  %p9082_p13 = scmp.ne.s32.totalorder %s132_s22, %s9081_s26 }
  0x13   : > { %p9090_p7 = scmp.lt.s32.totalorder %s9081_s26, %s9081_s26 }
  0x14   : > { %p9072_p12 = pneg %p9298_p11 }
  0x15   : > { %p9091_p10 = por %p9090_p7, %p9089_p5 }
  0x16   : > { %p9084_p0 = pnand %p9082_p13, %p9072_p12 }
  0x18   : > { %p9085_p3 = pneg %p9084_p0 }
  0x1a   : > { %p9092_p9 = pnand %p9091_p10, %p9085_p3 }
  0x1c   : > { %9095 = shalt.err (!%p9092_p9)
}
  0x1d   : > { %s9222_s27 = smov 64   ;;  %s9223_s28 = smov 4  }
  0x1e   : > { %8851 = dma.hbm_to_vmem [thread:$0]  (!%p9298_p11), %s11137_s1, 9216, %s132_s22, [#allocation9], %s9222_s27, %s9222_s27, %s9223_s28  }
  0x1f   : > { %s9107_s4 = scalar_lea.vmem %s145_s25, 9216  ;;  %p9115_p10 = scmp.lt.s32.totalorder %s145_s25, %s145_s25 }
  0x20   : > { %p9108_p13 = scmp.ne.s32.totalorder %s145_s25, %s9107_s4  ;;  %p9116_p3 = scmp.lt.s32.totalorder %s9107_s4, %s9107_s4 }
  0x22   : > { %p9110_p0 = pnand %p9108_p13, %p9072_p12  ;;  %p9117_p7 = por %p9116_p3, %p9115_p10 }
  0x24   : > { %p9111_p5 = pneg %p9110_p0 }
  0x26   : > { %p9118_p9 = pnand %p9117_p7, %p9111_p5 }
  0x28   : > { %9121 = shalt.err (!%p9118_p9)
}
  0x29   : > { %8854 = dma.hbm_to_vmem [thread:$0]  (!%p9298_p11), %s11138_s2, 9216, %s145_s25, [#allocation9], %s9222_s27, %s9222_s27, %s9223_s28  }
  0x2a   : > { %s9327_s7 = sadd.s32 1, %s9218_s15   ;;  %s27_s8 = sadd.s32 1, %s9214_s14 }
  0x2b   : > { %s24_s9 = ssub.s32 %s9218_s15, %s9327_s7  ;;  %p34_p12 = scmp.ne.s32.totalorder %s9214_s14, %s9210_s13 }
  0x2c   : > { %p25_p13 = scmp.eq.s32.totalorder %s24_s9, 0  ;;  %p35_p0 = scmp.eq.s32.totalorder %s9218_s15, 0 }
  0x2d   : > { %p9337_p5 = por %p106_p2, %p34_p12  ;;  %p8865_p10 = scmp.lt.s32.totalorder %s9218_s15, 2 }
  0x2e   : > { %s9343_s11 = scalar_select %p25_p13, %s9214_s14, %s27_s8  }
  0x2f   : > { %s11149_s10 = scalar_select %p9337_p5, 1, 0 }
  0x30   : > { %p36_p3 = por %p35_p0, %p34_p12  ;;  %s158_s17 = sand.u32 1, %s9214_s14  }
  0x31   : > { %s7302_s21 = sshll.u32 %s158_s17, 7  ;;  %s7459_s22 = sshll.u32 %s9218_s15, 11 }
  0x32   : > { %s9350_s25 = scalar_lea.hbm %s11136_s0, %s7459_s22  ;;  %s162_s26 = scalar_lea.vmem [#allocation5], %s7302_s21 }
  0x33   : > { %s169_s29 = sshll.u32 %s162_s26, 4  ;;  %p9354_p2 = pnand %p8865_p10, %p36_p3  ;;  %s9352_s29 = int_to_ptr.vmem [resolvable:$true] %s169_s29 }
  0x34   : > { %s9358_s4 = scalar_lea.sflag [#allocation6], %s158_s17  ;;  %s9122_s5 = scalar_lea.hbm %s9350_s25, 2048 }
  0x35   : > { %p9123_p11 = scmp.ne.s32.totalorder %s9350_s25, %s9122_s5  ;;  %p9124_p7 = pneg %p9354_p2 }
  0x36   : > { %s9127_s9 = scalar_lea.hbm %s11136_s0, 4096  ;;  %p9128_p13 = scmp.lt.s32.totalorder %s9350_s25, %s11136_s0 }
  0x37   : > { %p9125_p9 = pnand %p9124_p7, %p9123_p11  ;;  %p9129_p0 = scmp.lt.s32.totalorder %s9127_s9, %s9122_s5 }
  0x39   : > { %p9126_p12 = pneg %p9125_p9  ;;  %p9130_p10 = por %p9129_p0, %p9128_p13 }
  0x3b   : > { %p9131_p3 = pnand %p9130_p10, %p9126_p12 }
  0x3d   : > { %9134 = shalt.err (!%p9131_p3)
}
  0x3e   : > { %s9135_s17 = scalar_lea.vmem %s9352_s29, 2048  ;;  %s9224_s23 = smov [#allocation5]  }
  0x3f   : > { %p9136_p1 = scmp.ne.s32.totalorder %s9352_s29, %s9135_s17  ;;  %s9140_s24 = sshll.u32 %s9224_s23, 4  ;;  %s9141_s24 = int_to_ptr.vmem [resolvable:$false] %s9140_s24 }
  0x40   : > { %s9142_s26 = scalar_lea.vmem %s9141_s24, 4096  ;;  %p9143_p9 = scmp.lt.s32.totalorder %s9352_s29, %s9141_s24 }
  0x41   : > { %p9138_p6 = pnand %p9136_p1, %p9124_p7  ;;  %p9144_p5 = scmp.lt.s32.totalorder %s9142_s26, %s9135_s17 }
  0x43   : > { %p9139_p11 = pneg %p9138_p6  ;;  %p9145_p4 = por %p9144_p5, %p9143_p9 }
  0x45   : > { %p9146_p8 = pnand %p9145_p4, %p9139_p11 }
  0x47   : > { %9149 = shalt.err (!%p9146_p8)
}
  0x48   : > { %8858 = dma.hbm_to_vmem [thread:$0]  (!%p9354_p2), %s9350_s25, 2048, %s9352_s29, %s9358_s4, %s9222_s27, %s9222_s27, %s9223_s28  }
  0x49   : > { %p11151_p1 = scmp.ne.s32.totalorder %s11147_s20, 0 }
  0x4b   : > { %181 = sbr.rel (%p11151_p1) target bundleno = 1141 (0x475), region = 32 }
  0x50   : > { %s9385_s5 = sand.u32 1, %s9210_s13   ;;  %p11152_p4 = scmp.ne.s32.totalorder %s11145_s18, 0 }
  0x51   : > { %s7306_s6 = sshll.u32 %s9385_s5, 7  ;;  %s184_s8 = scalar_lea.sflag [#allocation6], %s9385_s5 }
  0x52   : > { %s9389_s9 = scalar_lea.vmem [#allocation5], %s7306_s6 }
  0x53   : > { %9193 = dma.done.wait (%p11152_p4), %s184_s8, 2048  }
  0x54   : > { %9195 = vsyncadd (%p11152_p4), %s184_s8, 4294965248  ;;  %p11153_p6 = scmp.eq.s32.totalorder %s9270_s16, 0 }
  0x56   : > { %9197 = dma.done.wait (%p11153_p6), [#allocation9], 18432   ;;  %p11154_p8 = pmov %p11153_p6 }
  0x57   : > { %v9225_v0 = vmov 0.0   ;;  %v8908_v1 = vld [vmem:[#allocation8 + $0x38] sm:$0xff]   ;;  %v8910_v3 = vld [vmem:[#allocation8 + $0x30] sm:$0xff]   ;;  %v8912_v5 = vld [vmem:[#allocation8 + $0x28] sm:$0xff]   ;;  %s7309_s18 = sshll.u32 %s9385_s5, 8  ;;  %s7460_s27 = sshll.u32 %s9270_s16, 12 }
  0x58   : > { %9199 = vsyncadd (%p11154_p8), [#allocation9], 4294948864  ;;  %219 = vst [vmem:[#allocation2] sm:$0xff] %v9225_v0  ;;  %v8909_v2 = vld [vmem:[#allocation8 + $0x78] sm:$0xff]   ;;  %7972 = vmatprep.subr.bf16.mxu0 %v8908_v1  ;;  %v8911_v4 = vld [vmem:[#allocation8 + $0x70] sm:$0xff]   ;;  %s10945_s20 = scalar_lea.vmem [#allocation11], %s7309_s18  ;;  %s11089_s30 = scalar_lea.hbm %s11139_s3, %s7460_s27 }
  0x59   : > { %220 = vst [vmem:[#allocation2 + $0x8] sm:$0xff] %v9225_v0  ;;  %221 = vst [vmem:[#allocation2 + $0x10] sm:$0x3] %v9225_v0  ;;  %8020 = vmatprep.subr.bf16.mxu1 %v8909_v2  ;;  %7973 = vmatpush3.bf16.msra.mxu0 %v8908_v1  ;;  %v8913_v6 = vld [vmem:[#allocation8 + $0x68] sm:$0xff]   ;;  %v8914_v7 = vld [vmem:[#allocation8 + $0x20] sm:$0xff]   ;;  %s7205_s28 = sshll.u32 %s10945_s20, 4  ;;  %s11091_s28 = int_to_ptr.vmem [resolvable:$true] %s7205_s28 }
  0x5a   : > { %223 = vst [vmem:[#allocation2 + $0x198] sm:$0xff] %v9225_v0  ;;  %224 = vst [vmem:[#allocation2 + $0x1a0] sm:$0xff] %v9225_v0  ;;  %8021 = vmatpush3.bf16.msra.mxu1 %v8909_v2  ;;  %7974 = vmatprep.subr.bf16.mxu0 %v8910_v3  ;;  %v8915_v8 = vld [vmem:[#allocation8 + $0x60] sm:$0xff]   ;;  %v8916_v9 = vld [vmem:[#allocation8 + $0x18] sm:$0xff]   ;;  %s7192_s4 = scalar_lea.sflag [#allocation7], %s9385_s5  ;;  %s9150_s21 = scalar_lea.vmem %s11091_s28, 4096 }
  0x5b   : > { %225 = vst [vmem:[#allocation2 + $0x1a8] sm:$0x3] %v9225_v0  ;;  %227 = vst [vmem:[#allocation2 + $0x18] sm:$0x1] %v9225_v0  ;;  %8022 = vmatprep.subr.bf16.mxu1 %v8911_v4  ;;  %v8917_v10 = vld [vmem:[#allocation8 + $0x58] sm:$0xff]   ;;  %v8918_v11 = vld [vmem:[#allocation8 + $0x10] sm:$0xff]   ;;  %p9151_p5 = scmp.ne.s32.totalorder %s11091_s28, %s9150_s21 }
  0x5c   : > { %228 = vst [vmem:[#allocation2 + $0x30] sm:$0x1] %v9225_v0  ;;  %229 = vst [vmem:[#allocation2 + $0x48] sm:$0x1] %v9225_v0  ;;  %v8919_v15 = vld [vmem:[#allocation8 + $0x50] sm:$0xff]   ;;  %v7462_v18 = vld [vmem:[%s9389_s9] sm:$0xff]  }
  0x5d   : > { %230 = vst [vmem:[#allocation2 + $0x60] sm:$0x1] %v9225_v0  ;;  %231 = vst [vmem:[#allocation2 + $0x78] sm:$0x1] %v9225_v0  ;;  %7975 = vmatpush3.bf16.msra.mxu0 %v8910_v3  ;;  %v7463_v19 = vunpack.c.l.bf16 %v7462_v18  ;;  %v7464_v20 = vunpack.c.h.bf16 %v7462_v18  ;;  %v7525_v21 = vld [vmem:[%s9389_s9 + $0x8] sm:$0xff]   ;;  %v7526_v24 = vld [vmem:[%s9389_s9 + $0x10] sm:$0xff]  }
  0x5e   : > { %232 = vst [vmem:[#allocation2 + $0x90] sm:$0x1] %v9225_v0  ;;  %233 = vst [vmem:[#allocation2 + $0xa8] sm:$0x1] %v9225_v0  ;;  %8023 = vmatpush3.bf16.msra.mxu1 %v8911_v4  ;;  %7976 = vmatprep.subr.bf16.mxu0 %v8912_v5  ;;  %v7467_v22 = vunpack.c.l.bf16 %v7525_v21  ;;  %v7468_v23 = vunpack.c.h.bf16 %v7525_v21  ;;  %v8920_v25 = vld [vmem:[#allocation8 + $0x8] sm:$0xff]   ;;  %v7471_v26 = vunpack.c.l.bf16 %v7526_v24  ;;  %v7472_v27 = vunpack.c.h.bf16 %v7526_v24  ;;  %v7527_v29 = vld [vmem:[%s9389_s9 + $0x18] sm:$0xff]  }
  0x5f   : > { %234 = vst [vmem:[#allocation2 + $0xc0] sm:$0x1] %v9225_v0  ;;  %235 = vst [vmem:[#allocation2 + $0xd8] sm:$0x1] %v9225_v0  ;;  %8024 = vmatprep.subr.bf16.mxu1 %v8913_v6  ;;  %v8921_v28 = vld [vmem:[#allocation8 + $0x48] sm:$0xff]   ;;  %v7528_v30 = vld [vmem:[%s9389_s9 + $0x20] sm:$0xff]   ;;  %v7475_v31 = vunpack.c.l.bf16 %v7527_v29  ;;  %v7476_v32 = vunpack.c.h.bf16 %v7527_v29 }
  0x60   : > { %236 = vst [vmem:[#allocation2 + $0xf0] sm:$0x1] %v9225_v0  ;;  %237 = vst [vmem:[#allocation2 + $0x108] sm:$0x1] %v9225_v0  ;;  %v707_v13 = vld [vmem:[#allocation2 + $0x1] sm:$0xff]  ;;  %v708_v14 = vld [vmem:[#allocation2 + $0x9] sm:$0xff]  ;;  %v7479_v33 = vunpack.c.l.bf16 %v7528_v30  ;;  %v7480_v34 = vunpack.c.h.bf16 %v7528_v30 }
  0x61   : > { %238 = vst [vmem:[#allocation2 + $0x120] sm:$0x1] %v9225_v0  ;;  %239 = vst [vmem:[#allocation2 + $0x138] sm:$0x1] %v9225_v0  ;;  %7977 = vmatpush3.bf16.msra.mxu0 %v8912_v5  ;;  %v739_v17 = vpack.c.bf16 %v708_v14, %v707_v13  ;;  %v7529_v35 = vld [vmem:[%s9389_s9 + $0x28] sm:$0xff]   ;;  %v8922_v36 = vld [vmem:[#allocation8] sm:$0xff]  }
  0x62   : > { %240 = vst [vmem:[#allocation2 + $0x150] sm:$0x1] %v9225_v0  ;;  %241 = vst [vmem:[#allocation2 + $0x168] sm:$0x1] %v9225_v0  ;;  %8025 = vmatpush3.bf16.msra.mxu1 %v8913_v6  ;;  %7978 = vmatprep.subr.bf16.mxu0 %v8914_v7  ;;  %v7483_v37 = vunpack.c.l.bf16 %v7529_v35  ;;  %v7484_v38 = vunpack.c.h.bf16 %v7529_v35  ;;  %v7530_v39 = vld [vmem:[%s9389_s9 + $0x30] sm:$0xff]   ;;  %v8923_v40 = vld [vmem:[#allocation8 + $0x40] sm:$0xff]  }
  0x63   : > { %242 = vst [vmem:[#allocation2 + $0x180] sm:$0x1] %v9225_v0  ;;  %245 = vst [vmem:[#allocation2 + $0x29] sm:$0x1] %v9225_v0  ;;  %8026 = vmatprep.subr.bf16.mxu1 %v8915_v8  ;;  %8036 = vmatprep.mubr.bf16.mxu1 %v739_v17  ;;  %v7487_v41 = vunpack.c.l.bf16 %v7530_v39  ;;  %v7488_v42 = vunpack.c.h.bf16 %v7530_v39  ;;  %v7531_v43 = vld [vmem:[%s9389_s9 + $0x38] sm:$0xff]   ;;  %v7532_v46 = vld [vmem:[%s9389_s9 + $0x40] sm:$0xff]  }
  0x64   : > { %246 = vst [vmem:[#allocation2 + $0x41] sm:$0x1] %v9225_v0  ;;  %247 = vst [vmem:[#allocation2 + $0x59] sm:$0x1] %v9225_v0  ;;  %v7491_v44 = vunpack.c.l.bf16 %v7531_v43  ;;  %v7492_v45 = vunpack.c.h.bf16 %v7531_v43  ;;  %v7495_v49 = vunpack.c.l.bf16 %v7532_v46  ;;  %v7496_v50 = vunpack.c.h.bf16 %v7532_v46  ;;  %v8925_v51 = vld [vmem:[#allocation8 + $0xb8] sm:$0xff]   ;;  %v9496_v56 = vld [vmem:[%s9389_s9] sm:$0xff] }
  0x65   : > { %248 = vst [vmem:[#allocation2 + $0x71] sm:$0x1] %v9225_v0  ;;  %249 = vst [vmem:[#allocation2 + $0x89] sm:$0x1] %v9225_v0  ;;  %7979 = vmatpush3.bf16.msra.mxu0 %v8914_v7  ;;  %v8938_v55 = vld [vmem:[#allocation8 + $0xf8] sm:$0xff]   ;;  %v9501_v58 = vld [vmem:[%s9389_s9 + $0x8] sm:$0xff] }
  0x66   : > { %250 = vst [vmem:[#allocation2 + $0xa1] sm:$0x1] %v9225_v0  ;;  %251 = vst [vmem:[#allocation2 + $0xb9] sm:$0x1] %v9225_v0  ;;  %8027 = vmatpush3.bf16.msra.mxu1 %v8915_v8  ;;  %7980 = vmatprep.subr.bf16.mxu0 %v8916_v9  ;;  %v8928_v59 = vld [vmem:[#allocation8 + $0xb0] sm:$0xff]   ;;  %v7533_v61 = vld [vmem:[%s9389_s9 + $0x48] sm:$0xff]  }
  0x67   : > { %252 = vst [vmem:[#allocation2 + $0xd1] sm:$0x1] %v9225_v0  ;;  %253 = vst [vmem:[#allocation2 + $0xe9] sm:$0x1] %v9225_v0  ;;  %8028 = vmatprep.subr.bf16.mxu1 %v8917_v10  ;;  %v8939_v60 = vld [vmem:[#allocation8 + $0xf0] sm:$0xff]   ;;  %v7499_v1 = vunpack.c.l.bf16 %v7533_v61  ;;  %v7500_v2 = vunpack.c.h.bf16 %v7533_v61  ;;  %v8934_v13 = vld [vmem:[#allocation8 + $0xa0] sm:$0xff]  }
  0x68   : > { %254 = vst [vmem:[#allocation2 + $0x101] sm:$0x1] %v9225_v0  ;;  %255 = vst [vmem:[#allocation2 + $0x119] sm:$0x1] %v9225_v0  ;;  %v7534_v5 = vld [vmem:[%s9389_s9 + $0x50] sm:$0xff]   ;;  %v7535_v14 = vld [vmem:[%s9389_s9 + $0x58] sm:$0xff]  }
  0x69   : > { %256 = vst [vmem:[#allocation2 + $0x131] sm:$0x1] %v9225_v0  ;;  %257 = vst [vmem:[#allocation2 + $0x149] sm:$0x1] %v9225_v0  ;;  %7981 = vmatpush3.bf16.msra.mxu0 %v8916_v9  ;;  %v7503_v6 = vunpack.c.l.bf16 %v7534_v5  ;;  %v7504_v7 = vunpack.c.h.bf16 %v7534_v5  ;;  %v9512_v9 = vld [vmem:[%s9389_s9 + $0x10] sm:$0xff]  ;;  %v7508_v17 = vunpack.c.h.bf16 %v7535_v14  ;;  %v7536_v18 = vld [vmem:[%s9389_s9 + $0x60] sm:$0xff]  }
  0x6a   : > { %258 = vst [vmem:[#allocation2 + $0x161] sm:$0x1] %v9225_v0  ;;  %259 = vst [vmem:[#allocation2 + $0x179] sm:$0x1] %v9225_v0  ;;  %8029 = vmatpush3.bf16.msra.mxu1 %v8917_v10  ;;  %7982 = vmatprep.subr.bf16.mxu0 %v8918_v11  ;;  %v7512_v21 = vunpack.c.h.bf16 %v7536_v18  ;;  %v8947_v43 = vld [vmem:[#allocation8 + $0x88] sm:$0xff]   ;;  %v9544_v46 = vld [vmem:[%s9389_s9 + $0x30] sm:$0xff] }
  0x6b   : > { %260 = vst [vmem:[#allocation2 + $0x191] sm:$0x1] %v9225_v0  ;;  %262 = vst [vmem:[#allocation3] sm:$0xff] %v9225_v0  ;;  %8030 = vmatprep.subr.bf16.mxu1 %v8919_v15  ;;  %v9560_v61 = vld [vmem:[%s9389_s9 + $0x40] sm:$0xff]  ;;  %p11431_p2 = scmp.ne.s32.totalorder %s11149_s10, 0  ;;  %s9226_s16 = smov [#allocation11]  }
  0x6c   : > { %263 = vst [vmem:[#allocation3 + $0x8] sm:$0xff] %v9225_v0  ;;  %264 = vst [vmem:[#allocation3 + $0x10] sm:$0x3] %v9225_v0  ;;  %s9154_s22 = sshll.u32 %s9226_s16, 4  ;;  %s9155_s22 = int_to_ptr.vmem [resolvable:$false] %s9154_s22 }
  0x6d   : > { %266 = vst [vmem:[#allocation3 + $0x198] sm:$0xff] %v9225_v0  ;;  %267 = vst [vmem:[#allocation3 + $0x1a0] sm:$0xff] %v9225_v0  ;;  %7983 = vmatpush3.bf16.msra.mxu0 %v8918_v11  ;;  %v8943_v11 = vld [vmem:[#allocation8 + $0xe8] sm:$0xff]   ;;  %p9152_p7 = pnand %p9151_p5, %p11431_p2  ;;  %s9156_s17 = scalar_lea.vmem %s9155_s22, 8192 }
  0x6e   : > { %268 = vst [vmem:[#allocation3 + $0x1a8] sm:$0x3] %v9225_v0  ;;  %270 = vst [vmem:[#allocation3 + $0x18] sm:$0x1] %v9225_v0  ;;  %8031 = vmatpush3.bf16.msra.mxu1 %v8919_v15  ;;  %7984 = vmatprep.subr.bf16.mxu0 %v8920_v25  ;;  %p9157_p13 = scmp.lt.s32.totalorder %s11091_s28, %s9155_s22  ;;  %p9158_p0 = scmp.lt.s32.totalorder %s9156_s17, %s9150_s21 }
  0x6f   : > { %271 = vst [vmem:[#allocation3 + $0x30] sm:$0x1] %v9225_v0  ;;  %272 = vst [vmem:[#allocation3 + $0x48] sm:$0x1] %v9225_v0  ;;  %8032 = vmatprep.subr.bf16.mxu1 %v8921_v28  ;;  %p9153_p12 = pneg %p9152_p7 }
  0x70   : > { %273 = vst [vmem:[#allocation3 + $0x60] sm:$0x1] %v9225_v0  ;;  %274 = vst [vmem:[#allocation3 + $0x78] sm:$0x1] %v9225_v0  ;;  %p9159_p10 = por %p9158_p0, %p9157_p13 }
  0x71   : > { %275 = vst [vmem:[#allocation3 + $0x90] sm:$0x1] %v9225_v0  ;;  %276 = vst [vmem:[#allocation3 + $0xa8] sm:$0x1] %v9225_v0  ;;  %7985 = vmatpush3.bf16.msra.mxu0 %v8920_v25  ;;  %v8937_v25 = vld [vmem:[#allocation8 + $0x98] sm:$0xff]  }
  0x72   : > { %277 = vst [vmem:[#allocation3 + $0xc0] sm:$0x1] %v9225_v0  ;;  %278 = vst [vmem:[#allocation3 + $0xd8] sm:$0x1] %v9225_v0  ;;  %8033 = vmatpush3.bf16.msra.mxu1 %v8921_v28  ;;  %7986 = vmatprep.subr.bf16.mxu0 %v8922_v36  ;;  %v8948_v28 = vld [vmem:[#allocation8 + $0xd8] sm:$0xff]   ;;  %p9160_p3 = pnand %p9159_p10, %p9153_p12 }
  0x73   : > { %279 = vst [vmem:[#allocation3 + $0xf0] sm:$0x1] %v9225_v0  ;;  %280 = vst [vmem:[#allocation3 + $0x108] sm:$0x1] %v9225_v0  ;;  %8034 = vmatprep.subr.bf16.mxu1 %v8923_v40 }
  0x74   : > { %281 = vst [vmem:[#allocation3 + $0x120] sm:$0x1] %v9225_v0  ;;  %282 = vst [vmem:[#allocation3 + $0x138] sm:$0x1] %v9225_v0 }
  0x75   : > { %283 = vst [vmem:[#allocation3 + $0x150] sm:$0x1] %v9225_v0  ;;  %284 = vst [vmem:[#allocation3 + $0x168] sm:$0x1] %v9225_v0  ;;  %7987 = vmatpush3.bf16.msra.mxu0 %v8922_v36  ;;  %v9535_v36 = vld [vmem:[%s9389_s9 + $0x28] sm:$0xff] }
  0x76   : > { %285 = vst [vmem:[#allocation3 + $0x180] sm:$0x1] %v9225_v0  ;;  %288 = vst [vmem:[#allocation3 + $0x29] sm:$0x1] %v9225_v0  ;;  %8035 = vmatpush3.bf16.msra.mxu1 %v8923_v40  ;;  %8068 = vmatprep.subr.bf16.mxu0 %v8925_v51 }
  0x77   : > { %289 = vst [vmem:[#allocation3 + $0x41] sm:$0x1] %v9225_v0  ;;  %290 = vst [vmem:[#allocation3 + $0x59] sm:$0x1] %v9225_v0  ;;  %8116 = vmatprep.subr.bf16.mxu1 %v8938_v55 }
  0x78   : > { %291 = vst [vmem:[#allocation3 + $0x71] sm:$0x1] %v9225_v0  ;;  %292 = vst [vmem:[#allocation3 + $0x89] sm:$0x1] %v9225_v0 }
  0x79   : > { %293 = vst [vmem:[#allocation3 + $0xa1] sm:$0x1] %v9225_v0  ;;  %294 = vst [vmem:[#allocation3 + $0xb9] sm:$0x1] %v9225_v0  ;;  %8037 = vmatmul.mubr.bf16.vlgmr.msra.gmra.mxu1 %v9496_v56 }
  0x7a   : > { %295 = vst [vmem:[#allocation3 + $0xd1] sm:$0x1] %v9225_v0  ;;  %296 = vst [vmem:[#allocation3 + $0xe9] sm:$0x1] %v9225_v0  ;;  %8040 = vmatprep.mubr.bf16.mxu1 %v9501_v58  ;;  %8117 = vmatpush3.bf16.msra.mxu1 %v8938_v55 }
  0x7b   : > { %297 = vst [vmem:[#allocation3 + $0x101] sm:$0x1] %v9225_v0  ;;  %298 = vst [vmem:[#allocation3 + $0x119] sm:$0x1] %v9225_v0  ;;  %8118 = vmatprep.subr.bf16.mxu1 %v8939_v60 }
  0x7c   : > { %299 = vst [vmem:[#allocation3 + $0x131] sm:$0x1] %v9225_v0  ;;  %300 = vst [vmem:[#allocation3 + $0x149] sm:$0x1] %v9225_v0 }
  0x7d   : > { %301 = vst [vmem:[#allocation3 + $0x161] sm:$0x1] %v9225_v0  ;;  %302 = vst [vmem:[#allocation3 + $0x179] sm:$0x1] %v9225_v0 }
  0x7e   : > { %303 = vst [vmem:[#allocation3 + $0x191] sm:$0x1] %v9225_v0  ;;  %226 = vst [vmem:[#allocation2] sm:$0x1] %v9225_v0  ;;  %8119 = vmatpush3.bf16.msra.mxu1 %v8939_v60 }
  0x7f   : > { %244 = vst [vmem:[#allocation2 + $0x11] sm:$0x1] %v9225_v0  ;;  %243 = vst [vmem:[#allocation2 + $0x198] sm:$0x1] %v9225_v0  ;;  %8120 = vmatprep.subr.bf16.mxu1 %v8943_v11 }
  0x80   : > { %261 = vst [vmem:[#allocation2 + $0x1a9] sm:$0x1] %v9225_v0  ;;  %269 = vst [vmem:[#allocation3] sm:$0x1] %v9225_v0 }
  0x81   : > { %286 = vst [vmem:[#allocation3 + $0x198] sm:$0x1] %v9225_v0  ;;  %287 = vst [vmem:[#allocation3 + $0x11] sm:$0x1] %v9225_v0  ;;  %8041 = vmatmul.mubr.bf16.gmra.mxu1 %v9512_v9 }
  0x82   : > { %304 = vst [vmem:[#allocation3 + $0x1a9] sm:$0x1] %v9225_v0  ;;  %370 = vst [vmem:[#allocation2 + $0x19] sm:$0xff] %v7463_v19  ;;  %v8944_v19 = vld [vmem:[#allocation8 + $0xe0] sm:$0xff]   ;;  %8121 = vmatpush3.bf16.msra.mxu1 %v8943_v11  ;;  %v9583_v11 = vld [vmem:[%s9389_s9 + $0x58] sm:$0xff] }
  0x83   : > { %371 = vst [vmem:[#allocation2 + $0x21] sm:$0xff] %v7464_v20  ;;  %372 = vst [vmem:[#allocation2 + $0x31] sm:$0xff] %v7467_v22  ;;  %v7511_v20 = vunpack.c.l.bf16 %v7536_v18  ;;  %8122 = vmatprep.subr.bf16.mxu1 %v8944_v19 }
  0x84   : > { %373 = vst [vmem:[#allocation2 + $0x39] sm:$0xff] %v7468_v23  ;;  %374 = vst [vmem:[#allocation2 + $0x49] sm:$0xff] %v7471_v26  ;;  %v7537_v26 = vld [vmem:[%s9389_s9 + $0x68] sm:$0xff]  }
  0x85   : > { %v402_v12 = vld [vmem:[#allocation2] sm:$0xff]  ;;  %375 = vst [vmem:[#allocation2 + $0x51] sm:$0xff] %v7472_v27  ;;  %376 = vst [vmem:[#allocation2 + $0x61] sm:$0xff] %v7475_v31  ;;  %v7515_v29 = vunpack.c.l.bf16 %v7537_v26  ;;  %v7516_v30 = vunpack.c.h.bf16 %v7537_v26  ;;  %v7538_v31 = vld [vmem:[%s9389_s9 + $0x70] sm:$0xff]  }
  0x86   : > { %v434_v16 = vpack.c.bf16 %v9225_v0, %v402_v12  ;;  %377 = vst [vmem:[#allocation2 + $0x69] sm:$0xff] %v7476_v32  ;;  %378 = vst [vmem:[#allocation2 + $0x79] sm:$0xff] %v7479_v33  ;;  %v8931_v0 = vld [vmem:[#allocation8 + $0xa8] sm:$0xff]   ;;  %v9517_v12 = vld [vmem:[%s9389_s9 + $0x18] sm:$0xff]  ;;  %v7520_v35 = vunpack.c.h.bf16 %v7538_v31  ;;  %8123 = vmatpush3.bf16.msra.mxu1 %v8944_v19 }
  0x87   : > { %379 = vst [vmem:[#allocation2 + $0x81] sm:$0xff] %v7480_v34  ;;  %380 = vst [vmem:[#allocation2 + $0x91] sm:$0xff] %v7483_v37  ;;  %8044 = vmatprep.mubr.bf16.mxu1 %v9517_v12  ;;  %v9530_v32 = vld [vmem:[%s9389_s9 + $0x20] sm:$0xff]  ;;  %v7519_v34 = vunpack.c.l.bf16 %v7538_v31  ;;  %v8942_v37 = vld [vmem:[#allocation8 + $0x90] sm:$0xff]   ;;  %8124 = vmatprep.subr.bf16.mxu1 %v8948_v28 }
  0x88   : > { %7988 = vmatprep.mubr.bf16.mxu0 %v434_v16  ;;  %381 = vst [vmem:[#allocation2 + $0x99] sm:$0xff] %v7484_v38  ;;  %382 = vst [vmem:[#allocation2 + $0xa9] sm:$0xff] %v7487_v41  ;;  %v7507_v16 = vunpack.c.l.bf16 %v7535_v14  ;;  %v8949_v38 = vld [vmem:[#allocation8 + $0xd0] sm:$0xff]  }
  0x89   : > { %v404_v47 = vld [vmem:[#allocation2 + $0x18] sm:$0xff]  ;;  %383 = vst [vmem:[#allocation2 + $0xb1] sm:$0xff] %v7488_v42  ;;  %384 = vst [vmem:[#allocation2 + $0xc1] sm:$0xff] %v7491_v44  ;;  %8045 = vmatmul.mubr.bf16.gmra.mxu1 %v9530_v32 }
  0x8a   : > { %v405_v48 = vld [vmem:[#allocation2 + $0x20] sm:$0xff]  ;;  %385 = vst [vmem:[#allocation2 + $0xc9] sm:$0xff] %v7492_v45  ;;  %v406_v52 = vld [vmem:[#allocation2 + $0x30] sm:$0xff]  ;;  %386 = vst [vmem:[#allocation2 + $0xd9] sm:$0xff] %v7495_v49  ;;  %8048 = vmatprep.mubr.bf16.mxu1 %v9535_v36  ;;  %8125 = vmatpush3.bf16.msra.mxu1 %v8948_v28 }
  0x8b   : > { %v407_v53 = vld [vmem:[#allocation2 + $0x38] sm:$0xff]  ;;  %387 = vst [vmem:[#allocation2 + $0xe1] sm:$0xff] %v7496_v50  ;;  %v9493_v54 = vpack.c.bf16 %v405_v48, %v404_v47  ;;  %v408_v62 = vld [vmem:[#allocation2 + $0x48] sm:$0xff]  ;;  %388 = vst [vmem:[#allocation2 + $0xf1] sm:$0xff] %v7499_v1  ;;  %8126 = vmatprep.subr.bf16.mxu1 %v8949_v38 }
  0x8c   : > { %v9498_v57 = vpack.c.bf16 %v407_v53, %v406_v52  ;;  %v409_v63 = vld [vmem:[#allocation2 + $0x50] sm:$0xff]  ;;  %v410_v3 = vld [vmem:[#allocation2 + $0x60] sm:$0xff]  ;;  %389 = vst [vmem:[#allocation2 + $0xf9] sm:$0xff] %v7500_v2  ;;  %390 = vst [vmem:[#allocation2 + $0x109] sm:$0xff] %v7503_v6 }
  0x8d   : > { %7989 = vmatmul.mubr.bf16.vlgmr.msra.gmra.mxu0 %v9493_v54  ;;  %v411_v4 = vld [vmem:[#allocation2 + $0x68] sm:$0xff]  ;;  %v9509_v8 = vpack.c.bf16 %v409_v63, %v408_v62  ;;  %391 = vst [vmem:[#allocation2 + $0x111] sm:$0xff] %v7504_v7  ;;  %v412_v15 = vld [vmem:[#allocation2 + $0x78] sm:$0xff]  ;;  %392 = vst [vmem:[#allocation2 + $0x121] sm:$0xff] %v7507_v16 }
  0x8e   : > { %8069 = vmatpush3.bf16.msra.mxu0 %v8925_v51  ;;  %7992 = vmatprep.mubr.bf16.mxu0 %v9498_v57  ;;  %v9514_v10 = vpack.c.bf16 %v411_v4, %v410_v3  ;;  %v413_v22 = vld [vmem:[#allocation2 + $0x80] sm:$0xff]  ;;  %393 = vst [vmem:[#allocation2 + $0x129] sm:$0xff] %v7508_v17  ;;  %v414_v23 = vld [vmem:[#allocation2 + $0x90] sm:$0xff]  ;;  %394 = vst [vmem:[#allocation2 + $0x139] sm:$0xff] %v7511_v20 }
  0x8f   : > { %8070 = vmatprep.subr.bf16.mxu0 %v8928_v59  ;;  %v415_v24 = vld [vmem:[#allocation2 + $0x98] sm:$0xff]  ;;  %395 = vst [vmem:[#allocation2 + $0x141] sm:$0xff] %v7512_v21  ;;  %v9526_v27 = vpack.c.bf16 %v413_v22, %v412_v15  ;;  %396 = vst [vmem:[#allocation2 + $0x151] sm:$0xff] %v7515_v29  ;;  %v416_v39 = vld [vmem:[#allocation2 + $0xa8] sm:$0xff]  ;;  %8127 = vmatpush3.bf16.msra.mxu1 %v8949_v38 }
  0x90   : > { %v9532_v33 = vpack.c.bf16 %v415_v24, %v414_v23  ;;  %397 = vst [vmem:[#allocation2 + $0x159] sm:$0xff] %v7516_v30  ;;  %398 = vst [vmem:[#allocation2 + $0x169] sm:$0xff] %v7519_v34  ;;  %v417_v40 = vld [vmem:[#allocation2 + $0xb0] sm:$0xff]  ;;  %v418_v41 = vld [vmem:[#allocation2 + $0xc0] sm:$0xff] }
  0x91   : > { %399 = vst [vmem:[#allocation2 + $0x171] sm:$0xff] %v7520_v35  ;;  %v419_v42 = vld [vmem:[#allocation2 + $0xc8] sm:$0xff]  ;;  %v9541_v44 = vpack.c.bf16 %v417_v40, %v416_v39  ;;  %v9549_v48 = vld [vmem:[%s9389_s9 + $0x38] sm:$0xff]  ;;  %v8952_v49 = vld [vmem:[#allocation8 + $0x80] sm:$0xff]   ;;  %8049 = vmatmul.mubr.bf16.gmra.mxu1 %v9544_v46 }
  0x92   : > { %8071 = vmatpush3.bf16.msra.mxu0 %v8928_v59  ;;  %v8953_v45 = vld [vmem:[#allocation8 + $0xc8] sm:$0xff]   ;;  %v9546_v47 = vpack.c.bf16 %v419_v42, %v418_v41  ;;  %v420_v50 = vld [vmem:[#allocation2 + $0xd8] sm:$0xff]  ;;  %v8954_v51 = vld [vmem:[#allocation8 + $0xc0] sm:$0xff]   ;;  %8052 = vmatprep.mubr.bf16.mxu1 %v9549_v48 }
  0x93   : > { %8072 = vmatprep.subr.bf16.mxu0 %v8931_v0  ;;  %8128 = vmatprep.subr.bf16.mxu1 %v8953_v45  ;;  %v421_v52 = vld [vmem:[#allocation2 + $0xe0] sm:$0xff]  ;;  %v422_v53 = vld [vmem:[#allocation2 + $0xf0] sm:$0xff]  ;;  %v423_v55 = vld [vmem:[#allocation2 + $0xf8] sm:$0xff] }
  0x94   : > { %8129 = vmatpush3.bf16.msra.mxu1 %v8953_v45  ;;  %v9555_v59 = vld [vmem:[#allocation8 + $0x138] sm:$0xff]   ;;  %v9557_v60 = vpack.c.bf16 %v421_v52, %v420_v50  ;;  %v9562_v62 = vpack.c.bf16 %v423_v55, %v422_v53  ;;  %v9565_v63 = vld [vmem:[%s9389_s9 + $0x48] sm:$0xff]  ;;  %v425_v2 = vld [vmem:[#allocation2 + $0x110] sm:$0xff] }
  0x95   : > { %7993 = vmatmul.mubr.bf16.gmra.mxu0 %v9509_v8  ;;  %8130 = vmatprep.subr.bf16.mxu1 %v8954_v51  ;;  %v424_v1 = vld [vmem:[#allocation2 + $0x108] sm:$0xff]  ;;  %v426_v3 = vld [vmem:[#allocation2 + $0x120] sm:$0xff]  ;;  %v9578_v6 = vld [vmem:[%s9389_s9 + $0x50] sm:$0xff] }
  0x96   : > { %7996 = vmatprep.mubr.bf16.mxu0 %v9514_v10  ;;  %8073 = vmatpush3.bf16.msra.mxu0 %v8931_v0  ;;  %v9568_v0 = vld [vmem:[#allocation8 + $0x178] sm:$0xff]   ;;  %v427_v4 = vld [vmem:[#allocation2 + $0x128] sm:$0xff]  ;;  %v9575_v5 = vpack.c.bf16 %v425_v2, %v424_v1  ;;  %v429_v14 = vld [vmem:[#allocation2 + $0x140] sm:$0xff] }
  0x97   : > { %8074 = vmatprep.subr.bf16.mxu0 %v8934_v13  ;;  %v9580_v7 = vpack.c.bf16 %v427_v4, %v426_v3  ;;  %v430_v15 = vld [vmem:[#allocation2 + $0x150] sm:$0xff]  ;;  %v431_v16 = vld [vmem:[#allocation2 + $0x158] sm:$0xff]  ;;  %v9593_v21 = vld [vmem:[%s9389_s9 + $0x60] sm:$0xff] }
  0x98   : > { %8131 = vmatpush3.bf16.msra.mxu1 %v8954_v51  ;;  %v7539_v17 = vld [vmem:[%s9389_s9 + $0x78] sm:$0xff]   ;;  %v9595_v22 = vpack.c.bf16 %v431_v16, %v430_v15  ;;  %v9598_v23 = vld [vmem:[%s9389_s9 + $0x68] sm:$0xff]  ;;  %v433_v26 = vld [vmem:[#allocation2 + $0x170] sm:$0xff] }
  0x99   : > { %8053 = vmatmul.mubr.bf16.gmra.mxu1 %v9560_v61  ;;  %8212 = vmatprep.subr.bf16.mxu1 %v9568_v0  ;;  %v7523_v19 = vunpack.c.l.bf16 %v7539_v17  ;;  %v7524_v20 = vunpack.c.h.bf16 %v7539_v17  ;;  %v432_v24 = vld [vmem:[#allocation2 + $0x168] sm:$0xff]  ;;  %v9607_v30 = vld [vmem:[%s9389_s9 + $0x70] sm:$0xff]  ;;  %v1079_v34 = vld [vmem:[#allocation2 + $0x1a] sm:$0xff] }
  0x9a   : > { %8075 = vmatpush3.bf16.msra.mxu0 %v8934_v13  ;;  %8056 = vmatprep.mubr.bf16.mxu1 %v9565_v63  ;;  %v428_v13 = vld [vmem:[#allocation2 + $0x138] sm:$0xff]  ;;  %v1078_v28 = vld [vmem:[#allocation2 + $0xa] sm:$0xff]  ;;  %v9604_v29 = vpack.c.bf16 %v433_v26, %v432_v24  ;;  %v1080_v35 = vld [vmem:[#allocation2 + $0x22] sm:$0xff] }
  0x9b   : > { %8076 = vmatprep.subr.bf16.mxu0 %v8937_v25  ;;  %v9590_v18 = vpack.c.bf16 %v429_v14, %v428_v13  ;;  %400 = vst [vmem:[#allocation2 + $0x181] sm:$0xff] %v7523_v19  ;;  %401 = vst [vmem:[#allocation2 + $0x189] sm:$0xff] %v7524_v20  ;;  %v1082_v38 = vld [vmem:[#allocation2 + $0x3a] sm:$0xff]  ;;  %v9612_v39 = vpack.c.bf16 %v1080_v35, %v1079_v34  ;;  %v8956_v41 = vld [vmem:[#allocation8 + $0x130] sm:$0xff]  }
  0x9c   : > { %v1083_v42 = vld [vmem:[#allocation2 + $0x4a] sm:$0xff]  ;;  %v1084_v45 = vld [vmem:[#allocation2 + $0x52] sm:$0xff]  ;;  %v1088_v55 = vld [vmem:[#allocation2 + $0x82] sm:$0xff] }
  0x9d   : > { %7997 = vmatmul.mubr.bf16.gmra.mxu0 %v9526_v27  ;;  %v8957_v50 = vld [vmem:[#allocation8 + $0x128] sm:$0xff]   ;;  %v9622_v52 = vpack.c.bf16 %v1084_v45, %v1083_v42  ;;  %v1089_v1 = vld [vmem:[#allocation2 + $0x92] sm:$0xff]  ;;  %v1090_v2 = vld [vmem:[#allocation2 + $0x9a] sm:$0xff] }
  0x9e   : > { %8000 = vmatprep.mubr.bf16.mxu0 %v9532_v33  ;;  %8077 = vmatpush3.bf16.msra.mxu0 %v8937_v25  ;;  %v1077_v25 = vld [vmem:[#allocation2 + $0x2] sm:$0xff]  ;;  %v8966_v3 = vld [vmem:[#allocation8 + $0x158] sm:$0xff]   ;;  %v9632_v13 = vpack.c.bf16 %v1090_v2, %v1089_v1  ;;  %v1091_v14 = vld [vmem:[#allocation2 + $0xaa] sm:$0xff] }
  0x9f   : > { %8078 = vmatprep.subr.bf16.mxu0 %v8942_v37  ;;  %v1109_v31 = vpack.c.bf16 %v1078_v28, %v1077_v25  ;;  %v8963_v51 = vld [vmem:[#allocation8 + $0x168] sm:$0xff]   ;;  %v1092_v15 = vld [vmem:[#allocation2 + $0xb2] sm:$0xff]  ;;  %v1095_v26 = vld [vmem:[#allocation2 + $0xda] sm:$0xff] }
  0xa0   : > { %v8962_v16 = vld [vmem:[#allocation8 + $0x110] sm:$0xff]   ;;  %v8965_v19 = vld [vmem:[#allocation8 + $0x108] sm:$0xff]   ;;  %v9638_v24 = vpack.c.bf16 %v1092_v15, %v1091_v14  ;;  %v1098_v34 = vld [vmem:[#allocation2 + $0xfa] sm:$0xff] }
  0xa1   : > { %8057 = vmatmul.mubr.bf16.gmra.mxu1 %v9578_v6  ;;  %v1094_v17 = vld [vmem:[#allocation2 + $0xca] sm:$0xff]  ;;  %v1096_v28 = vld [vmem:[#allocation2 + $0xe2] sm:$0xff]  ;;  %v8971_v35 = vld [vmem:[#allocation8 + $0x1b8] sm:$0xff]  }
  0xa2   : > { %8079 = vmatpush3.bf16.msra.mxu0 %v8942_v37  ;;  %8060 = vmatprep.mubr.bf16.mxu1 %v9583_v11  ;;  %v1081_v37 = vld [vmem:[#allocation2 + $0x32] sm:$0xff]  ;;  %v8969_v20 = vld [vmem:[#allocation8 + $0x148] sm:$0xff]   ;;  %v1477_v1 = vld [vmem:[#allocation2 + $0x180] sm:$0xff] }
  0xa3   : > { %8080 = vmatprep.subr.bf16.mxu0 %v8947_v43  ;;  %v9614_v40 = vpack.c.bf16 %v1082_v38, %v1081_v37  ;;  %v8976_v37 = vld [vmem:[#allocation8 + $0x1f8] sm:$0xff]   ;;  %v9646_v38 = vpack.c.bf16 %v1096_v28, %v1095_v26  ;;  %v1099_v42 = vld [vmem:[#allocation2 + $0x10a] sm:$0xff] }
  0xa4   : > { %v2930_v15 = vld [vmem:[#allocation2 + $0x49] sm:$0xff] }
  0xa5   : > { %8001 = vmatmul.mubr.bf16.gmra.mxu0 %v9541_v44  ;;  %v8989_v26 = vld [vmem:[#allocation8 + $0x230] sm:$0xff]  }
  0xa6   : > { %8004 = vmatprep.mubr.bf16.mxu0 %v9546_v47  ;;  %8081 = vmatpush3.bf16.msra.mxu0 %v8947_v43  ;;  %v8961_v43 = vld [vmem:[#allocation8 + $0x170] sm:$0xff]  }
  0xa7   : > { %8082 = vmatprep.subr.bf16.mxu0 %v8952_v49 }
  0xa9   : > { %8061 = vmatmul.mubr.bf16.gmra.mxu1 %v9593_v21 }
  0xaa   : > { %8083 = vmatpush3.bf16.msra.mxu0 %v8952_v49  ;;  %8064 = vmatprep.mubr.bf16.mxu1 %v9598_v23  ;;  %v1086_v49 = vld [vmem:[#allocation2 + $0x6a] sm:$0xff] }
  0xab   : > { %8164 = vmatprep.subr.bf16.mxu0 %v9555_v59 }
  0xad   : > { %8005 = vmatmul.mubr.bf16.gmra.mxu0 %v9557_v60 }
  0xae   : > { %8008 = vmatprep.mubr.bf16.mxu0 %v9562_v62 }
  0xb1   : > { %8065 = vmatmul.mubr.bf16.gmra.mxu1 %v9607_v30 }
  0xb2   : > { %8132 = vmatprep.mubr.bf16.mxu1 %v9493_v54  ;;  %v1085_v54 = vld [vmem:[#allocation2 + $0x62] sm:$0xff] }
  0xb3   : > { %v9624_v53 = vpack.c.bf16 %v1086_v49, %v1085_v54  ;;  %v1103_v49 = vld [vmem:[#allocation2 + $0x13a] sm:$0xff] }
  0xb5   : > { %8009 = vmatmul.mubr.bf16.gmra.mxu0 %v9575_v5 }
  0xb6   : > { %8012 = vmatprep.mubr.bf16.mxu0 %v9580_v7 }
  0xb9   : > { %8133 = vmatmul.mubr.bf16.vlgmr.msra.gmra.mxu1 %v9498_v57  ;;  %v1087_v57 = vld [vmem:[#allocation2 + $0x7a] sm:$0xff] }
  0xba   : > { %8136 = vmatprep.mubr.bf16.mxu1 %v9509_v8  ;;  %8213 = vmatpush3.bf16.msra.mxu1 %v9568_v0  ;;  %v8964_v8 = vld [vmem:[#allocation8 + $0x160] sm:$0xff]   ;;  %v8959_v0 = vld [vmem:[#allocation8 + $0x118] sm:$0xff]   ;;  %v9630_v4 = vpack.c.bf16 %v1088_v55, %v1087_v57  ;;  %v1107_v55 = vld [vmem:[#allocation2 + $0x16a] sm:$0xff] }
  0xbb   : > { %8214 = vmatprep.subr.bf16.mxu1 %v8961_v43 }
  0xbd   : > { %8013 = vmatmul.mubr.bf16.gmra.mxu0 %v9590_v18 }
  0xbe   : > { %8016 = vmatprep.mubr.bf16.mxu0 %v9595_v22  ;;  %8215 = vmatpush3.bf16.msra.mxu1 %v8961_v43  ;;  %v1101_v43 = vld [vmem:[#allocation2 + $0x122] sm:$0xff] }
  0xbf   : > { %8216 = vmatprep.subr.bf16.mxu1 %v8963_v51 }
  0xc1   : > { %8137 = vmatmul.mubr.bf16.gmra.mxu1 %v9514_v10  ;;  %v1093_v10 = vld [vmem:[#allocation2 + $0xc2] sm:$0xff] }
  0xc2   : > { %8140 = vmatprep.mubr.bf16.mxu1 %v9526_v27  ;;  %8217 = vmatpush3.bf16.msra.mxu1 %v8963_v51  ;;  %v8967_v27 = vld [vmem:[#allocation8 + $0x150] sm:$0xff]   ;;  %v9640_v25 = vpack.c.bf16 %v1094_v17, %v1093_v10  ;;  %v2562_v10 = vld [vmem:[#allocation2 + $0x60] sm:$0xff]  ;;  %v2563_v17 = vld [vmem:[#allocation2 + $0x68] sm:$0xff] }
  0xc3   : > { %8218 = vmatprep.subr.bf16.mxu1 %v8964_v8  ;;  %v1105_v51 = vld [vmem:[#allocation2 + $0x152] sm:$0xff] }
  0xc5   : > { %8017 = vmatmul.mubr.bf16.gmra.mxu0 %v9604_v29 }
  0xc6   : > { %8084 = vmatprep.mubr.bf16.mxu0 %v1109_v31  ;;  %8219 = vmatpush3.bf16.msra.mxu1 %v8964_v8  ;;  %v1097_v31 = vld [vmem:[#allocation2 + $0xf2] sm:$0xff] }
  0xc7   : > { %8220 = vmatprep.subr.bf16.mxu1 %v8966_v3  ;;  %v8972_v8 = vld [vmem:[#allocation8 + $0x1b0] sm:$0xff]  }
  0xc9   : > { %8141 = vmatmul.mubr.bf16.gmra.mxu1 %v9532_v33  ;;  %v8968_v33 = vld [vmem:[#allocation8 + $0x100] sm:$0xff]  }
  0xca   : > { %8144 = vmatprep.mubr.bf16.mxu1 %v9541_v44  ;;  %8221 = vmatpush3.bf16.msra.mxu1 %v8966_v3  ;;  %v8970_v44 = vld [vmem:[#allocation8 + $0x140] sm:$0xff]   ;;  %v2928_v3 = vld [vmem:[#allocation2 + $0x31] sm:$0xff] }
  0xcb   : > { %8222 = vmatprep.subr.bf16.mxu1 %v8967_v27 }
  0xcd   : > { %8085 = vmatmul.mubr.bf16.vlgmr.msra.gmra.mxu0 %v9612_v39 }
  0xce   : > { %8165 = vmatpush3.bf16.msra.mxu0 %v9555_v59  ;;  %8088 = vmatprep.mubr.bf16.mxu0 %v9614_v40  ;;  %v8958_v59 = vld [vmem:[#allocation8 + $0x120] sm:$0xff]  }
  0xcf   : > { %8166 = vmatprep.subr.bf16.mxu0 %v8956_v41  ;;  %8223 = vmatpush3.bf16.msra.mxu1 %v8967_v27 }
  0xd0   : > { %8224 = vmatprep.subr.bf16.mxu1 %v8969_v20 }
  0xd1   : > { %8145 = vmatmul.mubr.bf16.gmra.mxu1 %v9546_v47  ;;  %v1100_v47 = vld [vmem:[#allocation2 + $0x112] sm:$0xff] }
  0xd2   : > { %8167 = vmatpush3.bf16.msra.mxu0 %v8956_v41  ;;  %8148 = vmatprep.mubr.bf16.mxu1 %v9557_v60  ;;  %v9648_v41 = vpack.c.bf16 %v1098_v34, %v1097_v31  ;;  %v1102_v60 = vld [vmem:[#allocation2 + $0x12a] sm:$0xff]  ;;  %v9654_v45 = vpack.c.bf16 %v1100_v47, %v1099_v42  ;;  %v2564_v31 = vld [vmem:[#allocation2 + $0x78] sm:$0xff] }
  0xd3   : > { %8168 = vmatprep.subr.bf16.mxu0 %v8957_v50  ;;  %8225 = vmatpush3.bf16.msra.mxu1 %v8969_v20  ;;  %v9656_v54 = vpack.c.bf16 %v1102_v60, %v1101_v43  ;;  %v2933_v20 = vld [vmem:[#allocation2 + $0x69] sm:$0xff]  ;;  %v2567_v47 = vld [vmem:[#allocation2 + $0x98] sm:$0xff] }
  0xd4   : > { %8226 = vmatprep.subr.bf16.mxu1 %v8970_v44  ;;  %v2566_v42 = vld [vmem:[#allocation2 + $0x90] sm:$0xff]  ;;  %v8990_v43 = vld [vmem:[#allocation8 + $0x228] sm:$0xff]  }
  0xd5   : > { %8089 = vmatmul.mubr.bf16.gmra.mxu0 %v9622_v52 }
  0xd6   : > { %8092 = vmatprep.mubr.bf16.mxu0 %v9624_v53  ;;  %8169 = vmatpush3.bf16.msra.mxu0 %v8957_v50  ;;  %v1104_v50 = vld [vmem:[#allocation2 + $0x142] sm:$0xff] }
  0xd7   : > { %8170 = vmatprep.subr.bf16.mxu0 %v8958_v59  ;;  %8227 = vmatpush3.bf16.msra.mxu1 %v8970_v44  ;;  %v9662_v57 = vpack.c.bf16 %v1104_v50, %v1103_v49  ;;  %v2565_v44 = vld [vmem:[#allocation2 + $0x80] sm:$0xff] }
  0xd8   : > { %8308 = vmatprep.subr.bf16.mxu1 %v8976_v37 }
  0xd9   : > { %8149 = vmatmul.mubr.bf16.gmra.mxu1 %v9562_v62  ;;  %v1106_v62 = vld [vmem:[#allocation2 + $0x15a] sm:$0xff] }
  0xda   : > { %8171 = vmatpush3.bf16.msra.mxu0 %v8958_v59  ;;  %8152 = vmatprep.mubr.bf16.mxu1 %v9575_v5  ;;  %v9664_v5 = vpack.c.bf16 %v1106_v62, %v1105_v51  ;;  %v1108_v59 = vld [vmem:[#allocation2 + $0x172] sm:$0xff]  ;;  %v2593_v51 = vpack.c.bf16 %v2565_v44, %v2564_v31 }
  0xdb   : > { %8172 = vmatprep.subr.bf16.mxu0 %v8959_v0  ;;  %v9670_v2 = vpack.c.bf16 %v1108_v59, %v1107_v55  ;;  %v2945_v44 = vld [vmem:[#allocation2 + $0xf9] sm:$0xff] }
  0xdd   : > { %8093 = vmatmul.mubr.bf16.gmra.mxu0 %v9630_v4 }
  0xde   : > { %8096 = vmatprep.mubr.bf16.mxu0 %v9632_v13  ;;  %8173 = vmatpush3.bf16.msra.mxu0 %v8959_v0  ;;  %v8977_v0 = vld [vmem:[#allocation8 + $0x1f0] sm:$0xff]  }
  0xdf   : > { %8174 = vmatprep.subr.bf16.mxu0 %v8962_v16 }
  0xe1   : > { %8153 = vmatmul.mubr.bf16.gmra.mxu1 %v9580_v7  ;;  %v1478_v7 = vld [vmem:[#allocation2 + $0x188] sm:$0xff] }
  0xe2   : > { %8175 = vmatpush3.bf16.msra.mxu0 %v8962_v16  ;;  %8156 = vmatprep.mubr.bf16.mxu1 %v9590_v18  ;;  %v9672_v18 = vpack.c.bf16 %v1478_v7, %v1477_v1  ;;  %v2931_v16 = vld [vmem:[#allocation2 + $0x51] sm:$0xff] }
  0xe3   : > { %8176 = vmatprep.subr.bf16.mxu0 %v8965_v19 }
  0xe5   : > { %8097 = vmatmul.mubr.bf16.gmra.mxu0 %v9638_v24 }
  0xe6   : > { %8100 = vmatprep.mubr.bf16.mxu0 %v9640_v25  ;;  %8177 = vmatpush3.bf16.msra.mxu0 %v8965_v19  ;;  %v2932_v19 = vld [vmem:[#allocation2 + $0x61] sm:$0xff] }
  0xe7   : > { %8178 = vmatprep.subr.bf16.mxu0 %v8968_v33  ;;  %v2962_v28 = vpack.c.bf16 %v2933_v20, %v2932_v19  ;;  %v2573_v19 = vld [vmem:[#allocation2 + $0xe0] sm:$0xff] }
  0xe8   : > { %v2942_v20 = vld [vmem:[#allocation2 + $0xd9] sm:$0xff] }
  0xe9   : > { %8157 = vmatmul.mubr.bf16.gmra.mxu1 %v9595_v22  ;;  %v8973_v22 = vld [vmem:[#allocation8 + $0x1a8] sm:$0xff]  }
  0xea   : > { %8179 = vmatpush3.bf16.msra.mxu0 %v8968_v33  ;;  %8160 = vmatprep.mubr.bf16.mxu1 %v9604_v29  ;;  %v8979_v29 = vld [vmem:[#allocation8 + $0x1e8] sm:$0xff]  }
  0xeb   : > { %8260 = vmatprep.subr.bf16.mxu0 %v8971_v35 }
  0xed   : > { %8101 = vmatmul.mubr.bf16.gmra.mxu0 %v9646_v38 }
  0xee   : > { %8104 = vmatprep.mubr.bf16.mxu0 %v9648_v41 }
  0xf1   : > { %8161 = vmatmul.mubr.bf16.gmra.mxu1 %v9672_v18 }
  0xf2   : > { %8228 = vmatprep.mubr.bf16.mxu1 %v9612_v39  ;;  %v8980_v39 = vld [vmem:[#allocation8 + $0x1e0] sm:$0xff]  }
  0xf5   : > { %8105 = vmatmul.mubr.bf16.gmra.mxu0 %v9654_v45 }
  0xf6   : > { %8108 = vmatprep.mubr.bf16.mxu0 %v9656_v54 }
  0xf9   : > { %8229 = vmatmul.mubr.bf16.vlgmr.msra.gmra.mxu1 %v9614_v40  ;;  %v8978_v40 = vld [vmem:[#allocation8 + $0x190] sm:$0xff]  }
  0xfa   : > { %8232 = vmatprep.mubr.bf16.mxu1 %v9622_v52  ;;  %8309 = vmatpush3.bf16.msra.mxu1 %v8976_v37  ;;  %v8986_v52 = vld [vmem:[#allocation8 + $0x1c8] sm:$0xff]  }
  0xfb   : > { %8310 = vmatprep.subr.bf16.mxu1 %v8977_v0  ;;  %v2935_v37 = vld [vmem:[#allocation2 + $0x81] sm:$0xff] }
  0xfd   : > { %8109 = vmatmul.mubr.bf16.gmra.mxu0 %v9662_v57 }
  0xfe   : > { %8112 = vmatprep.mubr.bf16.mxu0 %v9664_v5  ;;  %8311 = vmatpush3.bf16.msra.mxu1 %v8977_v0 }
  0xff   : > { %8312 = vmatprep.subr.bf16.mxu1 %v8979_v29 }
 0x101   : > { %8233 = vmatmul.mubr.bf16.gmra.mxu1 %v9624_v53  ;;  %v8985_v53 = vld [vmem:[#allocation8 + $0x180] sm:$0xff]  }
 0x102   : > { %8236 = vmatprep.mubr.bf16.mxu1 %v9630_v4  ;;  %8313 = vmatpush3.bf16.msra.mxu1 %v8979_v29  ;;  %v9707_v4 = vld [vmem:[%s9389_s9 + $0x78] sm:$0xff]  ;;  %v2568_v29 = vld [vmem:[#allocation2 + $0xa8] sm:$0xff] }
 0x103   : > { %8314 = vmatprep.subr.bf16.mxu1 %v8980_v39 }
 0x105   : > { %8113 = vmatmul.mubr.bf16.gmra.mxu0 %v9670_v2 }
 0x106   : > { %8180 = vmatprep.mubr.bf16.mxu0 %v9496_v56  ;;  %v8974_v56 = vld [vmem:[#allocation8 + $0x1a0] sm:$0xff]   ;;  %8315 = vmatpush3.bf16.msra.mxu1 %v8980_v39  ;;  %v2938_v39 = vld [vmem:[#allocation2 + $0xa9] sm:$0xff] }
 0x109   : > { %8237 = vmatmul.mubr.bf16.gmra.mxu1 %v9632_v13 }
 0x10a   : > { %8240 = vmatprep.mubr.bf16.mxu1 %v9638_v24  ;;  %v2961_v24 = vpack.c.bf16 %v2931_v16, %v2930_v15  ;;  %v8993_v15 = vld [vmem:[#allocation8 + $0x210] sm:$0xff]  }
 0x10d   : > { %8181 = vmatmul.mubr.bf16.vlgmr.msra.gmra.mxu0 %v9501_v58  ;;  %v8975_v58 = vld [vmem:[#allocation8 + $0x198] sm:$0xff]  }
 0x10e   : > { %8261 = vmatpush3.bf16.msra.mxu0 %v8971_v35  ;;  %8184 = vmatprep.mubr.bf16.mxu0 %v9512_v9  ;;  %v8982_v9 = vld [vmem:[#allocation8 + $0x1d8] sm:$0xff]  }
 0x10f   : > { %8262 = vmatprep.subr.bf16.mxu0 %v8972_v8  ;;  %8316 = vmatprep.subr.bf16.mxu1 %v8982_v9  ;;  %v2934_v35 = vld [vmem:[#allocation2 + $0x79] sm:$0xff] }
 0x110   : > { %8317 = vmatpush3.bf16.msra.mxu1 %v8982_v9 }
 0x111   : > { %8241 = vmatmul.mubr.bf16.gmra.mxu1 %v9640_v25  ;;  %v2592_v25 = vpack.c.bf16 %v2563_v17, %v2562_v10 }
 0x112   : > { %8263 = vmatpush3.bf16.msra.mxu0 %v8972_v8  ;;  %8244 = vmatprep.mubr.bf16.mxu1 %v9646_v38 }
 0x113   : > { %8264 = vmatprep.subr.bf16.mxu0 %v8973_v22 }
 0x115   : > { %8185 = vmatmul.mubr.bf16.gmra.mxu0 %v9517_v12  ;;  %v8983_v12 = vld [vmem:[#allocation8 + $0x1d0] sm:$0xff]  }
 0x116   : > { %8188 = vmatprep.mubr.bf16.mxu0 %v9530_v32  ;;  %8265 = vmatpush3.bf16.msra.mxu0 %v8973_v22  ;;  %v8981_v32 = vld [vmem:[#allocation8 + $0x188] sm:$0xff]  }
 0x117   : > { %8266 = vmatprep.subr.bf16.mxu0 %v8974_v56  ;;  %8318 = vmatprep.subr.bf16.mxu1 %v8983_v12 }
 0x118   : > { %8319 = vmatpush3.bf16.msra.mxu1 %v8983_v12  ;;  %v2570_v12 = vld [vmem:[#allocation2 + $0xc0] sm:$0xff] }
 0x119   : > { %8320 = vmatprep.subr.bf16.mxu1 %v8986_v52  ;;  %8245 = vmatmul.mubr.bf16.gmra.mxu1 %v9648_v41 }
 0x11a   : > { %8267 = vmatpush3.bf16.msra.mxu0 %v8974_v56  ;;  %8248 = vmatprep.mubr.bf16.mxu1 %v9654_v45  ;;  %v2936_v45 = vld [vmem:[#allocation2 + $0x91] sm:$0xff] }
 0x11b   : > { %8268 = vmatprep.subr.bf16.mxu0 %v8975_v58  ;;  %v2569_v56 = vld [vmem:[#allocation2 + $0xb0] sm:$0xff] }
 0x11c   : > { %8321 = vmatpush3.bf16.msra.mxu1 %v8986_v52 }
 0x11d   : > { %8189 = vmatmul.mubr.bf16.gmra.mxu0 %v9535_v36  ;;  %v8987_v36 = vld [vmem:[#allocation8 + $0x1c0] sm:$0xff]  }
 0x11e   : > { %8192 = vmatprep.mubr.bf16.mxu0 %v9544_v46  ;;  %8269 = vmatpush3.bf16.msra.mxu0 %v8975_v58  ;;  %v8988_v46 = vld [vmem:[#allocation8 + $0x238] sm:$0xff]  }
 0x11f   : > { %8270 = vmatprep.subr.bf16.mxu0 %v8978_v40  ;;  %8322 = vmatprep.subr.bf16.mxu1 %v8987_v36 }
 0x120   : > { %8323 = vmatpush3.bf16.msra.mxu1 %v8987_v36  ;;  %v2941_v36 = vld [vmem:[#allocation2 + $0xc9] sm:$0xff] }
 0x121   : > { %8249 = vmatmul.mubr.bf16.gmra.mxu1 %v9656_v54  ;;  %v2937_v54 = vld [vmem:[#allocation2 + $0x99] sm:$0xff] }
 0x122   : > { %8271 = vmatpush3.bf16.msra.mxu0 %v8978_v40  ;;  %8252 = vmatprep.mubr.bf16.mxu1 %v9662_v57  ;;  %v2963_v57 = vpack.c.bf16 %v2935_v37, %v2934_v35  ;;  %v2964_v1 = vpack.c.bf16 %v2937_v54, %v2936_v45  ;;  %v2939_v40 = vld [vmem:[#allocation2 + $0xb1] sm:$0xff]  ;;  %v8994_v35 = vld [vmem:[#allocation8 + $0x208] sm:$0xff]  }
 0x123   : > { %8272 = vmatprep.subr.bf16.mxu0 %v8981_v32 }
 0x125   : > { %8193 = vmatmul.mubr.bf16.gmra.mxu0 %v9549_v48  ;;  %v2217_v48 = vld [vmem:[#allocation2 + $0x182] sm:$0xff] }
 0x126   : > { %8196 = vmatprep.mubr.bf16.mxu0 %v9560_v61  ;;  %8273 = vmatpush3.bf16.msra.mxu0 %v8981_v32  ;;  %v2218_v61 = vld [vmem:[#allocation2 + $0x18a] sm:$0xff] }
 0x127   : > { %8274 = vmatprep.subr.bf16.mxu0 %v8985_v53  ;;  %v9709_v13 = vpack.c.bf16 %v2218_v61, %v2217_v48  ;;  %v2571_v32 = vld [vmem:[#allocation2 + $0xc8] sm:$0xff] }
 0x129   : > { %8253 = vmatmul.mubr.bf16.gmra.mxu1 %v9664_v5  ;;  %v2594_v5 = vpack.c.bf16 %v2567_v47, %v2566_v42 }
 0x12a   : > { %8275 = vmatpush3.bf16.msra.mxu0 %v8985_v53  ;;  %8256 = vmatprep.mubr.bf16.mxu1 %v9670_v2  ;;  %v8991_v2 = vld [vmem:[#allocation8 + $0x220] sm:$0xff]  }
 0x12b   : > { %8356 = vmatprep.subr.bf16.mxu0 %v8988_v46  ;;  %v2940_v53 = vld [vmem:[#allocation2 + $0xc1] sm:$0xff] }
 0x12d   : > { %8197 = vmatmul.mubr.bf16.gmra.mxu0 %v9565_v63  ;;  %v2558_v63 = vld [vmem:[#allocation2 + $0x30] sm:$0xff] }
 0x12e   : > { %8200 = vmatprep.mubr.bf16.mxu0 %v9578_v6  ;;  %v2559_v6 = vld [vmem:[#allocation2 + $0x38] sm:$0xff] }
 0x131   : > { %8257 = vmatmul.mubr.bf16.gmra.mxu1 %v9709_v13 }
 0x135   : > { %8201 = vmatmul.mubr.bf16.gmra.mxu0 %v9583_v11  ;;  %v2929_v11 = vld [vmem:[#allocation2 + $0x39] sm:$0xff] }
 0x136   : > { %8204 = vmatprep.mubr.bf16.mxu0 %v9593_v21  ;;  %v2590_v21 = vpack.c.bf16 %v2559_v6, %v2558_v63  ;;  %v2960_v14 = vpack.c.bf16 %v2929_v11, %v2928_v3  ;;  %v2595_v63 = vpack.c.bf16 %v2569_v56, %v2568_v29  ;;  %v2965_v3 = vpack.c.bf16 %v2939_v40, %v2938_v39  ;;  %v2947_v29 = vld [vmem:[#allocation2 + $0x111] sm:$0xff]  ;;  %v2578_v56 = vld [vmem:[#allocation2 + $0x120] sm:$0xff]  ;;  %v2579_v39 = vld [vmem:[#allocation2 + $0x128] sm:$0xff] }
 0x137   : > { %v2596_v11 = vpack.c.bf16 %v2571_v32, %v2570_v12  ;;  %v2948_v40 = vld [vmem:[#allocation2 + $0x121] sm:$0xff]  ;;  %v2949_v12 = vld [vmem:[#allocation2 + $0x129] sm:$0xff] }
 0x138   : > { %8324 = vmatprep.mubr.bf16.mxu1 %v2960_v14 }
 0x139   : > { %v8038_v34 = vpop.f32.mrf.mxu1  ;;  %8325 = vmatmul.mubr.bf16.vlgmr.msra.gmra.mxu1 %v2961_v24 }
 0x13a   : > { %8328 = vmatprep.mubr.bf16.mxu1 %v2962_v28  ;;  %v2574_v28 = vld [vmem:[#allocation2 + $0xf0] sm:$0xff] }
 0x13b   : > { %v854_v60 = vpop.f32.mrf.mxu1 }
 0x13d   : > { %8205 = vmatmul.mubr.bf16.gmra.mxu0 %v9598_v23  ;;  %v2560_v23 = vld [vmem:[#allocation2 + $0x48] sm:$0xff]  ;;  %v8039_v62 = vpop.f32.mrf.mxu1 }
 0x13e   : > { %8208 = vmatprep.mubr.bf16.mxu0 %v9607_v30  ;;  %v2561_v30 = vld [vmem:[#allocation2 + $0x50] sm:$0xff] }
 0x13f   : > { %v2591_v27 = vpack.c.bf16 %v2561_v30, %v2560_v23  ;;  %v857_v7 = vpop.f32.mrf.mxu1  ;;  %v2966_v23 = vpack.c.bf16 %v2941_v36, %v2940_v53 }
 0x141   : > { %v8042_v22 = vpop.f32.mrf.mxu1  ;;  %8329 = vmatmul.mubr.bf16.gmra.mxu1 %v2963_v57 }
 0x142   : > { %8332 = vmatprep.mubr.bf16.mxu1 %v2964_v1  ;;  %v2576_v1 = vld [vmem:[#allocation2 + $0x108] sm:$0xff] }
 0x143   : > { %v870_v52 = vpop.f32.mrf.mxu1 }
 0x145   : > { %8209 = vmatmul.mubr.bf16.gmra.mxu0 %v9707_v4  ;;  %v8043_v6 = vpop.f32.mrf.mxu1 }
 0x146   : > { %8276 = vmatprep.mubr.bf16.mxu0 %v2590_v21 }
 0x147   : > { %v873_v30 = vpop.f32.mrf.mxu1 }
 0x149   : > { %v8046_v17 = vpop.f32.mrf.mxu1  ;;  %8333 = vmatmul.mubr.bf16.gmra.mxu1 %v2965_v3  ;;  %v2970_v3 = vpack.c.bf16 %v2949_v12, %v2948_v40 }
 0x14a   : > { %8336 = vmatprep.mubr.bf16.mxu1 %v2966_v23 }
 0x14b   : > { %v886_v31 = vpop.f32.mrf.mxu1 }
 0x14d   : > { %v7990_v33 = vpop.f32.mrf.mxu0  ;;  %8277 = vmatmul.mubr.bf16.vlgmr.msra.gmra.mxu0 %v2591_v27  ;;  %v2572_v27 = vld [vmem:[#allocation2 + $0xd8] sm:$0xff]  ;;  %v8047_v47 = vpop.f32.mrf.mxu1 }
 0x14e   : > { %8357 = vmatpush3.bf16.msra.mxu0 %v8988_v46  ;;  %v9713_v38 = vadd.f32 %v8038_v34, %v7990_v33  ;;  %8280 = vmatprep.mubr.bf16.mxu0 %v2592_v25  ;;  %v8992_v46 = vld [vmem:[#allocation8 + $0x218] sm:$0xff]   ;;  %v2597_v42 = vpack.c.bf16 %v2573_v19, %v2572_v27 }
 0x14f   : > { %v548_v41 = vpop.f32.mrf.mxu0  ;;  %8358 = vmatprep.subr.bf16.mxu0 %v8989_v26  ;;  %v2575_v33 = vld [vmem:[#allocation2 + $0xf8] sm:$0xff] }
 0x150   : > { %v9715_v49 = vadd.f32 %v854_v60, %v548_v41  ;;  %v2944_v34 = vld [vmem:[#allocation2 + $0xf1] sm:$0xff]  ;;  %v2598_v60 = vpack.c.bf16 %v2575_v33, %v2574_v28 }
 0x151   : > { %v7991_v50 = vpop.f32.mrf.mxu0  ;;  %v2952_v33 = vld [vmem:[#allocation2 + $0x151] sm:$0xff] }
 0x152   : > { %8359 = vmatpush3.bf16.msra.mxu0 %v8989_v26  ;;  %v9717_v55 = vadd.f32 %v8039_v62, %v7991_v50  ;;  %v2943_v26 = vld [vmem:[#allocation2 + $0xe1] sm:$0xff]  ;;  %v2968_v50 = vpack.c.bf16 %v2945_v44, %v2944_v34 }
 0x153   : > { %v551_v59 = vpop.f32.mrf.mxu0  ;;  %8360 = vmatprep.subr.bf16.mxu0 %v8990_v43  ;;  %v8995_v62 = vld [vmem:[#allocation8 + $0x200] sm:$0xff]  }
 0x154   : > { %v9719_v8 = vadd.f32 %v857_v7, %v551_v59  ;;  %v2577_v7 = vld [vmem:[#allocation2 + $0x110] sm:$0xff] }
 0x155   : > { %v7994_v0 = vpop.f32.mrf.mxu0  ;;  %8281 = vmatmul.mubr.bf16.gmra.mxu0 %v2593_v51  ;;  %v889_v51 = vpop.f32.mrf.mxu1  ;;  %v2599_v53 = vpack.c.bf16 %v2577_v7, %v2576_v1 }
 0x156   : > { %8284 = vmatprep.mubr.bf16.mxu0 %v2594_v5  ;;  %v9721_v58 = vadd.f32 %v8042_v22, %v7994_v0  ;;  %8361 = vmatpush3.bf16.msra.mxu0 %v8990_v43  ;;  %v2967_v43 = vpack.c.bf16 %v2943_v26, %v2942_v20  ;;  %v2951_v20 = vld [vmem:[#allocation2 + $0x141] sm:$0xff]  ;;  %v2583_v26 = vld [vmem:[#allocation2 + $0x158] sm:$0xff] }
 0x157   : > { %v564_v9 = vpop.f32.mrf.mxu0  ;;  %8362 = vmatprep.subr.bf16.mxu0 %v8991_v2  ;;  %v8050_v59 = vpop.f32.mrf.mxu1 }
 0x158   : > { %v9723_v48 = vadd.f32 %v870_v52, %v564_v9  ;;  %8337 = vmatmul.mubr.bf16.gmra.mxu1 %v2967_v43 }
 0x159   : > { %v7995_v61 = vpop.f32.mrf.mxu0  ;;  %8340 = vmatprep.mubr.bf16.mxu1 %v2968_v50  ;;  %v902_v9 = vpop.f32.mrf.mxu1 }
 0x15a   : > { %v9725_v21 = vadd.f32 %v8043_v6, %v7995_v61  ;;  %8363 = vmatpush3.bf16.msra.mxu0 %v8991_v2  ;;  %v2946_v2 = vld [vmem:[#allocation2 + $0x109] sm:$0xff]  ;;  %v2600_v61 = vpack.c.bf16 %v2579_v39, %v2578_v56 }
 0x15b   : > { %v567_v14 = vpop.f32.mrf.mxu0  ;;  %8364 = vmatprep.subr.bf16.mxu0 %v8992_v46  ;;  %v8051_v36 = vpop.f32.mrf.mxu1 }
 0x15c   : > { %v9727_v16 = vadd.f32 %v873_v30, %v567_v14 }
 0x15d   : > { %v7998_v10 = vpop.f32.mrf.mxu0  ;;  %8285 = vmatmul.mubr.bf16.gmra.mxu0 %v2595_v63 }
 0x15e   : > { %8288 = vmatprep.mubr.bf16.mxu0 %v2596_v11  ;;  %v9729_v24 = vadd.f32 %v8046_v17, %v7998_v10  ;;  %8365 = vmatpush3.bf16.msra.mxu0 %v8992_v46  ;;  %v2969_v46 = vpack.c.bf16 %v2947_v29, %v2946_v2  ;;  %v905_v11 = vpop.f32.mrf.mxu1  ;;  %v2581_v10 = vld [vmem:[#allocation2 + $0x140] sm:$0xff]  ;;  %v2954_v2 = vld [vmem:[#allocation2 + $0x169] sm:$0xff] }
 0x15f   : > { %v580_v25 = vpop.f32.mrf.mxu0  ;;  %8366 = vmatprep.subr.bf16.mxu0 %v8993_v15  ;;  %v2950_v17 = vld [vmem:[#allocation2 + $0x139] sm:$0xff] }
 0x160   : > { %v9731_v37 = vadd.f32 %v886_v31, %v580_v25  ;;  %v8054_v30 = vpop.f32.mrf.mxu1  ;;  %8341 = vmatmul.mubr.bf16.gmra.mxu1 %v2969_v46  ;;  %v2582_v25 = vld [vmem:[#allocation2 + $0x150] sm:$0xff]  ;;  %v2953_v31 = vld [vmem:[#allocation2 + $0x159] sm:$0xff] }
 0x161   : > { %v7999_v41 = vpop.f32.mrf.mxu0  ;;  %8344 = vmatprep.mubr.bf16.mxu1 %v2970_v3  ;;  %v2958_v3 = vld [vmem:[#allocation2 + $0x199] sm:$0xff] }
 0x162   : > { %v9733_v45 = vadd.f32 %v8047_v47, %v7999_v41  ;;  %8367 = vmatpush3.bf16.msra.mxu0 %v8993_v15  ;;  %v2580_v15 = vld [vmem:[#allocation2 + $0x138] sm:$0xff]  ;;  %v918_v28 = vpop.f32.mrf.mxu1  ;;  %v2602_v47 = vpack.c.bf16 %v2583_v26, %v2582_v25  ;;  %v9771_v25 = vld [vmem:[#allocation2 + $0x8] sm:$0xff] }
 0x163   : > { %v583_v54 = vpop.f32.mrf.mxu0  ;;  %8368 = vmatprep.subr.bf16.mxu0 %v8994_v35 }
 0x164   : > { %v9735_v57 = vadd.f32 %v889_v51, %v583_v54  ;;  %v8055_v41 = vpop.f32.mrf.mxu1  ;;  %v2972_v54 = vpack.c.bf16 %v2953_v31, %v2952_v33 }
 0x165   : > { %v8002_v5 = vpop.f32.mrf.mxu0  ;;  %8289 = vmatmul.mubr.bf16.gmra.mxu0 %v2597_v42  ;;  %v2971_v42 = vpack.c.bf16 %v2951_v20, %v2950_v17 }
 0x166   : > { %8292 = vmatprep.mubr.bf16.mxu0 %v2598_v60  ;;  %v9737_v0 = vadd.f32 %v8050_v59, %v8002_v5  ;;  %8369 = vmatpush3.bf16.msra.mxu0 %v8994_v35  ;;  %v2601_v35 = vpack.c.bf16 %v2581_v10, %v2580_v15  ;;  %v9753_v50 = vpop.f32.mrf.mxu1  ;;  %v2584_v5 = vld [vmem:[#allocation2 + $0x168] sm:$0xff]  ;;  %v2585_v59 = vld [vmem:[#allocation2 + $0x170] sm:$0xff]  ;;  %v3299_v10 = vld [vmem:[#allocation2 + $0x3a] sm:$0xff] }
 0x167   : > { %v596_v22 = vpop.f32.mrf.mxu0  ;;  %8370 = vmatprep.subr.bf16.mxu0 %v8995_v62  ;;  %v3298_v15 = vld [vmem:[#allocation2 + $0x32] sm:$0xff] }
 0x168   : > { %v9739_v32 = vadd.f32 %v902_v9, %v596_v22  ;;  %8345 = vmatmul.mubr.bf16.gmra.mxu1 %v2971_v42  ;;  %v2955_v22 = vld [vmem:[#allocation2 + $0x171] sm:$0xff]  ;;  %v2603_v9 = vpack.c.bf16 %v2585_v59, %v2584_v5  ;;  %v3330_v33 = vpack.c.bf16 %v3299_v10, %v3298_v15  ;;  %v3307_v10 = vld [vmem:[#allocation2 + $0x9a] sm:$0xff] }
 0x169   : > { %v8003_v52 = vpop.f32.mrf.mxu0  ;;  %8348 = vmatprep.mubr.bf16.mxu1 %v2972_v54  ;;  %v2973_v12 = vpack.c.bf16 %v2955_v22, %v2954_v2  ;;  %v3300_v42 = vld [vmem:[#allocation2 + $0x4a] sm:$0xff]  ;;  %v3306_v15 = vld [vmem:[#allocation2 + $0x92] sm:$0xff] }
 0x16a   : > { %v9741_v63 = vadd.f32 %v8051_v36, %v8003_v52  ;;  %8371 = vmatpush3.bf16.msra.mxu0 %v8995_v62  ;;  %v8058_v62 = vpop.f32.mrf.mxu1  ;;  %v3303_v5 = vld [vmem:[#allocation2 + $0x6a] sm:$0xff] }
 0x16b   : > { %v599_v6 = vpop.f32.mrf.mxu0 }
 0x16c   : > { %v9743_v14 = vadd.f32 %v905_v11, %v599_v6  ;;  %v934_v29 = vpop.f32.mrf.mxu1  ;;  %v2588_v6 = vld [vmem:[#allocation2 + $0x198] sm:$0xff] }
 0x16d   : > { %v8006_v23 = vpop.f32.mrf.mxu0  ;;  %8293 = vmatmul.mubr.bf16.gmra.mxu0 %v2599_v53  ;;  %v2605_v26 = vpack.c.bf16 %v9771_v25, %v2588_v6 }
 0x16e   : > { %8296 = vmatprep.mubr.bf16.mxu0 %v2600_v61  ;;  %v9745_v27 = vadd.f32 %v8054_v30, %v8006_v23  ;;  %v8059_v40 = vpop.f32.mrf.mxu1  ;;  %v2959_v30 = vld [vmem:[#allocation2 + $0x1a1] sm:$0xff] }
 0x16f   : > { %v612_v19 = vpop.f32.mrf.mxu0 }
 0x170   : > { %v9747_v34 = vadd.f32 %v918_v28, %v612_v19  ;;  %v9763_v36 = vpop.f32.mrf.mxu1  ;;  %8349 = vmatmul.mubr.bf16.gmra.mxu1 %v2973_v12 }
 0x171   : > { %v8007_v44 = vpop.f32.mrf.mxu0  ;;  %11156 = vst [vmem:[#allocation16_spill] sm:$0xff] %v9763_v36  ;;  %8352 = vmatprep.mubr.bf16.mxu1 %v9707_v4 }
 0x172   : > { %v9749_v43 = vadd.f32 %v8055_v41, %v8007_v44  ;;  %v8062_v61 = vpop.f32.mrf.mxu1 }
 0x173   : > { %v9751_v60 = vpop.f32.mrf.mxu0 }
 0x174   : > { %v950_v17 = vpop.f32.mrf.mxu1 }
 0x175   : > { %v8010_v51 = vpop.f32.mrf.mxu0  ;;  %8297 = vmatmul.mubr.bf16.gmra.mxu0 %v2601_v35 }
 0x176   : > { %8300 = vmatprep.mubr.bf16.mxu0 %v2602_v47  ;;  %v9755_v1 = vadd.f32 %v8058_v62, %v8010_v51  ;;  %v8063_v28 = vpop.f32.mrf.mxu1  ;;  %v3301_v47 = vld [vmem:[#allocation2 + $0x52] sm:$0xff]  ;;  %v3302_v62 = vld [vmem:[#allocation2 + $0x62] sm:$0xff] }
 0x177   : > { %v628_v7 = vpop.f32.mrf.mxu0  ;;  %v3331_v22 = vpack.c.bf16 %v3301_v47, %v3300_v42 }
 0x178   : > { %v9757_v56 = vadd.f32 %v934_v29, %v628_v7  ;;  %v9778_v35 = vpop.f32.mrf.mxu1 }
 0x179   : > { %v8011_v39 = vpop.f32.mrf.mxu0  ;;  %11158 = vst [vmem:[#allocation18_spill] sm:$0xff] %v9778_v35 }
 0x17a   : > { %v9759_v52 = vadd.f32 %v8059_v40, %v8011_v39  ;;  %v8066_v41 = vpop.f32.mrf.mxu1  ;;  %v3332_v39 = vpack.c.bf16 %v3303_v5, %v3302_v62 }
 0x17b   : > { %v9761_v53 = vpop.f32.mrf.mxu0 }
 0x17c   : > { %11155 = vst [vmem:[#allocation15_spill] sm:$0xff] %v9761_v53  ;;  %v966_v59 = vpop.f32.mrf.mxu1 }
 0x17d   : > { %v8014_v46 = vpop.f32.mrf.mxu0  ;;  %8301 = vmatmul.mubr.bf16.gmra.mxu0 %v2603_v9 }
 0x17e   : > { %8304 = vmatprep.mubr.bf16.mxu0 %v9672_v18  ;;  %v9766_v11 = vadd.f32 %v8062_v61, %v8014_v46  ;;  %v2975_v18 = vpack.c.bf16 %v2959_v30, %v2958_v3  ;;  %v8067_v29 = vpop.f32.mrf.mxu1  ;;  %v3304_v3 = vld [vmem:[#allocation2 + $0x7a] sm:$0xff] }
 0x17f   : > { %v644_v23 = vpop.f32.mrf.mxu0 }
 0x180   : > { %v9769_v19 = vadd.f32 %v950_v17, %v644_v23  ;;  %8353 = vmatmul.mubr.bf16.gmra.mxu1 %v2975_v18  ;;  %v9788_v12 = vpop.f32.mrf.mxu1  ;;  %v3305_v23 = vld [vmem:[#allocation2 + $0x82] sm:$0xff] }
 0x181   : > { %v8015_v20 = vpop.f32.mrf.mxu0  ;;  %11160 = vst [vmem:[#allocation20_spill] sm:$0xff] %v9788_v12  ;;  %v3333_v18 = vpack.c.bf16 %v3305_v23, %v3304_v3 }
 0x182   : > { %v9774_v31 = vadd.f32 %v8063_v28, %v8015_v20  ;;  %v8134_v6 = vpop.f32.mrf.mxu1 }
 0x183   : > { %v9776_v44 = vpop.f32.mrf.mxu0 }
 0x184   : > { %11157 = vst [vmem:[#allocation17_spill] sm:$0xff] %v9776_v44 }
 0x185   : > { %v8018_v4 = vpop.f32.mrf.mxu0  ;;  %8305 = vmatmul.mubr.bf16.gmra.mxu0 %v2605_v26  ;;  %v1594_v26 = vpop.f32.mrf.mxu1 }
 0x186   : > { %8372 = vmatprep.mubr.bf16.mxu0 %v3330_v33  ;;  %v9780_v54 = vadd.f32 %v8066_v41, %v8018_v4 }
 0x187   : > { %v660_v51 = vpop.f32.mrf.mxu0  ;;  %v8135_v41 = vpop.f32.mrf.mxu1 }
 0x188   : > { %v9782_v7 = vadd.f32 %v966_v59, %v660_v51 }
 0x189   : > { %v8019_v2 = vpop.f32.mrf.mxu0  ;;  %v9802_v62 = vpop.f32.mrf.mxu1 }
 0x18a   : > { %v9784_v9 = vadd.f32 %v8067_v29, %v8019_v2  ;;  %v3308_v2 = vld [vmem:[#allocation2 + $0xaa] sm:$0xff]  ;;  %v3310_v29 = vld [vmem:[#allocation2 + $0xc2] sm:$0xff] }
 0x18b   : > { %v9786_v40 = vpop.f32.mrf.mxu0  ;;  %v8138_v59 = vpop.f32.mrf.mxu1 }
 0x18c   : > { %11159 = vst [vmem:[#allocation19_spill] sm:$0xff] %v9786_v40 }
 0x18d   : > { %v8086_v46 = vpop.f32.mrf.mxu0  ;;  %8373 = vmatmul.mubr.bf16.vlgmr.msra.gmra.mxu0 %v3331_v22 }
 0x18e   : > { %v1385_v61 = vadd.f32 %v8086_v46, %v9713_v38  ;;  %8376 = vmatprep.mubr.bf16.mxu0 %v3332_v39  ;;  %v3334_v38 = vpack.c.bf16 %v3307_v10, %v3306_v15  ;;  %v3311_v39 = vld [vmem:[#allocation2 + $0xca] sm:$0xff] }
 0x18f   : > { %v1224_v30 = vpop.f32.mrf.mxu0 }
 0x190   : > { %v1383_v17 = vadd.f32 %v1224_v30, %v9715_v49  ;;  %v9792_v20 = vadd.f32 %v8134_v6, %v1385_v61 }
 0x191   : > { %v8087_v28 = vpop.f32.mrf.mxu0 }
 0x192   : > { %v1386_v33 = vadd.f32 %v8087_v28, %v9717_v55  ;;  %v9795_v4 = vadd.f32 %v1594_v26, %v1383_v17  ;;  %v3309_v55 = vld [vmem:[#allocation2 + $0xb2] sm:$0xff] }
 0x193   : > { %v1227_v42 = vpop.f32.mrf.mxu0  ;;  %v3335_v3 = vpack.c.bf16 %v3309_v55, %v3308_v2 }
 0x194   : > { %v9798_v47 = vadd.f32 %v1227_v42, %v9719_v8  ;;  %v9800_v51 = vadd.f32 %v8135_v41, %v1386_v33  ;;  %v1610_v8 = vpop.f32.mrf.mxu1  ;;  %v3312_v41 = vld [vmem:[#allocation2 + $0xda] sm:$0xff]  ;;  %v3314_v42 = vld [vmem:[#allocation2 + $0xf2] sm:$0xff] }
 0x195   : > { %v8090_v49 = vpop.f32.mrf.mxu0  ;;  %8377 = vmatmul.mubr.bf16.gmra.mxu0 %v3333_v18 }
 0x196   : > { %v1389_v5 = vadd.f32 %v8090_v49, %v9721_v58  ;;  %8380 = vmatprep.mubr.bf16.mxu0 %v3334_v38  ;;  %v8139_v15 = vpop.f32.mrf.mxu1  ;;  %v3336_v58 = vpack.c.bf16 %v3311_v39, %v3310_v29  ;;  %v3315_v49 = vld [vmem:[#allocation2 + $0xfa] sm:$0xff] }
 0x197   : > { %v1240_v22 = vpop.f32.mrf.mxu0 }
 0x198   : > { %v1387_v46 = vadd.f32 %v1240_v22, %v9723_v48  ;;  %v9806_v61 = vadd.f32 %v8138_v59, %v1389_v5  ;;  %v9816_v28 = vpop.f32.mrf.mxu1 }
 0x199   : > { %v8091_v6 = vpop.f32.mrf.mxu0 }
 0x19a   : > { %v1390_v23 = vadd.f32 %v8091_v6, %v9725_v21  ;;  %v9809_v30 = vadd.f32 %v1610_v8, %v1387_v46  ;;  %v8142_v33 = vpop.f32.mrf.mxu1  ;;  %v3313_v21 = vld [vmem:[#allocation2 + $0xe2] sm:$0xff]  ;;  %v8996_v46 = vld [vmem:[#allocation10 + $0x38] sm:$0xff]  }
 0x19b   : > { %v1243_v10 = vpop.f32.mrf.mxu0  ;;  %v3337_v55 = vpack.c.bf16 %v3313_v21, %v3312_v41  ;;  %8404 = vmatprep.subr.bf16.mxu1 %v8996_v46 }
 0x19c   : > { %v9812_v17 = vadd.f32 %v1243_v10, %v9727_v16  ;;  %v9814_v26 = vadd.f32 %v8139_v15, %v1390_v23  ;;  %v1626_v16 = vpop.f32.mrf.mxu1  ;;  %8405 = vmatpush3.bf16.msra.mxu1 %v8996_v46  ;;  %v3317_v10 = vld [vmem:[#allocation2 + $0x112] sm:$0xff] }
 0x19d   : > { %v8094_v48 = vpop.f32.mrf.mxu0  ;;  %8381 = vmatmul.mubr.bf16.gmra.mxu0 %v3335_v3 }
 0x19e   : > { %v1393_v18 = vadd.f32 %v8094_v48, %v9729_v24  ;;  %8384 = vmatprep.mubr.bf16.mxu0 %v3336_v58  ;;  %v8143_v39 = vpop.f32.mrf.mxu1  ;;  %v3338_v24 = vpack.c.bf16 %v3315_v49, %v3314_v42  ;;  %v3316_v58 = vld [vmem:[#allocation2 + $0x10a] sm:$0xff] }
 0x19f   : > { %v1256_v38 = vpop.f32.mrf.mxu0  ;;  %v3339_v42 = vpack.c.bf16 %v3317_v10, %v3316_v58  ;;  %v3323_v58 = vld [vmem:[#allocation2 + $0x15a] sm:$0xff] }
 0x1a0   : > { %v1391_v5 = vadd.f32 %v1256_v38, %v9731_v37  ;;  %v9820_v59 = vadd.f32 %v8142_v33, %v1393_v18  ;;  %v9830_v23 = vpop.f32.mrf.mxu1  ;;  %v3318_v18 = vld [vmem:[#allocation2 + $0x122] sm:$0xff]  ;;  %v3319_v33 = vld [vmem:[#allocation2 + $0x12a] sm:$0xff] }
 0x1a1   : > { %v8095_v2 = vpop.f32.mrf.mxu0 }
 0x1a2   : > { %v1394_v22 = vadd.f32 %v8095_v2, %v9733_v45  ;;  %v9823_v29 = vadd.f32 %v1626_v16, %v1391_v5  ;;  %v8146_v45 = vpop.f32.mrf.mxu1  ;;  %v8997_v2 = vld [vmem:[#allocation10 + $0x30] sm:$0xff]  }
 0x1a3   : > { %v1259_v8 = vpop.f32.mrf.mxu0  ;;  %8406 = vmatprep.subr.bf16.mxu1 %v8997_v2 }
 0x1a4   : > { %v9826_v6 = vadd.f32 %v1259_v8, %v9735_v57  ;;  %v9828_v3 = vadd.f32 %v8143_v39, %v1394_v22  ;;  %v1642_v21 = vpop.f32.mrf.mxu1  ;;  %8407 = vmatpush3.bf16.msra.mxu1 %v8997_v2  ;;  %v3320_v8 = vld [vmem:[#allocation2 + $0x13a] sm:$0xff] }
 0x1a5   : > { %v8098_v37 = vpop.f32.mrf.mxu0  ;;  %8385 = vmatmul.mubr.bf16.gmra.mxu0 %v3337_v55 }
 0x1a6   : > { %v1397_v15 = vadd.f32 %v8098_v37, %v9737_v0  ;;  %8388 = vmatprep.mubr.bf16.mxu0 %v3338_v24  ;;  %v8147_v16 = vpop.f32.mrf.mxu1  ;;  %v3340_v0 = vpack.c.bf16 %v3319_v33, %v3318_v18  ;;  %v3321_v37 = vld [vmem:[#allocation2 + $0x142] sm:$0xff] }
 0x1a7   : > { %v1272_v48 = vpop.f32.mrf.mxu0  ;;  %v3341_v33 = vpack.c.bf16 %v3321_v37, %v3320_v8 }
 0x1a8   : > { %v1395_v57 = vadd.f32 %v1272_v48, %v9739_v32  ;;  %v9834_v41 = vadd.f32 %v8146_v45, %v1397_v15  ;;  %v9844_v24 = vpop.f32.mrf.mxu1  ;;  %v3322_v45 = vld [vmem:[#allocation2 + $0x152] sm:$0xff] }
 0x1a9   : > { %v8099_v38 = vpop.f32.mrf.mxu0  ;;  %11162 = vst [vmem:[#allocation22_spill] sm:$0xff] %v9844_v24 }
 0x1aa   : > { %v1398_v49 = vadd.f32 %v8099_v38, %v9741_v63  ;;  %v9837_v5 = vadd.f32 %v1642_v21, %v1395_v57  ;;  %v8150_v63 = vpop.f32.mrf.mxu1 }
 0x1ab   : > { %v1275_v55 = vpop.f32.mrf.mxu0 }
 0x1ac   : > { %v9840_v22 = vadd.f32 %v1275_v55, %v9743_v14  ;;  %v9842_v39 = vadd.f32 %v8147_v16, %v1398_v49  ;;  %v1658_v48 = vpop.f32.mrf.mxu1 }
 0x1ad   : > { %v8102_v32 = vpop.f32.mrf.mxu0  ;;  %8389 = vmatmul.mubr.bf16.gmra.mxu0 %v3339_v42  ;;  %v8998_v42 = vld [vmem:[#allocation10 + $0x28] sm:$0xff]  }
 0x1ae   : > { %11161 = vst [vmem:[#allocation21_spill] sm:$0xff] %v9840_v22  ;;  %v1401_v46 = vadd.f32 %v8102_v32, %v9745_v27  ;;  %8392 = vmatprep.mubr.bf16.mxu0 %v3340_v0  ;;  %v8151_v38 = vpop.f32.mrf.mxu1  ;;  %v3342_v27 = vpack.c.bf16 %v3323_v58, %v3322_v45  ;;  %8408 = vmatprep.subr.bf16.mxu1 %v8998_v42  ;;  %v3325_v32 = vld [vmem:[#allocation2 + $0x172] sm:$0xff] }
 0x1af   : > { %v1288_v15 = vpop.f32.mrf.mxu0  ;;  %8409 = vmatpush3.bf16.msra.mxu1 %v8998_v42  ;;  %v9001_v58 = vld [vmem:[#allocation10 + $0x78] sm:$0xff]  }
 0x1b0   : > { %v1399_v14 = vadd.f32 %v1288_v15, %v9747_v34  ;;  %v9848_v10 = vadd.f32 %v8150_v63, %v1401_v46  ;;  %v9857_v0 = vpop.f32.mrf.mxu1  ;;  %8452 = vmatprep.subr.bf16.mxu0 %v9001_v58 }
 0x1b1   : > { %v8103_v18 = vpop.f32.mrf.mxu0  ;;  %11164 = vst [vmem:[#allocation24_spill] sm:$0xff] %v9857_v0  ;;  %8453 = vmatpush3.bf16.msra.mxu0 %v9001_v58 }
 0x1b2   : > { %v1402_v57 = vadd.f32 %v8103_v18, %v9749_v43  ;;  %v9851_v21 = vadd.f32 %v1658_v48, %v1399_v14  ;;  %v8154_v55 = vpop.f32.mrf.mxu1  ;;  %v3324_v43 = vld [vmem:[#allocation2 + $0x16a] sm:$0xff] }
 0x1b3   : > { %v9853_v49 = vpop.f32.mrf.mxu0  ;;  %v3343_v45 = vpack.c.bf16 %v3325_v32, %v3324_v43 }
 0x1b4   : > { %11163 = vst [vmem:[#allocation23_spill] sm:$0xff] %v9853_v49  ;;  %v9855_v16 = vadd.f32 %v8151_v38, %v1402_v57  ;;  %v1674_v37 = vpop.f32.mrf.mxu1 }
 0x1b5   : > { %v8106_v34 = vpop.f32.mrf.mxu0  ;;  %8393 = vmatmul.mubr.bf16.gmra.mxu0 %v3341_v33  ;;  %v8999_v33 = vld [vmem:[#allocation10 + $0x20] sm:$0xff]  }
 0x1b6   : > { %v1405_v2 = vadd.f32 %v8106_v34, %v9755_v1  ;;  %8396 = vmatprep.mubr.bf16.mxu0 %v3342_v27  ;;  %v8155_v18 = vpop.f32.mrf.mxu1  ;;  %8410 = vmatprep.subr.bf16.mxu1 %v8999_v33  ;;  %v9002_v27 = vld [vmem:[#allocation10 + $0x70] sm:$0xff]   ;;  %v3328_v34 = vld [vmem:[#allocation2 + $0x19a] sm:$0xff] }
 0x1b7   : > { %v1304_v46 = vpop.f32.mrf.mxu0  ;;  %8411 = vmatpush3.bf16.msra.mxu1 %v8999_v33  ;;  %8454 = vmatprep.subr.bf16.mxu0 %v9002_v27 }
 0x1b8   : > { %v1403_v63 = vadd.f32 %v1304_v46, %v9757_v56  ;;  %v9861_v8 = vadd.f32 %v8154_v55, %v1405_v2  ;;  %v9870_v38 = vpop.f32.mrf.mxu1  ;;  %v3329_v2 = vld [vmem:[#allocation2 + $0x1a2] sm:$0xff]  ;;  %8455 = vmatpush3.bf16.msra.mxu0 %v9002_v27 }
 0x1b9   : > { %v8107_v15 = vpop.f32.mrf.mxu0  ;;  %11166 = vst [vmem:[#allocation26_spill] sm:$0xff] %v9870_v38 }
 0x1ba   : > { %v1406_v14 = vadd.f32 %v8107_v15, %v9759_v52  ;;  %v9864_v48 = vadd.f32 %v1674_v37, %v1403_v63  ;;  %v8158_v52 = vpop.f32.mrf.mxu1  ;;  %v3345_v37 = vpack.c.bf16 %v3329_v2, %v3328_v34  ;;  %v9004_v15 = vld [vmem:[#allocation10 + $0x68] sm:$0xff]  }
 0x1bb   : > { %v9866_v1 = vpop.f32.mrf.mxu0  ;;  %8456 = vmatprep.subr.bf16.mxu0 %v9004_v15 }
 0x1bc   : > { %11165 = vst [vmem:[#allocation25_spill] sm:$0xff] %v9866_v1  ;;  %v9868_v57 = vadd.f32 %v8155_v18, %v1406_v14  ;;  %v1690_v46 = vpop.f32.mrf.mxu1  ;;  %v9000_v14 = vld [vmem:[#allocation10 + $0x18] sm:$0xff]   ;;  %8457 = vmatpush3.bf16.msra.mxu0 %v9004_v15  ;;  %v9003_v15 = vld [vmem:[#allocation10 + $0x10] sm:$0xff]  }
 0x1bd   : > { %v8110_v56 = vpop.f32.mrf.mxu0  ;;  %8397 = vmatmul.mubr.bf16.gmra.mxu0 %v3343_v45  ;;  %8412 = vmatprep.subr.bf16.mxu1 %v9000_v14 }
 0x1be   : > { %v1409_v42 = vadd.f32 %v8110_v56, %v9766_v11  ;;  %8400 = vmatprep.mubr.bf16.mxu0 %v9709_v13  ;;  %v8159_v11 = vpop.f32.mrf.mxu1  ;;  %8413 = vmatpush3.bf16.msra.mxu1 %v9000_v14  ;;  %v9005_v56 = vld [vmem:[#allocation10 + $0x60] sm:$0xff]   ;;  %v9008_v14 = vld [vmem:[#allocation10 + $0x50] sm:$0xff]  }
 0x1bf   : > { %v1320_v55 = vpop.f32.mrf.mxu0  ;;  %8458 = vmatprep.subr.bf16.mxu0 %v9005_v56  ;;  %8414 = vmatprep.subr.bf16.mxu1 %v9003_v15 }
 0x1c0   : > { %v1407_v43 = vadd.f32 %v1320_v55, %v9769_v19  ;;  %v9875_v32 = vadd.f32 %v8158_v52, %v1409_v42  ;;  %v9884_v33 = vpop.f32.mrf.mxu1  ;;  %8459 = vmatpush3.bf16.msra.mxu0 %v9005_v56 }
 0x1c1   : > { %v8111_v63 = vpop.f32.mrf.mxu0  ;;  %11168 = vst [vmem:[#allocation28_spill] sm:$0xff] %v9884_v33 }
 0x1c2   : > { %v1410_v45 = vadd.f32 %v8111_v63, %v9774_v31  ;;  %v9878_v58 = vadd.f32 %v1690_v46, %v1407_v43  ;;  %v8162_v31 = vpop.f32.mrf.mxu1  ;;  %v9007_v43 = vld [vmem:[#allocation10 + $0x58] sm:$0xff]   ;;  %8415 = vmatpush3.bf16.msra.mxu1 %v9003_v15 }
 0x1c3   : > { %v9880_v13 = vpop.f32.mrf.mxu0  ;;  %8460 = vmatprep.subr.bf16.mxu0 %v9007_v43 }
 0x1c4   : > { %11167 = vst [vmem:[#allocation27_spill] sm:$0xff] %v9880_v13  ;;  %v9882_v18 = vadd.f32 %v8159_v11, %v1410_v45  ;;  %v1706_v2 = vpop.f32.mrf.mxu1  ;;  %8461 = vmatpush3.bf16.msra.mxu0 %v9007_v43 }
 0x1c5   : > { %v8114_v19 = vpop.f32.mrf.mxu0  ;;  %8401 = vmatmul.mubr.bf16.gmra.mxu0 %v3345_v37  ;;  %8462 = vmatprep.subr.bf16.mxu0 %v9008_v14 }
 0x1c6   : > { %v1413_v27 = vadd.f32 %v8114_v19, %v9780_v54  ;;  %v8163_v37 = vpop.f32.mrf.mxu1 }
 0x1c7   : > { %v1336_v42 = vpop.f32.mrf.mxu0 }
 0x1c8   : > { %v1411_v52 = vadd.f32 %v1336_v42, %v9782_v7  ;;  %v9888_v34 = vadd.f32 %v8162_v31, %v1413_v27  ;;  %v9897_v11 = vpop.f32.mrf.mxu1  ;;  %8463 = vmatpush3.bf16.msra.mxu0 %v9008_v14 }
 0x1c9   : > { %v8115_v55 = vpop.f32.mrf.mxu0  ;;  %11170 = vst [vmem:[#allocation30_spill] sm:$0xff] %v9897_v11 }
 0x1ca   : > { %v1414_v46 = vadd.f32 %v8115_v55, %v9784_v9  ;;  %v9891_v63 = vadd.f32 %v1706_v2, %v1411_v52  ;;  %v9902_v9 = vpop.f32.mrf.mxu1  ;;  %v9010_v52 = vld [vmem:[#allocation10 + $0x48] sm:$0xff]  }
 0x1cb   : > { %v9893_v45 = vpop.f32.mrf.mxu0  ;;  %8464 = vmatprep.subr.bf16.mxu0 %v9010_v52 }
 0x1cc   : > { %11169 = vst [vmem:[#allocation29_spill] sm:$0xff] %v9893_v45  ;;  %v9895_v54 = vadd.f32 %v8163_v37, %v1414_v46  ;;  %v9907_v31 = vpop.f32.mrf.mxu1  ;;  %8465 = vmatpush3.bf16.msra.mxu0 %v9010_v52  ;;  %v9011_v37 = vld [vmem:[#allocation10 + $0x40] sm:$0xff]  }
 0x1cd   : > { %v8182_v7 = vpop.f32.mrf.mxu0  ;;  %8466 = vmatprep.subr.bf16.mxu0 %v9011_v37 }
 0x1ce   : > { %v9900_v19 = vadd.f32 %v8182_v7, %v9792_v20  ;;  %v9912_v55 = vpop.f32.mrf.mxu1  ;;  %v9006_v7 = vld [vmem:[#allocation10 + $0x8] sm:$0xff]  }
 0x1cf   : > { %v1964_v56 = vpop.f32.mrf.mxu0  ;;  %8416 = vmatprep.subr.bf16.mxu1 %v9006_v7 }
 0x1d0   : > { %v9905_v27 = vadd.f32 %v1964_v56, %v9795_v4  ;;  %v9916_v20 = vpop.f32.mrf.mxu1  ;;  %v4071_v56 = vld [vmem:[#allocation3 + $0x9] sm:$0xff]  ;;  %8467 = vmatpush3.bf16.msra.mxu0 %v9011_v37  ;;  %8417 = vmatpush3.bf16.msra.mxu1 %v9006_v7  ;;  %v3765_v7 = vld [vmem:[#allocation3] sm:$0xff] }
 0x1d1   : > { %v8183_v42 = vpop.f32.mrf.mxu0 }
 0x1d2   : > { %v9910_v2 = vadd.f32 %v8183_v42, %v9800_v51  ;;  %v9921_v15 = vpop.f32.mrf.mxu1  ;;  %v4070_v51 = vld [vmem:[#allocation3 + $0x1] sm:$0xff] }
 0x1d3   : > { %v9914_v43 = vpop.f32.mrf.mxu0  ;;  %v4102_v52 = vpack.c.bf16 %v4071_v56, %v4070_v51  ;;  %v3797_v51 = vpack.c.bf16 %v9771_v25, %v3765_v7 }
 0x1d4   : > { %v9926_v11 = vpop.f32.mrf.mxu1 }
 0x1d5   : > { %v8186_v46 = vpop.f32.mrf.mxu0  ;;  %8468 = vmatprep.mubr.bf16.mxu0 %v4102_v52  ;;  %8420 = vmatprep.mubr.bf16.mxu1 %v3797_v51 }
 0x1d6   : > { %v9919_v4 = vadd.f32 %v8186_v46, %v9806_v61  ;;  %v9931_v46 = vpop.f32.mrf.mxu1 }
 0x1d7   : > { %v1980_v14 = vpop.f32.mrf.mxu0 }
 0x1d8   : > { %v9924_v42 = vadd.f32 %v1980_v14, %v9809_v30  ;;  %v9935_v12 = vpop.f32.mrf.mxu1  ;;  %v9009_v30 = vld [vmem:[#allocation10] sm:$0xff]  }
 0x1d9   : > { %v8187_v45 = vpop.f32.mrf.mxu0  ;;  %8418 = vmatprep.subr.bf16.mxu1 %v9009_v30 }
 0x1da   : > { %v9929_v61 = vadd.f32 %v8187_v45, %v9814_v26  ;;  %v9940_v13 = vpop.f32.mrf.mxu1  ;;  %8419 = vmatpush3.bf16.msra.mxu1 %v9009_v30  ;;  %v9962_v30 = vld [vmem:[#allocation10 + $0xb8] sm:$0xff]  }
 0x1db   : > { %v9933_v33 = vpop.f32.mrf.mxu0  ;;  %11173 = vst [vmem:[#allocation33_spill] sm:$0xff] %v9962_v30  ;;  %8500 = vmatprep.subr.bf16.mxu1 %v9962_v30 }
 0x1dc   : > { %v9945_v45 = vpop.f32.mrf.mxu1 }
 0x1dd   : > { %v8190_v40 = vpop.f32.mrf.mxu0 }
 0x1de   : > { %v9938_v14 = vadd.f32 %v8190_v40, %v9820_v59  ;;  %v9951_v38 = vpop.f32.mrf.mxu1 }
 0x1df   : > { %v1996_v37 = vpop.f32.mrf.mxu0 }
 0x1e0   : > { %v9943_v26 = vadd.f32 %v1996_v37, %v9823_v29  ;;  %v9955_v59 = vpop.f32.mrf.mxu1 }
 0x1e1   : > { %v8191_v56 = vpop.f32.mrf.mxu0 }
 0x1e2   : > { %v9949_v52 = vadd.f32 %v8191_v56, %v9828_v3  ;;  %v9960_v37 = vpop.f32.mrf.mxu1 }
 0x1e3   : > { %v9953_v40 = vpop.f32.mrf.mxu0  ;;  %11172 = vst [vmem:[#allocation32_spill] sm:$0xff] %v9960_v37 }
 0x1e4   : > { %v9967_v3 = vpop.f32.mrf.mxu1 }
 0x1e5   : > { %v8194_v35 = vpop.f32.mrf.mxu0  ;;  %11175 = vst [vmem:[#allocation35_spill] sm:$0xff] %v9967_v3 }
 0x1e6   : > { %v9958_v29 = vadd.f32 %v8194_v35, %v9834_v41  ;;  %v9973_v44 = vpop.f32.mrf.mxu1 }
 0x1e7   : > { %v2012_v25 = vpop.f32.mrf.mxu0  ;;  %11177 = vst [vmem:[#allocation37_spill] sm:$0xff] %v9973_v44 }
 0x1e8   : > { %11171 = vst [vmem:[#allocation31_spill] sm:$0xff] %v9958_v29  ;;  %v9965_v7 = vadd.f32 %v2012_v25, %v9837_v5  ;;  %v9977_v41 = vpop.f32.mrf.mxu1 }
 0x1e9   : > { %v8195_v51 = vpop.f32.mrf.mxu0  ;;  %11179 = vst [vmem:[#allocation39_spill] sm:$0xff] %v9977_v41 }
 0x1ea   : > { %11174 = vst [vmem:[#allocation34_spill] sm:$0xff] %v9965_v7  ;;  %v9971_v56 = vadd.f32 %v8195_v51, %v9842_v39  ;;  %v9982_v5 = vpop.f32.mrf.mxu1 }
 0x1eb   : > { %v9975_v35 = vpop.f32.mrf.mxu0  ;;  %11181 = vst [vmem:[#allocation41_spill] sm:$0xff] %v9982_v5 }
 0x1ec   : > { %11176 = vst [vmem:[#allocation36_spill] sm:$0xff] %v9971_v56  ;;  %11178 = vst [vmem:[#allocation38_spill] sm:$0xff] %v9975_v35  ;;  %v9987_v30 = vpop.f32.mrf.mxu1 }
 0x1ed   : > { %v8198_v1 = vpop.f32.mrf.mxu0  ;;  %11183 = vst [vmem:[#allocation43_spill] sm:$0xff] %v9987_v30 }
 0x1ee   : > { %v9980_v0 = vadd.f32 %v8198_v1, %v9848_v10  ;;  %v9992_v53 = vpop.f32.mrf.mxu1 }
 0x1ef   : > { %v2028_v25 = vpop.f32.mrf.mxu0  ;;  %11185 = vst [vmem:[#allocation45_spill] sm:$0xff] %v9992_v53 }
 0x1f0   : > { %11180 = vst [vmem:[#allocation40_spill] sm:$0xff] %v9980_v0  ;;  %v9985_v36 = vadd.f32 %v2028_v25, %v9851_v21  ;;  %v9996_v41 = vpop.f32.mrf.mxu1 }
 0x1f1   : > { %v8199_v39 = vpop.f32.mrf.mxu0  ;;  %11187 = vst [vmem:[#allocation47_spill] sm:$0xff] %v9996_v41 }
 0x1f2   : > { %11182 = vst [vmem:[#allocation42_spill] sm:$0xff] %v9985_v36  ;;  %v9990_v51 = vadd.f32 %v8199_v39, %v9855_v16  ;;  %v10001_v5 = vpop.f32.mrf.mxu1  ;;  %v10008_v39 = vld [vmem:[#allocation10 + $0xf8] sm:$0xff]  }
 0x1f3   : > { %v9994_v44 = vpop.f32.mrf.mxu0  ;;  %11189 = vst [vmem:[#allocation49_spill] sm:$0xff] %v10001_v5  ;;  %8548 = vmatprep.subr.bf16.mxu0 %v10008_v39 }
 0x1f4   : > { %11184 = vst [vmem:[#allocation44_spill] sm:$0xff] %v9990_v51  ;;  %11186 = vst [vmem:[#allocation46_spill] sm:$0xff] %v9994_v44  ;;  %v10006_v30 = vpop.f32.mrf.mxu1 }
 0x1f5   : > { %v8202_v10 = vpop.f32.mrf.mxu0  ;;  %11191 = vst [vmem:[#allocation51_spill] sm:$0xff] %v10006_v30 }
 0x1f6   : > { %v9999_v1 = vadd.f32 %v8202_v10, %v9861_v8  ;;  %v10013_v51 = vpop.f32.mrf.mxu1 }
 0x1f7   : > { %v2044_v21 = vpop.f32.mrf.mxu0  ;;  %11193 = vst [vmem:[#allocation53_spill] sm:$0xff] %v10013_v51 }
 0x1f8   : > { %11188 = vst [vmem:[#allocation48_spill] sm:$0xff] %v9999_v1  ;;  %v10004_v25 = vadd.f32 %v2044_v21, %v9864_v48  ;;  %v10018_v8 = vpop.f32.mrf.mxu1 }
 0x1f9   : > { %v8203_v16 = vpop.f32.mrf.mxu0  ;;  %11195 = vst [vmem:[#allocation55_spill] sm:$0xff] %v10018_v8 }
 0x1fa   : > { %11190 = vst [vmem:[#allocation50_spill] sm:$0xff] %v10004_v25  ;;  %v10011_v53 = vadd.f32 %v8203_v16, %v9868_v57  ;;  %v10023_v21 = vpop.f32.mrf.mxu1 }
 0x1fb   : > { %v10015_v41 = vpop.f32.mrf.mxu0  ;;  %11197 = vst [vmem:[#allocation57_spill] sm:$0xff] %v10023_v21 }
 0x1fc   : > { %11192 = vst [vmem:[#allocation52_spill] sm:$0xff] %v10011_v53  ;;  %11194 = vst [vmem:[#allocation54_spill] sm:$0xff] %v10015_v41  ;;  %v10028_v57 = vpop.f32.mrf.mxu1 }
 0x1fd   : > { %v8206_v10 = vpop.f32.mrf.mxu0  ;;  %11199 = vst [vmem:[#allocation59_spill] sm:$0xff] %v10028_v57 }
 0x1fe   : > { %v10021_v48 = vadd.f32 %v8206_v10, %v9875_v32  ;;  %v10033_v53 = vpop.f32.mrf.mxu1 }
 0x1ff   : > { %v2060_v30 = vpop.f32.mrf.mxu0  ;;  %11201 = vst [vmem:[#allocation61_spill] sm:$0xff] %v10033_v53 }
 0x200   : > { %11196 = vst [vmem:[#allocation56_spill] sm:$0xff] %v10021_v48  ;;  %v10026_v25 = vadd.f32 %v2060_v30, %v9878_v58  ;;  %v10037_v8 = vpop.f32.mrf.mxu1 }
 0x201   : > { %v8207_v16 = vpop.f32.mrf.mxu0  ;;  %11203 = vst [vmem:[#allocation63_spill] sm:$0xff] %v10037_v8 }
 0x202   : > { %11198 = vst [vmem:[#allocation58_spill] sm:$0xff] %v10026_v25  ;;  %v10031_v51 = vadd.f32 %v8207_v16, %v9882_v18  ;;  %v10042_v21 = vpop.f32.mrf.mxu1 }
 0x203   : > { %v10035_v41 = vpop.f32.mrf.mxu0  ;;  %11205 = vst [vmem:[#allocation65_spill] sm:$0xff] %v10042_v21 }
 0x204   : > { %11200 = vst [vmem:[#allocation60_spill] sm:$0xff] %v10031_v51  ;;  %11202 = vst [vmem:[#allocation62_spill] sm:$0xff] %v10035_v41  ;;  %v10047_v57 = vpop.f32.mrf.mxu1 }
 0x205   : > { %v8210_v32 = vpop.f32.mrf.mxu0  ;;  %11207 = vst [vmem:[#allocation67_spill] sm:$0xff] %v10047_v57 }
 0x206   : > { %v10040_v10 = vadd.f32 %v8210_v32, %v9888_v34  ;;  %v10052_v53 = vpop.f32.mrf.mxu1 }
 0x207   : > { %v2076_v58 = vpop.f32.mrf.mxu0  ;;  %11209 = vst [vmem:[#allocation69_spill] sm:$0xff] %v10052_v53 }
 0x208   : > { %11204 = vst [vmem:[#allocation64_spill] sm:$0xff] %v10040_v10  ;;  %v10045_v30 = vadd.f32 %v2076_v58, %v9891_v63  ;;  %v10056_v8 = vpop.f32.mrf.mxu1 }
 0x209   : > { %v8211_v18 = vpop.f32.mrf.mxu0  ;;  %11211 = vst [vmem:[#allocation71_spill] sm:$0xff] %v10056_v8 }
 0x20a   : > { %11206 = vst [vmem:[#allocation66_spill] sm:$0xff] %v10045_v30  ;;  %v10050_v16 = vadd.f32 %v8211_v18, %v9895_v54  ;;  %v8326_v32 = vpop.f32.mrf.mxu1 }
 0x20b   : > { %v10054_v51 = vpop.f32.mrf.mxu0 }
 0x20c   : > { %11208 = vst [vmem:[#allocation68_spill] sm:$0xff] %v10050_v16  ;;  %11210 = vst [vmem:[#allocation70_spill] sm:$0xff] %v10054_v51  ;;  %v3075_v21 = vpop.f32.mrf.mxu1 }
 0x20d   : > { %v8278_v34 = vpop.f32.mrf.mxu0 }
 0x20e   : > { %v10058_v63 = vpop.f32.mrf.mxu1 }
 0x20f   : > { %v2705_v10 = vpop.f32.mrf.mxu0 }
 0x210   : > { %v10062_v57 = vpop.f32.mrf.mxu1 }
 0x211   : > { %v8279_v41 = vpop.f32.mrf.mxu0 }
 0x212   : > { %v10068_v53 = vpop.f32.mrf.mxu1 }
 0x213   : > { %v2708_v25 = vpop.f32.mrf.mxu0 }
 0x214   : > { %v10074_v51 = vpop.f32.mrf.mxu1 }
 0x215   : > { %v10060_v58 = vpop.f32.mrf.mxu0 }
 0x216   : > { %v10080_v5 = vpop.f32.mrf.mxu1 }
 0x217   : > { %v10064_v54 = vpop.f32.mrf.mxu0 }
 0x218   : > { %v10086_v36 = vpop.f32.mrf.mxu1 }
 0x219   : > { %v10066_v18 = vpop.f32.mrf.mxu0 }
 0x21a   : > { %v10092_v49 = vpop.f32.mrf.mxu1 }
 0x21b   : > { %v10070_v16 = vpop.f32.mrf.mxu0 }
 0x21c   : > { %v10098_v7 = vpop.f32.mrf.mxu1 }
 0x21d   : > { %v10072_v8 = vpop.f32.mrf.mxu0  ;;  %11218 = vst [vmem:[#allocation78_spill] sm:$0xff] %v10098_v7 }
 0x21f   : > { %v10076_v30 = vpop.f32.mrf.mxu0 }
 0x221   : > { %v10078_v48 = vpop.f32.mrf.mxu0 }
 0x223   : > { %v10082_v1 = vpop.f32.mrf.mxu0 }
 0x224   : > { %11212 = vst [vmem:[#allocation72_spill] sm:$0xff] %v10082_v1  ;;  %v10104_v1 = vpop.f32.mrf.mxu1 }
 0x225   : > { %v10084_v44 = vpop.f32.mrf.mxu0  ;;  %11221 = vst [vmem:[#allocation81_spill] sm:$0xff] %v10104_v1 }
 0x226   : > { %11213 = vst [vmem:[#allocation73_spill] sm:$0xff] %v10084_v44 }
 0x227   : > { %v10088_v0 = vpop.f32.mrf.mxu0 }
 0x228   : > { %11214 = vst [vmem:[#allocation74_spill] sm:$0xff] %v10088_v0  ;;  %v10110_v0 = vpop.f32.mrf.mxu1 }
 0x229   : > { %v10090_v56 = vpop.f32.mrf.mxu0  ;;  %11224 = vst [vmem:[#allocation84_spill] sm:$0xff] %v10110_v0 }
 0x22a   : > { %11215 = vst [vmem:[#allocation75_spill] sm:$0xff] %v10090_v56 }
 0x22b   : > { %v10094_v35 = vpop.f32.mrf.mxu0 }
 0x22c   : > { %11216 = vst [vmem:[#allocation76_spill] sm:$0xff] %v10094_v35  ;;  %v10116_v35 = vpop.f32.mrf.mxu1 }
 0x22d   : > { %v10096_v3 = vpop.f32.mrf.mxu0 }
 0x22e   : > { %11217 = vst [vmem:[#allocation77_spill] sm:$0xff] %v10096_v3 }
 0x22f   : > { %v10100_v37 = vpop.f32.mrf.mxu0 }
 0x230   : > { %11219 = vst [vmem:[#allocation79_spill] sm:$0xff] %v10100_v37  ;;  %v10122_v37 = vpop.f32.mrf.mxu1 }
 0x231   : > { %v10102_v29 = vpop.f32.mrf.mxu0  ;;  %11229 = vst [vmem:[#allocation89_spill] sm:$0xff] %v10122_v37 }
 0x232   : > { %11220 = vst [vmem:[#allocation80_spill] sm:$0xff] %v10102_v29 }
 0x233   : > { %v10106_v44 = vpop.f32.mrf.mxu0 }
 0x234   : > { %11222 = vst [vmem:[#allocation82_spill] sm:$0xff] %v10106_v44  ;;  %v10128_v44 = vpop.f32.mrf.mxu1 }
 0x235   : > { %v10108_v24 = vpop.f32.mrf.mxu0  ;;  %11232 = vst [vmem:[#allocation92_spill] sm:$0xff] %v10128_v44 }
 0x236   : > { %11223 = vst [vmem:[#allocation83_spill] sm:$0xff] %v10108_v24 }
 0x237   : > { %v10112_v56 = vpop.f32.mrf.mxu0 }
 0x238   : > { %11225 = vst [vmem:[#allocation85_spill] sm:$0xff] %v10112_v56  ;;  %v10138_v56 = vpop.f32.mrf.mxu1 }
 0x239   : > { %v10114_v22 = vpop.f32.mrf.mxu0 }
 0x23a   : > { %11226 = vst [vmem:[#allocation86_spill] sm:$0xff] %v10114_v22  ;;  %v1754_v22 = vadd.f32 %v9802_v62, %v9798_v47  ;;  %v10149_v47 = vpop.f32.mrf.mxu1 }
 0x23b   : > { %v10118_v3 = vpop.f32.mrf.mxu0 }
 0x23c   : > { %11227 = vst [vmem:[#allocation87_spill] sm:$0xff] %v10118_v3  ;;  %v2495_v3 = vadd.f32 %v9902_v9, %v9900_v19 }
 0x23d   : > { %v10120_v7 = vpop.f32.mrf.mxu0 }
 0x23e   : > { %11228 = vst [vmem:[#allocation88_spill] sm:$0xff] %v10120_v7  ;;  %v2866_v44 = vadd.f32 %v8278_v34, %v2495_v3 }
 0x23f   : > { %v10124_v29 = vpop.f32.mrf.mxu0 }
 0x240   : > { %11230 = vst [vmem:[#allocation90_spill] sm:$0xff] %v10124_v29  ;;  %v2493_v29 = vadd.f32 %v9907_v31, %v9905_v27  ;;  %v3236_v9 = vadd.f32 %v8326_v32, %v2866_v44  ;;  %v1758_v27 = vadd.f32 %v9816_v28, %v9812_v17 }
 0x241   : > { %v10126_v1 = vpop.f32.mrf.mxu0 }
 0x242   : > { %11231 = vst [vmem:[#allocation91_spill] sm:$0xff] %v10126_v1  ;;  %v2124_v1 = vadd.f32 %v9914_v43, %v1754_v22  ;;  %v2499_v22 = vadd.f32 %v9921_v15, %v9919_v4  ;;  %v2500_v4 = vadd.f32 %v9931_v46, %v9929_v61  ;;  %v1762_v46 = vadd.f32 %v9830_v23, %v9826_v6 }
 0x243   : > { %v10130_v24 = vpop.f32.mrf.mxu0 }
 0x244   : > { %11233 = vst [vmem:[#allocation93_spill] sm:$0xff] %v10130_v24  ;;  %v2864_v24 = vadd.f32 %v2705_v10, %v2493_v29  ;;  %v2494_v19 = vadd.f32 %v9916_v20, %v2124_v1  ;;  %v10161_v29 = vpop.f32.mrf.mxu1 }
 0x245   : > { %v10132_v0 = vpop.f32.mrf.mxu0 }
 0x246   : > { %11234 = vst [vmem:[#allocation94_spill] sm:$0xff] %v10132_v0  ;;  %v2496_v0 = vadd.f32 %v9912_v55, %v9910_v2  ;;  %v3234_v43 = vadd.f32 %v3075_v21, %v2864_v24  ;;  %v2865_v3 = vadd.f32 %v2708_v25, %v2494_v19  ;;  %v2497_v2 = vadd.f32 %v9926_v11, %v9924_v42  ;;  %v10170_v1 = vpop.f32.mrf.mxu1 }
 0x247   : > { %v10140_v7 = vpop.f32.mrf.mxu0  ;;  %v2128_v55 = vadd.f32 %v9933_v33, %v1758_v27  ;;  %v2871_v42 = vadd.f32 %v10066_v18, %v2500_v4  ;;  %v2132_v19 = vadd.f32 %v9953_v40, %v1762_v46  ;;  %v9018_v27 = vld [vmem:[#allocation10 + $0xf0] sm:$0xff]  }
 0x248   : > { %11235 = vst [vmem:[#allocation95_spill] sm:$0xff] %v10140_v7  ;;  %v2867_v7 = vadd.f32 %v8279_v41, %v2496_v0  ;;  %v2870_v0 = vadd.f32 %v10060_v58, %v2499_v22  ;;  %v2868_v24 = vadd.f32 %v10064_v54, %v2497_v2  ;;  %v3235_v41 = vadd.f32 %v10062_v57, %v2865_v3  ;;  %v10184_v6 = vpop.f32.mrf.mxu1 }
 0x249   : > { %v10145_v37 = vpop.f32.mrf.mxu0  ;;  %v2498_v25 = vadd.f32 %v9935_v12, %v2128_v55  ;;  %v2503_v57 = vadd.f32 %v9940_v13, %v9938_v14  ;;  %v1030_v2 = vadd.f32 %v9753_v50, %v9751_v60  ;;  %v11236_v55 = vld [vmem:[#allocation21_spill] sm:$0xff]  ;;  %v11244_v60 = vld [vmem:[#allocation38_spill] sm:$0xff] }
 0x24a   : > { %v3237_v44 = vadd.f32 %v10058_v63, %v2867_v7  ;;  %v3240_v21 = vadd.f32 %v10068_v53, %v2870_v0  ;;  %v3238_v32 = vadd.f32 %v10074_v51, %v2868_v24  ;;  %v2501_v53 = vadd.f32 %v9945_v45, %v9943_v26  ;;  %v11239_v0 = vld [vmem:[#allocation32_spill] sm:$0xff] }
 0x24b   : > { %v10151_v62 = vpop.f32.mrf.mxu0  ;;  %v2869_v58 = vadd.f32 %v10070_v16, %v2498_v25  ;;  %v2874_v13 = vadd.f32 %v10072_v8, %v2503_v57  ;;  %v10192_v8 = vpop.f32.mrf.mxu1  ;;  %v11245_v25 = vld [vmem:[#allocation81_spill] sm:$0xff] }
 0x24c   : > { %v2872_v22 = vadd.f32 %v10076_v30, %v2501_v53 }
 0x24d   : > { %v8374_v31 = vpop.f32.mrf.mxu0  ;;  %v3239_v45 = vadd.f32 %v10086_v36, %v2869_v58  ;;  %v9020_v36 = vld [vmem:[#allocation10 + $0xe8] sm:$0xff]   ;;  %v10210_v46 = vpop.f32.mrf.mxu1 }
 0x24e   : > { %v3606_v34 = vadd.f32 %v8374_v31, %v3236_v9  ;;  %v3241_v9 = vadd.f32 %v10080_v5, %v2871_v42  ;;  %v2504_v31 = vadd.f32 %v9951_v38, %v9949_v52  ;;  %v3244_v38 = vadd.f32 %v10092_v49, %v2874_v13  ;;  %v11243_v42 = vld [vmem:[#allocation35_spill] sm:$0xff]  ;;  %v11248_v13 = vld [vmem:[#allocation36_spill] sm:$0xff] }
 0x24f   : > { %v3445_v20 = vpop.f32.mrf.mxu0 }
 0x250   : > { %v3702_v17 = vmax.f32 %v3606_v34, 0.0  ;;  %v3604_v28 = vadd.f32 %v3445_v20, %v3234_v43  ;;  %v2875_v43 = vadd.f32 %v10078_v48, %v2504_v31  ;;  %v2502_v34 = vadd.f32 %v9955_v59, %v2132_v19  ;;  %v11237_v48 = vld [vmem:[#allocation22_spill] sm:$0xff]  ;;  %v11241_v59 = vld [vmem:[#allocation72_spill] sm:$0xff]  ;;  %v9013_v19 = vld [vmem:[#allocation10 + $0xb0] sm:$0xff]  }
 0x251   : > { %v8375_v15 = vpop.f32.mrf.mxu0  ;;  %v1766_v20 = vadd.f32 %v11237_v48, %v11236_v55  ;;  %v11255_v48 = vld [vmem:[#allocation33_spill] sm:$0xff] }
 0x252   : > { %3735 = vst [vmem:[#allocation3 + $0x31] sm:$0xff] %v3702_v17  ;;  %v3700_v11 = vmax.f32 %v3604_v28, 0.0  ;;  %v3607_v33 = vadd.f32 %v8375_v15, %v3237_v44  ;;  %v11238_v44 = vld [vmem:[#allocation31_spill] sm:$0xff]  ;;  %v11240_v28 = vld [vmem:[#allocation78_spill] sm:$0xff]  ;;  %v2873_v24 = vadd.f32 %v11241_v59, %v2502_v34  ;;  %v11253_v34 = vld [vmem:[#allocation16_spill] sm:$0xff] }
 0x253   : > { %v3448_v7 = vpop.f32.mrf.mxu0  ;;  %v2136_v50 = vadd.f32 %v11244_v60, %v1766_v20  ;;  %v11256_v20 = vld [vmem:[#allocation39_spill] sm:$0xff] }
 0x254   : > { %3733 = vst [vmem:[#allocation3 + $0x19] sm:$0xff] %v3700_v11  ;;  %v3703_v10 = vmax.f32 %v3607_v33, 0.0  ;;  %v3605_v61 = vadd.f32 %v3448_v7, %v3235_v41  ;;  %v11242_v33 = vld [vmem:[#allocation34_spill] sm:$0xff] }
 0x255   : > { %v8378_v63 = vpop.f32.mrf.mxu0  ;;  %v2505_v7 = vadd.f32 %v11243_v42, %v11242_v33  ;;  %v11261_v42 = vld [vmem:[#allocation89_spill] sm:$0xff] }
 0x256   : > { %3736 = vst [vmem:[#allocation3 + $0x39] sm:$0xff] %v3703_v10  ;;  %v3701_v54 = vmax.f32 %v3605_v61, 0.0  ;;  %v3610_v18 = vadd.f32 %v8378_v63, %v3240_v21  ;;  %v4104_v12 = vpack.c.bf16 %v3703_v10, %v3702_v17  ;;  %v2507_v17 = vadd.f32 %v11239_v0, %v11238_v44  ;;  %v11246_v10 = vld [vmem:[#allocation73_spill] sm:$0xff] }
 0x257   : > { %v3461_v23 = vpop.f32.mrf.mxu0  ;;  %v3245_v21 = vadd.f32 %v11245_v25, %v2875_v43  ;;  %v2506_v44 = vadd.f32 %v11256_v20, %v2136_v50  ;;  %v11262_v50 = vld [vmem:[#allocation76_spill] sm:$0xff] }
 0x258   : > { %3734 = vst [vmem:[#allocation3 + $0x21] sm:$0xff] %v3701_v54  ;;  %v3706_v14 = vmax.f32 %v3610_v18, 0.0  ;;  %v3608_v51 = vadd.f32 %v3461_v23, %v3238_v32  ;;  %v4103_v16 = vpack.c.bf16 %v3701_v54, %v3700_v11  ;;  %v2878_v61 = vadd.f32 %v11246_v10, %v2507_v17 }
 0x259   : > { %v8379_v26 = vpop.f32.mrf.mxu0  ;;  %v2877_v25 = vadd.f32 %v11262_v50, %v2506_v44  ;;  %v11276_v50 = vld [vmem:[#allocation27_spill] sm:$0xff] }
 0x25a   : > { %3739 = vst [vmem:[#allocation3 + $0x61] sm:$0xff] %v3706_v14  ;;  %v3704_v40 = vmax.f32 %v3608_v51, 0.0  ;;  %v3611_v5 = vadd.f32 %v8379_v26, %v3241_v9  ;;  %8469 = vmatmul.mubr.bf16.vlgmr.msra.gmra.mxu0 %v4103_v16  ;;  %v11247_v9 = vld [vmem:[#allocation23_spill] sm:$0xff]  ;;  %v11250_v16 = vld [vmem:[#allocation74_spill] sm:$0xff]  ;;  %v3248_v0 = vadd.f32 %v10116_v35, %v2878_v61 }
 0x25b   : > { %v3464_v3 = vpop.f32.mrf.mxu0  ;;  %8472 = vmatprep.mubr.bf16.mxu0 %v4104_v12  ;;  %8549 = vmatpush3.bf16.msra.mxu0 %v10008_v39  ;;  %v3242_v39 = vadd.f32 %v11240_v28, %v2872_v22  ;;  %v3767_v32 = vld [vmem:[#allocation3 + $0x18] sm:$0xff]  ;;  %v3769_v12 = vld [vmem:[#allocation3 + $0x30] sm:$0xff]  ;;  %v1400_v23 = vadd.f32 %v11247_v9, %v1030_v2  ;;  %v2876_v31 = vadd.f32 %v11250_v16, %v2505_v7  ;;  %v10225_v2 = vpop.f32.mrf.mxu1  ;;  %v11267_v9 = vld [vmem:[#allocation77_spill] sm:$0xff] }
 0x25c   : > { %3737 = vst [vmem:[#allocation3 + $0x49] sm:$0xff] %v3704_v40  ;;  %v3707_v52 = vmax.f32 %v3611_v5, 0.0  ;;  %v3609_v30 = vadd.f32 %v3464_v3, %v3239_v45  ;;  %8550 = vmatprep.subr.bf16.mxu0 %v9018_v27  ;;  %v11252_v3 = vld [vmem:[#allocation15_spill] sm:$0xff] }
 0x25d   : > { %v8382_v4 = vpop.f32.mrf.mxu0  ;;  %v3770_v41 = vld [vmem:[#allocation3 + $0x38] sm:$0xff]  ;;  %v3246_v7 = vadd.f32 %v11261_v42, %v2876_v31 }
 0x25e   : > { %3740 = vst [vmem:[#allocation3 + $0x69] sm:$0xff] %v3707_v52  ;;  %v3705_v49 = vmax.f32 %v3609_v30, 0.0  ;;  %v3614_v15 = vadd.f32 %v8382_v4, %v3244_v38  ;;  %v4106_v11 = vpack.c.bf16 %v3707_v52, %v3706_v14  ;;  %v11249_v14 = vld [vmem:[#allocation37_spill] sm:$0xff]  ;;  %v10218_v26 = vpack.c.bf16 %v3770_v41, %v3769_v12  ;;  %v11254_v52 = vld [vmem:[#allocation75_spill] sm:$0xff]  ;;  %v11257_v4 = vld [vmem:[#allocation24_spill] sm:$0xff] }
 0x25f   : > { %v3477_v57 = vpop.f32.mrf.mxu0  ;;  %v3768_v63 = vld [vmem:[#allocation3 + $0x20] sm:$0xff]  ;;  %8551 = vmatpush3.bf16.msra.mxu0 %v9018_v27  ;;  %v2508_v51 = vadd.f32 %v11249_v14, %v11248_v13  ;;  %v11251_v27 = vld [vmem:[#allocation84_spill] sm:$0xff]  ;;  %v1034_v38 = vadd.f32 %v11253_v34, %v11252_v3  ;;  %v1770_v59 = vadd.f32 %v11257_v4, %v1400_v23  ;;  %v10242_v13 = vpop.f32.mrf.mxu1  ;;  %v11273_v4 = vld [vmem:[#allocation26_spill] sm:$0xff] }
 0x260   : > { %3738 = vst [vmem:[#allocation3 + $0x51] sm:$0xff] %v3705_v49  ;;  %v3710_v58 = vmax.f32 %v3614_v15, 0.0  ;;  %v3612_v54 = vadd.f32 %v3477_v57, %v3242_v39  ;;  %v10212_v18 = vpack.c.bf16 %v3768_v63, %v3767_v32  ;;  %v4105_v53 = vpack.c.bf16 %v3705_v49, %v3704_v40  ;;  %8552 = vmatprep.subr.bf16.mxu0 %v9020_v36  ;;  %v9021_v40 = vld [vmem:[#allocation10 + $0xe0] sm:$0xff]   ;;  %v9014_v39 = vld [vmem:[#allocation10 + $0xa8] sm:$0xff]   ;;  %v11260_v41 = vld [vmem:[#allocation41_spill] sm:$0xff] }
 0x261   : > { %v8383_v22 = vpop.f32.mrf.mxu0  ;;  %v3243_v45 = vadd.f32 %v11251_v27, %v2873_v24  ;;  %v2879_v30 = vadd.f32 %v11254_v52, %v2508_v51  ;;  %v11258_v24 = vld [vmem:[#allocation25_spill] sm:$0xff]  ;;  %v11259_v15 = vld [vmem:[#allocation40_spill] sm:$0xff]  ;;  %v11264_v57 = vld [vmem:[#allocation43_spill] sm:$0xff] }
 0x262   : > { %3743 = vst [vmem:[#allocation3 + $0x91] sm:$0xff] %v3710_v58  ;;  %v3708_v5 = vmax.f32 %v3612_v54, 0.0  ;;  %v3615_v43 = vadd.f32 %v8383_v22, %v3245_v21  ;;  %8421 = vmatmul.mubr.bf16.vlgmr.msra.gmra.mxu1 %v10212_v18  ;;  %8473 = vmatmul.mubr.bf16.gmra.mxu0 %v4105_v53  ;;  %v1404_v49 = vadd.f32 %v11258_v24, %v1034_v38  ;;  %v11265_v63 = vld [vmem:[#allocation46_spill] sm:$0xff]  ;;  %v11266_v12 = vld [vmem:[#allocation92_spill] sm:$0xff]  ;;  %v3773_v22 = vld [vmem:[#allocation3 + $0x60] sm:$0xff] }
 0x263   : > { %v3480_v55 = vpop.f32.mrf.mxu0  ;;  %8424 = vmatprep.mubr.bf16.mxu1 %v10218_v26  ;;  %8501 = vmatpush3.bf16.msra.mxu1 %v11255_v48  ;;  %v2511_v33 = vadd.f32 %v11260_v41, %v11259_v15  ;;  %v2140_v54 = vadd.f32 %v11265_v63, %v1770_v59  ;;  %v3249_v53 = vadd.f32 %v11266_v12, %v2879_v30  ;;  %v3771_v14 = vld [vmem:[#allocation3 + $0x48] sm:$0xff]  ;;  %v11269_v3 = vld [vmem:[#allocation45_spill] sm:$0xff]  ;;  %v11270_v38 = vld [vmem:[#allocation79_spill] sm:$0xff]  ;;  %v10257_v41 = vpop.f32.mrf.mxu1 }
 0x264   : > { %3741 = vst [vmem:[#allocation3 + $0x79] sm:$0xff] %v3708_v5  ;;  %v3711_v17 = vmax.f32 %v3615_v43, 0.0  ;;  %v3613_v28 = vadd.f32 %v3480_v55, %v3243_v45  ;;  %8502 = vmatprep.subr.bf16.mxu1 %v9013_v19  ;;  %8476 = vmatprep.mubr.bf16.mxu0 %v4106_v11  ;;  %v11263_v11 = vld [vmem:[#allocation42_spill] sm:$0xff]  ;;  %v11268_v43 = vld [vmem:[#allocation44_spill] sm:$0xff]  ;;  %v9015_v48 = vld [vmem:[#allocation10 + $0xa0] sm:$0xff]   ;;  %v1774_v59 = vadd.f32 %v11273_v4, %v1404_v49 }
 0x265   : > { %v8386_v60 = vpop.f32.mrf.mxu0  ;;  %8553 = vmatpush3.bf16.msra.mxu0 %v9020_v36  ;;  %v3774_v10 = vld [vmem:[#allocation3 + $0x68] sm:$0xff]  ;;  %v2509_v32 = vadd.f32 %v11264_v57, %v11263_v11  ;;  %v2882_v23 = vadd.f32 %v11267_v9, %v2511_v33  ;;  %v2512_v34 = vadd.f32 %v11269_v3, %v11268_v43  ;;  %v11274_v24 = vld [vmem:[#allocation80_spill] sm:$0xff]  ;;  %v9019_v4 = vld [vmem:[#allocation10 + $0x90] sm:$0xff]  }
 0x266   : > { %3744 = vst [vmem:[#allocation3 + $0x99] sm:$0xff] %v3711_v17  ;;  %v3709_v35 = vmax.f32 %v3613_v28, 0.0  ;;  %v3618_v21 = vadd.f32 %v8386_v60, %v3248_v0  ;;  %v4108_v61 = vpack.c.bf16 %v3711_v17, %v3710_v58  ;;  %8554 = vmatprep.subr.bf16.mxu0 %v9021_v40  ;;  %v9023_v45 = vld [vmem:[#allocation10 + $0xd8] sm:$0xff]   ;;  %v10249_v55 = vpack.c.bf16 %v3774_v10, %v3773_v22  ;;  %v11271_v0 = vld [vmem:[#allocation17_spill] sm:$0xff]  ;;  %v11277_v49 = vld [vmem:[#allocation48_spill] sm:$0xff] }
 0x267   : > { %v3493_v36 = vpop.f32.mrf.mxu0  ;;  %v3772_v51 = vld [vmem:[#allocation3 + $0x50] sm:$0xff]  ;;  %8503 = vmatpush3.bf16.msra.mxu1 %v9013_v19  ;;  %v2880_v52 = vadd.f32 %v11270_v38, %v2509_v32  ;;  %v3247_v19 = vadd.f32 %v10138_v56, %v2877_v25  ;;  %v11272_v17 = vld [vmem:[#allocation18_spill] sm:$0xff]  ;;  %v2883_v15 = vadd.f32 %v11274_v24, %v2512_v34  ;;  %v3252_v42 = vadd.f32 %v10149_v47, %v2882_v23 }
 0x268   : > { %3742 = vst [vmem:[#allocation3 + $0x81] sm:$0xff] %v3709_v35  ;;  %v3714_v16 = vmax.f32 %v3618_v21, 0.0  ;;  %v3616_v31 = vadd.f32 %v3493_v36, %v3246_v7  ;;  %v10244_v58 = vpack.c.bf16 %v3772_v51, %v3771_v14  ;;  %v4107_v27 = vpack.c.bf16 %v3709_v35, %v3708_v5  ;;  %8504 = vmatprep.subr.bf16.mxu1 %v9014_v39  ;;  %v9024_v5 = vld [vmem:[#allocation10 + $0xd0] sm:$0xff]   ;;  %v11275_v56 = vld [vmem:[#allocation47_spill] sm:$0xff]  ;;  %v9016_v57 = vld [vmem:[#allocation10 + $0x98] sm:$0xff]  }
 0x269   : > { %v8387_v30 = vpop.f32.mrf.mxu0  ;;  %8555 = vmatpush3.bf16.msra.mxu0 %v9021_v40  ;;  %v1038_v28 = vadd.f32 %v11272_v17, %v11271_v0  ;;  %v2510_v40 = vadd.f32 %v11275_v56, %v2140_v54  ;;  %v11278_v35 = vld [vmem:[#allocation49_spill] sm:$0xff]  ;;  %v3250_v10 = vadd.f32 %v10161_v29, %v2880_v52  ;;  %v11280_v12 = vld [vmem:[#allocation50_spill] sm:$0xff]  ;;  %v3253_v29 = vadd.f32 %v10170_v1, %v2883_v15  ;;  %v11283_v14 = vld [vmem:[#allocation83_spill] sm:$0xff] }
 0x26a   : > { %3747 = vst [vmem:[#allocation3 + $0xc1] sm:$0xff] %v3714_v16  ;;  %v3712_v20 = vmax.f32 %v3616_v31, 0.0  ;;  %v3619_v44 = vadd.f32 %v8387_v30, %v3249_v53  ;;  %8425 = vmatmul.mubr.bf16.gmra.mxu1 %v10244_v58  ;;  %8477 = vmatmul.mubr.bf16.gmra.mxu0 %v4107_v27  ;;  %v2515_v21 = vadd.f32 %v11278_v35, %v11277_v49  ;;  %v11281_v53 = vld [vmem:[#allocation51_spill] sm:$0xff]  ;;  %v11282_v23 = vld [vmem:[#allocation54_spill] sm:$0xff]  ;;  %v10274_v31 = vpop.f32.mrf.mxu1  ;;  %v9026_v52 = vld [vmem:[#allocation10 + $0xc8] sm:$0xff]  }
 0x26b   : > { %v3496_v33 = vpop.f32.mrf.mxu0  ;;  %8428 = vmatprep.mubr.bf16.mxu1 %v10249_v55  ;;  %8480 = vmatprep.mubr.bf16.mxu0 %v4108_v61  ;;  %v1408_v25 = vadd.f32 %v11276_v50, %v1038_v28  ;;  %v11279_v61 = vld [vmem:[#allocation82_spill] sm:$0xff]  ;;  %v2513_v9 = vadd.f32 %v11281_v53, %v11280_v12  ;;  %v2144_v36 = vadd.f32 %v11282_v23, %v1774_v59  ;;  %v3775_v27 = vld [vmem:[#allocation3 + $0x78] sm:$0xff]  ;;  %v3777_v34 = vld [vmem:[#allocation3 + $0x90] sm:$0xff] }
 0x26c   : > { %3745 = vst [vmem:[#allocation3 + $0xa9] sm:$0xff] %v3712_v20  ;;  %v3715_v7 = vmax.f32 %v3619_v44, 0.0  ;;  %v3617_v60 = vadd.f32 %v3496_v33, %v3247_v19  ;;  %8505 = vmatpush3.bf16.msra.mxu1 %v9014_v39  ;;  %8556 = vmatprep.subr.bf16.mxu0 %v9023_v45  ;;  %v2881_v32 = vadd.f32 %v11279_v61, %v2510_v40  ;;  %v11284_v30 = vld [vmem:[#allocation52_spill] sm:$0xff]  ;;  %v11285_v1 = vld [vmem:[#allocation53_spill] sm:$0xff]  ;;  %v10291_v50 = vpop.f32.mrf.mxu1  ;;  %v11295_v53 = vld [vmem:[#allocation87_spill] sm:$0xff] }
 0x26d   : > { %v8390_v11 = vpop.f32.mrf.mxu0  ;;  %8506 = vmatprep.subr.bf16.mxu1 %v9015_v48  ;;  %8557 = vmatpush3.bf16.msra.mxu0 %v9023_v45  ;;  %v3778_v54 = vld [vmem:[#allocation3 + $0x98] sm:$0xff]  ;;  %v2886_v51 = vadd.f32 %v11283_v14, %v2515_v21  ;;  %v2516_v19 = vadd.f32 %v11285_v1, %v11284_v30  ;;  %v11286_v44 = vld [vmem:[#allocation85_spill] sm:$0xff]  ;;  %v11297_v14 = vld [vmem:[#allocation59_spill] sm:$0xff] }
 0x26e   : > { %3748 = vst [vmem:[#allocation3 + $0xc9] sm:$0xff] %v3715_v7  ;;  %v10267_v47 = vmax.f32 %v3617_v60, 0.0  ;;  %v3622_v63 = vadd.f32 %v8390_v11, %v3252_v42  ;;  %v4110_v39 = vpack.c.bf16 %v3715_v7, %v3714_v16  ;;  %8558 = vmatprep.subr.bf16.mxu0 %v9024_v5  ;;  %v2884_v0 = vadd.f32 %v11286_v44, %v2513_v9  ;;  %v11288_v33 = vld [vmem:[#allocation20_spill] sm:$0xff]  ;;  %v11290_v7 = vld [vmem:[#allocation86_spill] sm:$0xff]  ;;  %v11292_v11 = vld [vmem:[#allocation29_spill] sm:$0xff] }
 0x26f   : > { %v3509_v22 = vpop.f32.mrf.mxu0  ;;  %v3776_v45 = vld [vmem:[#allocation3 + $0x80] sm:$0xff]  ;;  %v10283_v28 = vpack.c.bf16 %v3778_v54, %v3777_v34  ;;  %v3251_v59 = vadd.f32 %v10184_v6, %v2881_v32  ;;  %v11289_v40 = vld [vmem:[#allocation28_spill] sm:$0xff]  ;;  %v2887_v60 = vadd.f32 %v11290_v7, %v2516_v19  ;;  %v11291_v6 = vld [vmem:[#allocation55_spill] sm:$0xff]  ;;  %v3256_v35 = vadd.f32 %v10192_v8, %v2886_v51  ;;  %v10310_v34 = vpop.f32.mrf.mxu1 }
 0x270   : > { %3746 = vst [vmem:[#allocation3 + $0xb1] sm:$0xff] %v10267_v47  ;;  %v3718_v43 = vmax.f32 %v3622_v63, 0.0  ;;  %v3620_v3 = vadd.f32 %v3509_v22, %v3250_v10  ;;  %v10277_v16 = vpack.c.bf16 %v3776_v45, %v3775_v27  ;;  %v4109_v38 = vpack.c.bf16 %v10267_v47, %v3712_v20  ;;  %8507 = vmatpush3.bf16.msra.mxu1 %v9015_v48  ;;  %v9027_v48 = vld [vmem:[#allocation10 + $0xc0] sm:$0xff]   ;;  %v11293_v61 = vld [vmem:[#allocation56_spill] sm:$0xff]  ;;  %v11294_v32 = vld [vmem:[#allocation57_spill] sm:$0xff] }
 0x271   : > { %v8391_v17 = vpop.f32.mrf.mxu0  ;;  %8508 = vmatprep.subr.bf16.mxu1 %v9016_v57  ;;  %8559 = vmatpush3.bf16.msra.mxu0 %v9024_v5  ;;  %v11287_v20 = vld [vmem:[#allocation19_spill] sm:$0xff]  ;;  %v1778_v42 = vadd.f32 %v11289_v40, %v1408_v25  ;;  %v2514_v5 = vadd.f32 %v11291_v6, %v2144_v36  ;;  %v2519_v63 = vadd.f32 %v11294_v32, %v11293_v61  ;;  %v11298_v22 = vld [vmem:[#allocation62_spill] sm:$0xff]  ;;  %v11299_v45 = vld [vmem:[#allocation88_spill] sm:$0xff]  ;;  %v8354_v6 = vpop.f32.mrf.mxu1 }
 0x272   : > { %3751 = vst [vmem:[#allocation3 + $0xf1] sm:$0xff] %v3718_v43  ;;  %v3716_v24 = vmax.f32 %v3620_v3, 0.0  ;;  %v3623_v15 = vadd.f32 %v8391_v17, %v3253_v29  ;;  %8429 = vmatmul.mubr.bf16.gmra.mxu1 %v10277_v16  ;;  %8481 = vmatmul.mubr.bf16.gmra.mxu0 %v4109_v38  ;;  %v1042_v56 = vadd.f32 %v11288_v33, %v11287_v20  ;;  %v11296_v29 = vld [vmem:[#allocation58_spill] sm:$0xff] }
 0x273   : > { %v3512_v49 = vpop.f32.mrf.mxu0  ;;  %8432 = vmatprep.mubr.bf16.mxu1 %v10283_v28  ;;  %8484 = vmatprep.mubr.bf16.mxu0 %v4110_v39  ;;  %v3254_v54 = vadd.f32 %v10210_v46, %v2884_v0  ;;  %v9022_v39 = vld [vmem:[#allocation10 + $0x88] sm:$0xff]   ;;  %v2885_v9 = vadd.f32 %v11295_v53, %v2514_v5  ;;  %v2517_v51 = vadd.f32 %v11297_v14, %v11296_v29  ;;  %v10316_v17 = vld [vmem:[#allocation10 + $0x178] sm:$0xff]  }
 0x274   : > { %3749 = vst [vmem:[#allocation3 + $0xd9] sm:$0xff] %v3716_v24  ;;  %v10296_v21 = vmax.f32 %v3623_v15, 0.0  ;;  %v3621_v10 = vadd.f32 %v3512_v49, %v3251_v59  ;;  %8509 = vmatpush3.bf16.msra.mxu1 %v9016_v57  ;;  %8560 = vmatprep.subr.bf16.mxu0 %v9026_v52  ;;  %v1412_v25 = vadd.f32 %v11292_v11, %v1042_v56  ;;  %v11300_v59 = vld [vmem:[#allocation60_spill] sm:$0xff]  ;;  %v11302_v20 = vld [vmem:[#allocation90_spill] sm:$0xff] }
 0x275   : > { %v8394_v12 = vpop.f32.mrf.mxu0  ;;  %8510 = vmatprep.subr.bf16.mxu1 %v9019_v4  ;;  %8561 = vmatpush3.bf16.msra.mxu0 %v9026_v52  ;;  %v3782_v36 = vld [vmem:[#allocation3 + $0xc8] sm:$0xff]  ;;  %v2148_v27 = vadd.f32 %v11298_v22, %v1778_v42  ;;  %v3257_v46 = vadd.f32 %v10225_v2, %v2887_v60  ;;  %v2890_v3 = vadd.f32 %v11299_v45, %v2519_v63  ;;  %v11301_v2 = vld [vmem:[#allocation61_spill] sm:$0xff]  ;;  %v9025_v42 = vld [vmem:[#allocation10 + $0x80] sm:$0xff]  }
 0x276   : > { %3752 = vst [vmem:[#allocation3 + $0xf9] sm:$0xff] %v10296_v21  ;;  %v3717_v8 = vmax.f32 %v3621_v10, 0.0  ;;  %v3626_v23 = vadd.f32 %v8394_v12, %v3256_v35  ;;  %v4112_v57 = vpack.c.bf16 %v10296_v21, %v3718_v43  ;;  %8562 = vmatprep.subr.bf16.mxu0 %v9027_v48  ;;  %v3779_v52 = vld [vmem:[#allocation3 + $0xa8] sm:$0xff]  ;;  %v3781_v43 = vld [vmem:[#allocation3 + $0xc0] sm:$0xff]  ;;  %v2520_v15 = vadd.f32 %v11301_v2, %v11300_v59  ;;  %v11304_v35 = vld [vmem:[#allocation63_spill] sm:$0xff] }
 0x277   : > { %v3525_v38 = vpop.f32.mrf.mxu0  ;;  %v3780_v30 = vld [vmem:[#allocation3 + $0xb0] sm:$0xff]  ;;  %v2888_v33 = vadd.f32 %v11302_v20, %v2517_v51  ;;  %v10321_v40 = vpack.c.bf16 %v3782_v36, %v3781_v43  ;;  %v3255_v7 = vadd.f32 %v10242_v13, %v2885_v9  ;;  %v2518_v10 = vadd.f32 %v11304_v35, %v2148_v27  ;;  %v11305_v61 = vld [vmem:[#allocation30_spill] sm:$0xff]  ;;  %v11306_v63 = vld [vmem:[#allocation64_spill] sm:$0xff] }
 0x278   : > { %3750 = vst [vmem:[#allocation3 + $0xe1] sm:$0xff] %v3717_v8  ;;  %v3722_v1 = vmax.f32 %v3626_v23, 0.0  ;;  %v3624_v19 = vadd.f32 %v3525_v38, %v3254_v54  ;;  %v10312_v44 = vpack.c.bf16 %v3780_v30, %v3779_v52  ;;  %v10314_v0 = vpack.c.bf16 %v3717_v8, %v3716_v24  ;;  %8511 = vmatpush3.bf16.msra.mxu1 %v9019_v4  ;;  %v11303_v4 = vld [vmem:[#allocation91_spill] sm:$0xff]  ;;  %v11307_v54 = vld [vmem:[#allocation65_spill] sm:$0xff]  ;;  %v10337_v8 = vld [vmem:[#allocation10 + $0x138] sm:$0xff]  }
 0x279   : > { %v8395_v56 = vpop.f32.mrf.mxu0  ;;  %8512 = vmatprep.subr.bf16.mxu1 %v9022_v39  ;;  %8563 = vmatpush3.bf16.msra.mxu0 %v9027_v48  ;;  %v2891_v49 = vadd.f32 %v11303_v4, %v2520_v15  ;;  %v3260_v48 = vadd.f32 %v10257_v41, %v2890_v3  ;;  %v1782_v32 = vadd.f32 %v11305_v61, %v1412_v25  ;;  %v11308_v23 = vld [vmem:[#allocation93_spill] sm:$0xff]  ;;  %v11309_v14 = vld [vmem:[#allocation66_spill] sm:$0xff]  ;;  %v11310_v25 = vld [vmem:[#allocation67_spill] sm:$0xff]  ;;  %v3187_v3 = vpop.f32.mrf.mxu1 }
 0x27a   : > { %3755 = vst [vmem:[#allocation3 + $0x121] sm:$0xff] %v3722_v1  ;;  %v3720_v60 = vmax.f32 %v3624_v19, 0.0  ;;  %v3627_v24 = vadd.f32 %v8395_v56, %v3257_v46  ;;  %8433 = vmatmul.mubr.bf16.gmra.mxu1 %v10312_v44  ;;  %8485 = vmatmul.mubr.bf16.gmra.mxu0 %v10314_v0  ;;  %v2523_v12 = vadd.f32 %v11307_v54, %v11306_v63  ;;  %v11311_v22 = vld [vmem:[#allocation70_spill] sm:$0xff]  ;;  %v3785_v2 = vld [vmem:[#allocation3 + $0xf0] sm:$0xff]  ;;  %v11313_v15 = vld [vmem:[#allocation68_spill] sm:$0xff] }
 0x27b   : > { %v3528_v5 = vpop.f32.mrf.mxu0  ;;  %8436 = vmatprep.mubr.bf16.mxu1 %v10321_v40  ;;  %8488 = vmatprep.mubr.bf16.mxu0 %v4112_v57  ;;  %v3258_v53 = vadd.f32 %v10274_v31, %v2888_v33  ;;  %v2889_v41 = vadd.f32 %v11308_v23, %v2518_v10  ;;  %v2521_v51 = vadd.f32 %v11310_v25, %v11309_v14  ;;  %v11312_v46 = vld [vmem:[#allocation94_spill] sm:$0xff]  ;;  %v3783_v52 = vld [vmem:[#allocation3 + $0xd8] sm:$0xff]  ;;  %v11314_v20 = vld [vmem:[#allocation69_spill] sm:$0xff] }
 0x27c   : > { %3753 = vst [vmem:[#allocation3 + $0x109] sm:$0xff] %v3720_v60  ;;  %v10330_v13 = vmax.f32 %v3627_v24, 0.0  ;;  %v3625_v11 = vadd.f32 %v3528_v5, %v3255_v7  ;;  %8513 = vmatpush3.bf16.msra.mxu1 %v9022_v39  ;;  %8644 = vmatprep.subr.bf16.mxu0 %v10316_v17  ;;  %v2152_v27 = vadd.f32 %v11311_v22, %v1782_v32  ;;  %v11315_v56 = vld [vmem:[#allocation95_spill] sm:$0xff] }
 0x27d   : > { %v8398_v9 = vpop.f32.mrf.mxu0  ;;  %8514 = vmatprep.subr.bf16.mxu1 %v9025_v42  ;;  %v3786_v39 = vld [vmem:[#allocation3 + $0xf8] sm:$0xff]  ;;  %v3261_v31 = vadd.f32 %v10291_v50, %v2891_v49  ;;  %v2894_v45 = vadd.f32 %v11312_v46, %v2523_v12  ;;  %v2524_v33 = vadd.f32 %v11314_v20, %v11313_v15  ;;  %v2892_v50 = vadd.f32 %v11315_v56, %v2521_v51  ;;  %v11316_v10 = vld [vmem:[#allocation71_spill] sm:$0xff] }
 0x27e   : > { %3756 = vst [vmem:[#allocation3 + $0x129] sm:$0xff] %v10330_v13  ;;  %v3721_v36 = vmax.f32 %v3625_v11, 0.0  ;;  %v3630_v57 = vadd.f32 %v8398_v9, %v3260_v48  ;;  %v4114_v29 = vpack.c.bf16 %v10330_v13, %v3722_v1  ;;  %v10354_v24 = vpack.c.bf16 %v3786_v39, %v3785_v2 }
 0x27f   : > { %v3541_v38 = vpop.f32.mrf.mxu0  ;;  %v3784_v30 = vld [vmem:[#allocation3 + $0xe0] sm:$0xff]  ;;  %v3259_v4 = vadd.f32 %v10310_v34, %v2889_v41  ;;  %v2522_v48 = vadd.f32 %v11316_v10, %v2152_v27  ;;  %v3264_v11 = vadd.f32 %v8354_v6, %v2894_v45  ;;  %v3262_v32 = vadd.f32 %v3187_v3, %v2892_v50 }
 0x280   : > { %3754 = vst [vmem:[#allocation3 + $0x111] sm:$0xff] %v3721_v36  ;;  %v3726_v19 = vmax.f32 %v3630_v57, 0.0  ;;  %v3628_v43 = vadd.f32 %v3541_v38, %v3258_v53  ;;  %v10347_v59 = vpack.c.bf16 %v3784_v30, %v3783_v52  ;;  %v10349_v1 = vpack.c.bf16 %v3721_v36, %v3720_v60  ;;  %8515 = vmatpush3.bf16.msra.mxu1 %v9025_v42  ;;  %v8355_v60 = vpop.f32.mrf.mxu1  ;;  %v4440_v50 = vld [vmem:[#allocation3 + $0x2] sm:$0xff] }
 0x281   : > { %v8399_v7 = vpop.f32.mrf.mxu0  ;;  %8596 = vmatprep.subr.bf16.mxu1 %v10337_v8  ;;  %v2895_v42 = vadd.f32 %v10145_v37, %v2524_v33  ;;  %v2893_v54 = vadd.f32 %v10151_v62, %v2522_v48  ;;  %v3789_v25 = vld [vmem:[#allocation3 + $0x120] sm:$0xff]  ;;  %v4444_v48 = vld [vmem:[#allocation3 + $0x32] sm:$0xff] }
 0x282   : > { %3759 = vst [vmem:[#allocation3 + $0x151] sm:$0xff] %v3726_v19  ;;  %v3724_v49 = vmax.f32 %v3628_v43, 0.0  ;;  %v3631_v5 = vadd.f32 %v8399_v7, %v3261_v31  ;;  %8437 = vmatmul.mubr.bf16.gmra.mxu1 %v10347_v59  ;;  %8489 = vmatmul.mubr.bf16.gmra.mxu0 %v10349_v1  ;;  %v3190_v41 = vpop.f32.mrf.mxu1  ;;  %v4441_v7 = vld [vmem:[#allocation3 + $0xa] sm:$0xff]  ;;  %v4443_v10 = vld [vmem:[#allocation3 + $0x22] sm:$0xff] }
 0x283   : > { %v3544_v35 = vpop.f32.mrf.mxu0  ;;  %8440 = vmatprep.mubr.bf16.mxu1 %v10354_v24  ;;  %8492 = vmatprep.mubr.bf16.mxu0 %v4114_v29  ;;  %v3265_v23 = vadd.f32 %v8355_v60, %v2895_v42  ;;  %v3787_v57 = vld [vmem:[#allocation3 + $0x108] sm:$0xff]  ;;  %v3263_v27 = vadd.f32 %v3190_v41, %v2893_v54  ;;  %v9034_v60 = vld [vmem:[#allocation10 + $0x170] sm:$0xff]  }
 0x284   : > { %3757 = vst [vmem:[#allocation3 + $0x139] sm:$0xff] %v3724_v49  ;;  %v3727_v61 = vmax.f32 %v3631_v5, 0.0  ;;  %v3629_v34 = vadd.f32 %v3544_v35, %v3259_v4  ;;  %v4472_v5 = vpack.c.bf16 %v4441_v7, %v4440_v50  ;;  %v4442_v35 = vld [vmem:[#allocation3 + $0x1a] sm:$0xff]  ;;  %v4448_v54 = vld [vmem:[#allocation3 + $0x62] sm:$0xff] }
 0x285   : > { %v8402_v63 = vpop.f32.mrf.mxu0  ;;  %v3790_v9 = vld [vmem:[#allocation3 + $0x128] sm:$0xff] }
 0x286   : > { %3760 = vst [vmem:[#allocation3 + $0x159] sm:$0xff] %v3727_v61  ;;  %v3725_v12 = vmax.f32 %v3629_v34, 0.0  ;;  %v3634_v53 = vadd.f32 %v8402_v63, %v3264_v11  ;;  %v10364_v37 = vpack.c.bf16 %v3727_v61, %v3726_v19  ;;  %v10370_v22 = vpack.c.bf16 %v3790_v9, %v3789_v25  ;;  %v4445_v11 = vld [vmem:[#allocation3 + $0x3a] sm:$0xff]  ;;  %v4447_v63 = vld [vmem:[#allocation3 + $0x52] sm:$0xff]  ;;  %v4451_v41 = vld [vmem:[#allocation3 + $0x82] sm:$0xff] }
 0x287   : > { %v3557_v36 = vpop.f32.mrf.mxu0  ;;  %v3788_v39 = vld [vmem:[#allocation3 + $0x110] sm:$0xff]  ;;  %v10394_v61 = vpack.c.bf16 %v4443_v10, %v4442_v35  ;;  %v9029_v34 = vld [vmem:[#allocation10 + $0x130] sm:$0xff]  }
 0x288   : > { %3758 = vst [vmem:[#allocation3 + $0x141] sm:$0xff] %v3725_v12  ;;  %v3730_v6 = vmax.f32 %v3634_v53, 0.0  ;;  %v3632_v29 = vadd.f32 %v3557_v36, %v3262_v32  ;;  %v10366_v14 = vpack.c.bf16 %v3788_v39, %v3787_v57  ;;  %v10368_v51 = vpack.c.bf16 %v3725_v12, %v3724_v49  ;;  %v4449_v12 = vld [vmem:[#allocation3 + $0x6a] sm:$0xff]  ;;  %v4452_v57 = vld [vmem:[#allocation3 + $0x92] sm:$0xff]  ;;  %v4453_v39 = vld [vmem:[#allocation3 + $0x9a] sm:$0xff] }
 0x289   : > { %v8403_v62 = vpop.f32.mrf.mxu0  ;;  %v3793_v20 = vld [vmem:[#allocation3 + $0x150] sm:$0xff]  ;;  %v10396_v32 = vpack.c.bf16 %v4445_v11, %v4444_v48  ;;  %v10405_v9 = vpack.c.bf16 %v4449_v12, %v4448_v54  ;;  %v9032_v36 = vld [vmem:[#allocation10 + $0x118] sm:$0xff]   ;;  %v9035_v25 = vld [vmem:[#allocation10 + $0x110] sm:$0xff]  }
 0x28a   : > { %3763 = vst [vmem:[#allocation3 + $0x181] sm:$0xff] %v3730_v6  ;;  %v3728_v31 = vmax.f32 %v3632_v29, 0.0  ;;  %v3635_v46 = vadd.f32 %v8403_v62, %v3265_v23  ;;  %8441 = vmatmul.mubr.bf16.gmra.mxu1 %v10366_v14  ;;  %8493 = vmatmul.mubr.bf16.gmra.mxu0 %v10368_v51  ;;  %v9031_v23 = vld [vmem:[#allocation10 + $0x120] sm:$0xff]   ;;  %v9042_v29 = vld [vmem:[#allocation10 + $0x148] sm:$0xff]   ;;  %v9050_v12 = vld [vmem:[#allocation10 + $0x1f0] sm:$0xff]  }
 0x28b   : > { %v3560_v45 = vpop.f32.mrf.mxu0  ;;  %8444 = vmatprep.mubr.bf16.mxu1 %v10370_v22  ;;  %8496 = vmatprep.mubr.bf16.mxu0 %v10364_v37  ;;  %v3791_v43 = vld [vmem:[#allocation3 + $0x138] sm:$0xff]  ;;  %v4454_v62 = vld [vmem:[#allocation3 + $0xaa] sm:$0xff] }
 0x28c   : > { %3761 = vst [vmem:[#allocation3 + $0x169] sm:$0xff] %v3728_v31  ;;  %v3731_v3 = vmax.f32 %v3635_v46, 0.0  ;;  %v3633_v38 = vadd.f32 %v3560_v45, %v3263_v27  ;;  %v4455_v27 = vld [vmem:[#allocation3 + $0xb2] sm:$0xff]  ;;  %v4456_v46 = vld [vmem:[#allocation3 + $0xc2] sm:$0xff]  ;;  %v4457_v45 = vld [vmem:[#allocation3 + $0xca] sm:$0xff] }
 0x28d   : > { %v3794_v30 = vld [vmem:[#allocation3 + $0x158] sm:$0xff] }
 0x28e   : > { %3764 = vst [vmem:[#allocation3 + $0x189] sm:$0xff] %v3731_v3  ;;  %v3729_v52 = vmax.f32 %v3633_v38, 0.0  ;;  %v10376_v19 = vpack.c.bf16 %v3731_v3, %v3730_v6  ;;  %v10382_v56 = vpack.c.bf16 %v3794_v30, %v3793_v20  ;;  %v10419_v3 = vpack.c.bf16 %v4455_v27, %v4454_v62  ;;  %v9049_v38 = vld [vmem:[#allocation10 + $0x1f8] sm:$0xff]   ;;  %v4461_v20 = vld [vmem:[#allocation3 + $0xfa] sm:$0xff] }
 0x28f   : > { %v3792_v2 = vld [vmem:[#allocation3 + $0x140] sm:$0xff]  ;;  %v9055_v27 = vld [vmem:[#allocation10 + $0x1d8] sm:$0xff]  }
 0x290   : > { %3762 = vst [vmem:[#allocation3 + $0x171] sm:$0xff] %v3729_v52  ;;  %v10378_v15 = vpack.c.bf16 %v3792_v2, %v3791_v43  ;;  %v10380_v33 = vpack.c.bf16 %v3729_v52, %v3728_v31  ;;  %v9038_v31 = vld [vmem:[#allocation10 + $0x108] sm:$0xff]   ;;  %v9041_v52 = vld [vmem:[#allocation10 + $0x100] sm:$0xff]   ;;  %v4459_v30 = vld [vmem:[#allocation3 + $0xe2] sm:$0xff] }
 0x291   : > { %v9044_v43 = vld [vmem:[#allocation10 + $0x1b8] sm:$0xff]   ;;  %v4460_v2 = vld [vmem:[#allocation3 + $0xf2] sm:$0xff]  ;;  %v4840_v48 = vld [vmem:[#allocation3 + $0x180] sm:$0xff] }
 0x292   : > { %8445 = vmatmul.mubr.bf16.gmra.mxu1 %v10378_v15  ;;  %8497 = vmatmul.mubr.bf16.gmra.mxu0 %v10380_v33  ;;  %v10429_v7 = vpack.c.bf16 %v4461_v20, %v4460_v2  ;;  %v4467_v35 = vld [vmem:[#allocation3 + $0x142] sm:$0xff]  ;;  %v5188_v62 = vld [vmem:[#allocation3 + $0x79] sm:$0xff] }
 0x293   : > { %8448 = vmatprep.mubr.bf16.mxu1 %v10382_v56  ;;  %8564 = vmatprep.mubr.bf16.mxu0 %v10212_v18  ;;  %v3795_v4 = vld [vmem:[#allocation3 + $0x168] sm:$0xff]  ;;  %v9036_v18 = vld [vmem:[#allocation10 + $0x168] sm:$0xff]  }
 0x294   : > { %v5195_v2 = vld [vmem:[#allocation3 + $0xc9] sm:$0xff]  ;;  %v9054_v20 = vld [vmem:[#allocation10 + $0x188] sm:$0xff]  }
 0x295   : > { %v4841_v10 = vld [vmem:[#allocation3 + $0x188] sm:$0xff] }
 0x297   : > { %v3796_v49 = vld [vmem:[#allocation3 + $0x170] sm:$0xff] }
 0x298   : > { %v10388_v42 = vpack.c.bf16 %v3796_v49, %v3795_v4  ;;  %v4464_v4 = vld [vmem:[#allocation3 + $0x122] sm:$0xff]  ;;  %v4465_v49 = vld [vmem:[#allocation3 + $0x12a] sm:$0xff] }
 0x29a   : > { %8449 = vmatmul.mubr.bf16.gmra.mxu1 %v10388_v42  ;;  %8565 = vmatmul.mubr.bf16.vlgmr.msra.gmra.mxu0 %v10218_v26  ;;  %v9037_v26 = vld [vmem:[#allocation10 + $0x160] sm:$0xff]  }
 0x29b   : > { %8516 = vmatprep.mubr.bf16.mxu1 %v4472_v5  ;;  %8568 = vmatprep.mubr.bf16.mxu0 %v10244_v58  ;;  %v9030_v58 = vld [vmem:[#allocation10 + $0x128] sm:$0xff]  }
 0x29c   : > { %8645 = vmatpush3.bf16.msra.mxu0 %v10316_v17  ;;  %v4446_v17 = vld [vmem:[#allocation3 + $0x4a] sm:$0xff] }
 0x29d   : > { %8646 = vmatprep.subr.bf16.mxu0 %v9034_v60  ;;  %v10403_v53 = vpack.c.bf16 %v4447_v63, %v4446_v17  ;;  %v5180_v63 = vld [vmem:[#allocation3 + $0x19] sm:$0xff] }
 0x2a0   : > { %8647 = vmatpush3.bf16.msra.mxu0 %v9034_v60  ;;  %v10437_v60 = vpack.c.bf16 %v4465_v49, %v4464_v4  ;;  %v5581_v49 = vld [vmem:[#allocation3 + $0x18a] sm:$0xff] }
 0x2a1   : > { %8648 = vmatprep.subr.bf16.mxu0 %v9036_v18 }
 0x2a2   : > { %8517 = vmatmul.mubr.bf16.vlgmr.msra.gmra.mxu1 %v10394_v61  ;;  %8569 = vmatmul.mubr.bf16.gmra.mxu0 %v10249_v55  ;;  %v9039_v55 = vld [vmem:[#allocation10 + $0x158] sm:$0xff]  }
 0x2a3   : > { %8520 = vmatprep.mubr.bf16.mxu1 %v10396_v32  ;;  %8597 = vmatpush3.bf16.msra.mxu1 %v10337_v8  ;;  %v4450_v8 = vld [vmem:[#allocation3 + $0x7a] sm:$0xff] }
 0x2a4   : > { %8598 = vmatprep.subr.bf16.mxu1 %v9029_v34  ;;  %8572 = vmatprep.mubr.bf16.mxu0 %v10277_v16  ;;  %v9040_v16 = vld [vmem:[#allocation10 + $0x150] sm:$0xff]   ;;  %v10411_v6 = vpack.c.bf16 %v4451_v41, %v4450_v8  ;;  %v5184_v41 = vld [vmem:[#allocation3 + $0x49] sm:$0xff] }
 0x2a5   : > { %8649 = vmatpush3.bf16.msra.mxu0 %v9036_v18  ;;  %v4469_v18 = vld [vmem:[#allocation3 + $0x15a] sm:$0xff] }
 0x2a6   : > { %8650 = vmatprep.subr.bf16.mxu0 %v9037_v26 }
 0x2a7   : > { %8599 = vmatpush3.bf16.msra.mxu1 %v9029_v34  ;;  %v10445_v34 = vpack.c.bf16 %v4841_v10, %v4840_v48 }
 0x2a8   : > { %8600 = vmatprep.subr.bf16.mxu1 %v9030_v58 }
 0x2a9   : > { %8651 = vmatpush3.bf16.msra.mxu0 %v9037_v26 }
 0x2aa   : > { %8521 = vmatmul.mubr.bf16.gmra.mxu1 %v10403_v53  ;;  %8573 = vmatmul.mubr.bf16.gmra.mxu0 %v10283_v28  ;;  %v10413_v28 = vpack.c.bf16 %v4453_v39, %v4452_v57  ;;  %v5187_v39 = vld [vmem:[#allocation3 + $0x69] sm:$0xff] }
 0x2ab   : > { %8524 = vmatprep.mubr.bf16.mxu1 %v10405_v9  ;;  %8576 = vmatprep.mubr.bf16.mxu0 %v10312_v44  ;;  %v9043_v44 = vld [vmem:[#allocation10 + $0x140] sm:$0xff]  }
 0x2ac   : > { %8601 = vmatpush3.bf16.msra.mxu1 %v9030_v58  ;;  %8652 = vmatprep.subr.bf16.mxu0 %v9039_v55  ;;  %v5181_v58 = vld [vmem:[#allocation3 + $0x21] sm:$0xff] }
 0x2ad   : > { %8602 = vmatprep.subr.bf16.mxu1 %v9031_v23  ;;  %8653 = vmatpush3.bf16.msra.mxu0 %v9039_v55  ;;  %v5212_v54 = vpack.c.bf16 %v5181_v58, %v5180_v63  ;;  %v5183_v55 = vld [vmem:[#allocation3 + $0x39] sm:$0xff] }
 0x2ae   : > { %8654 = vmatprep.subr.bf16.mxu0 %v9040_v16  ;;  %v9062_v63 = vld [vmem:[#allocation10 + $0x228] sm:$0xff]  }
 0x2b0   : > { %8603 = vmatpush3.bf16.msra.mxu1 %v9031_v23  ;;  %v9052_v23 = vld [vmem:[#allocation10 + $0x1e8] sm:$0xff]  }
 0x2b1   : > { %8604 = vmatprep.subr.bf16.mxu1 %v9032_v36  ;;  %8655 = vmatpush3.bf16.msra.mxu0 %v9040_v16  ;;  %v5182_v16 = vld [vmem:[#allocation3 + $0x31] sm:$0xff] }
 0x2b2   : > { %8525 = vmatmul.mubr.bf16.gmra.mxu1 %v10411_v6  ;;  %8577 = vmatmul.mubr.bf16.gmra.mxu0 %v10321_v40  ;;  %v10421_v40 = vpack.c.bf16 %v4457_v45, %v4456_v46  ;;  %v10458_v8 = vpack.c.bf16 %v5183_v55, %v5182_v16  ;;  %v5191_v46 = vld [vmem:[#allocation3 + $0x99] sm:$0xff]  ;;  %v9048_v45 = vld [vmem:[#allocation10 + $0x198] sm:$0xff]   ;;  %v6302_v55 = vld [vmem:[#allocation3 + $0xb1] sm:$0xff] }
 0x2b3   : > { %8528 = vmatprep.mubr.bf16.mxu1 %v10413_v28  ;;  %8580 = vmatprep.mubr.bf16.mxu0 %v10347_v59  ;;  %v4458_v59 = vld [vmem:[#allocation3 + $0xda] sm:$0xff] }
 0x2b4   : > { %8605 = vmatpush3.bf16.msra.mxu1 %v9032_v36  ;;  %8656 = vmatprep.subr.bf16.mxu0 %v9042_v29  ;;  %v10427_v50 = vpack.c.bf16 %v4459_v30, %v4458_v59  ;;  %v9045_v36 = vld [vmem:[#allocation10 + $0x1b0] sm:$0xff]   ;;  %v9058_v30 = vld [vmem:[#allocation10 + $0x1c8] sm:$0xff]  }
 0x2b5   : > { %8606 = vmatprep.subr.bf16.mxu1 %v9035_v25  ;;  %8657 = vmatpush3.bf16.msra.mxu0 %v9042_v29  ;;  %v5189_v29 = vld [vmem:[#allocation3 + $0x81] sm:$0xff] }
 0x2b6   : > { %8658 = vmatprep.subr.bf16.mxu0 %v9043_v44 }
 0x2b8   : > { %8607 = vmatpush3.bf16.msra.mxu1 %v9035_v25  ;;  %v5186_v25 = vld [vmem:[#allocation3 + $0x61] sm:$0xff] }
 0x2b9   : > { %8608 = vmatprep.subr.bf16.mxu1 %v9038_v31  ;;  %8659 = vmatpush3.bf16.msra.mxu0 %v9043_v44  ;;  %v10466_v44 = vpack.c.bf16 %v5187_v39, %v5186_v25 }
 0x2ba   : > { %8529 = vmatmul.mubr.bf16.gmra.mxu1 %v10419_v3  ;;  %8581 = vmatmul.mubr.bf16.gmra.mxu0 %v10354_v24  ;;  %v4462_v24 = vld [vmem:[#allocation3 + $0x10a] sm:$0xff] }
 0x2bb   : > { %8532 = vmatprep.mubr.bf16.mxu1 %v10421_v40  ;;  %8584 = vmatprep.mubr.bf16.mxu0 %v10366_v14  ;;  %v4463_v14 = vld [vmem:[#allocation3 + $0x112] sm:$0xff] }
 0x2bc   : > { %8609 = vmatpush3.bf16.msra.mxu1 %v9038_v31  ;;  %8740 = vmatprep.subr.bf16.mxu0 %v9049_v38  ;;  %v10435_v5 = vpack.c.bf16 %v4463_v14, %v4462_v24  ;;  %v9047_v31 = vld [vmem:[#allocation10 + $0x1a0] sm:$0xff]   ;;  %v5194_v24 = vld [vmem:[#allocation3 + $0xc1] sm:$0xff] }
 0x2bd   : > { %8610 = vmatprep.subr.bf16.mxu1 %v9041_v52  ;;  %v9057_v14 = vld [vmem:[#allocation10 + $0x180] sm:$0xff]  }
 0x2c0   : > { %8611 = vmatpush3.bf16.msra.mxu1 %v9041_v52  ;;  %v5190_v52 = vld [vmem:[#allocation3 + $0x91] sm:$0xff] }
 0x2c1   : > { %8692 = vmatprep.subr.bf16.mxu1 %v9044_v43  ;;  %v10476_v59 = vpack.c.bf16 %v5191_v46, %v5190_v52  ;;  %v9064_v52 = vld [vmem:[#allocation10 + $0x218] sm:$0xff]  }
 0x2c2   : > { %8533 = vmatmul.mubr.bf16.gmra.mxu1 %v10427_v50  ;;  %8585 = vmatmul.mubr.bf16.gmra.mxu0 %v10370_v22  ;;  %v4466_v22 = vld [vmem:[#allocation3 + $0x13a] sm:$0xff] }
 0x2c3   : > { %8536 = vmatprep.mubr.bf16.mxu1 %v10429_v7  ;;  %8588 = vmatprep.mubr.bf16.mxu0 %v10378_v15  ;;  %v4468_v15 = vld [vmem:[#allocation3 + $0x152] sm:$0xff]  ;;  %v10443_v11 = vpack.c.bf16 %v4467_v35, %v4466_v22 }
 0x2c4   : > { %v10447_v26 = vpack.c.bf16 %v4469_v18, %v4468_v15  ;;  %v5924_v35 = vld [vmem:[#allocation3 + $0x50] sm:$0xff]  ;;  %v5923_v15 = vld [vmem:[#allocation3 + $0x48] sm:$0xff] }
 0x2c5   : > { %v5954_v18 = vpack.c.bf16 %v5924_v35, %v5923_v15  ;;  %v6310_v15 = vld [vmem:[#allocation3 + $0x111] sm:$0xff] }
 0x2ca   : > { %8537 = vmatmul.mubr.bf16.gmra.mxu1 %v10435_v5  ;;  %8589 = vmatmul.mubr.bf16.gmra.mxu0 %v10382_v56  ;;  %v4470_v56 = vld [vmem:[#allocation3 + $0x16a] sm:$0xff] }
 0x2cb   : > { %8540 = vmatprep.mubr.bf16.mxu1 %v10437_v60  ;;  %8592 = vmatprep.mubr.bf16.mxu0 %v10388_v42  ;;  %v4471_v42 = vld [vmem:[#allocation3 + $0x172] sm:$0xff] }
 0x2cc   : > { %v10453_v17 = vpack.c.bf16 %v4471_v42, %v4470_v56 }
 0x2d2   : > { %8541 = vmatmul.mubr.bf16.gmra.mxu1 %v10443_v11  ;;  %8593 = vmatmul.mubr.bf16.gmra.mxu0 %v10445_v34 }
 0x2d3   : > { %8544 = vmatprep.mubr.bf16.mxu1 %v10447_v26  ;;  %8660 = vmatprep.mubr.bf16.mxu0 %v10394_v61  ;;  %v5185_v61 = vld [vmem:[#allocation3 + $0x51] sm:$0xff] }
 0x2d4   : > { %v10460_v57 = vpack.c.bf16 %v5185_v61, %v5184_v41  ;;  %v5930_v61 = vld [vmem:[#allocation3 + $0x98] sm:$0xff] }
 0x2d5   : > { %v5927_v41 = vld [vmem:[#allocation3 + $0x78] sm:$0xff] }
 0x2da   : > { %8545 = vmatmul.mubr.bf16.gmra.mxu1 %v10453_v17  ;;  %8661 = vmatmul.mubr.bf16.vlgmr.msra.gmra.mxu0 %v10396_v32  ;;  %v9053_v32 = vld [vmem:[#allocation10 + $0x1e0] sm:$0xff]  }
 0x2db   : > { %8612 = vmatprep.mubr.bf16.mxu1 %v5212_v54  ;;  %8664 = vmatprep.mubr.bf16.mxu0 %v10403_v53  ;;  %v9046_v53 = vld [vmem:[#allocation10 + $0x1a8] sm:$0xff]  }
 0x2dc   : > { %8741 = vmatpush3.bf16.msra.mxu0 %v9049_v38  ;;  %v10474_v38 = vld [vmem:[#allocation3 + $0xa9] sm:$0xff] }
 0x2dd   : > { %8742 = vmatprep.subr.bf16.mxu0 %v9050_v12  ;;  %v6328_v39 = vpack.c.bf16 %v6302_v55, %v10474_v38 }
 0x2e0   : > { %8743 = vmatpush3.bf16.msra.mxu0 %v9050_v12  ;;  %v5928_v12 = vld [vmem:[#allocation3 + $0x80] sm:$0xff] }
 0x2e1   : > { %8744 = vmatprep.subr.bf16.mxu0 %v9052_v23 }
 0x2e2   : > { %8613 = vmatmul.mubr.bf16.vlgmr.msra.gmra.mxu1 %v10458_v8  ;;  %8665 = vmatmul.mubr.bf16.gmra.mxu0 %v10405_v9  ;;  %v10468_v9 = vpack.c.bf16 %v5189_v29, %v5188_v62 }
 0x2e3   : > { %8616 = vmatprep.mubr.bf16.mxu1 %v10460_v57  ;;  %8693 = vmatpush3.bf16.msra.mxu1 %v9044_v43  ;;  %v9051_v43 = vld [vmem:[#allocation10 + $0x190] sm:$0xff]  }
 0x2e4   : > { %8694 = vmatprep.subr.bf16.mxu1 %v9045_v36  ;;  %8668 = vmatprep.mubr.bf16.mxu0 %v10411_v6  ;;  %v9056_v6 = vld [vmem:[#allocation10 + $0x1d0] sm:$0xff]  }
 0x2e5   : > { %8745 = vmatpush3.bf16.msra.mxu0 %v9052_v23 }
 0x2e6   : > { %8746 = vmatprep.subr.bf16.mxu0 %v9053_v32 }
 0x2e7   : > { %8695 = vmatpush3.bf16.msra.mxu1 %v9045_v36 }
 0x2e8   : > { %8696 = vmatprep.subr.bf16.mxu1 %v9046_v53 }
 0x2e9   : > { %8747 = vmatpush3.bf16.msra.mxu0 %v9053_v32  ;;  %v5929_v32 = vld [vmem:[#allocation3 + $0x90] sm:$0xff] }
 0x2ea   : > { %8617 = vmatmul.mubr.bf16.gmra.mxu1 %v10466_v44  ;;  %8669 = vmatmul.mubr.bf16.gmra.mxu0 %v10413_v28  ;;  %v5218_v28 = vpack.c.bf16 %v10267_v47, %v10474_v38  ;;  %v10483_v47 = vpack.c.bf16 %v5195_v2, %v5194_v24  ;;  %v5957_v25 = vpack.c.bf16 %v5930_v61, %v5929_v32  ;;  %v6306_v38 = vld [vmem:[#allocation3 + $0xe1] sm:$0xff] }
 0x2eb   : > { %8620 = vmatprep.mubr.bf16.mxu1 %v10468_v9  ;;  %8672 = vmatprep.mubr.bf16.mxu0 %v10419_v3  ;;  %v9059_v3 = vld [vmem:[#allocation10 + $0x1c0] sm:$0xff]   ;;  %v5931_v2 = vld [vmem:[#allocation3 + $0xa8] sm:$0xff] }
 0x2ec   : > { %8697 = vmatpush3.bf16.msra.mxu1 %v9046_v53  ;;  %8748 = vmatprep.subr.bf16.mxu0 %v9055_v27 }
 0x2ed   : > { %8698 = vmatprep.subr.bf16.mxu1 %v9047_v31  ;;  %8749 = vmatpush3.bf16.msra.mxu0 %v9055_v27 }
 0x2ee   : > { %8750 = vmatprep.subr.bf16.mxu0 %v9056_v6 }
 0x2f0   : > { %8699 = vmatpush3.bf16.msra.mxu1 %v9047_v31 }
 0x2f1   : > { %8700 = vmatprep.subr.bf16.mxu1 %v9048_v45  ;;  %8751 = vmatpush3.bf16.msra.mxu0 %v9056_v6 }
 0x2f2   : > { %8621 = vmatmul.mubr.bf16.gmra.mxu1 %v10476_v59  ;;  %8673 = vmatmul.mubr.bf16.gmra.mxu0 %v10421_v40  ;;  %v10489_v40 = vld [vmem:[#allocation3 + $0xf1] sm:$0xff] }
 0x2f3   : > { %8624 = vmatprep.mubr.bf16.mxu1 %v5218_v28  ;;  %8676 = vmatprep.mubr.bf16.mxu0 %v10427_v50  ;;  %v9060_v50 = vld [vmem:[#allocation10 + $0x238] sm:$0xff]   ;;  %v5221_v4 = vpack.c.bf16 %v10296_v21, %v10489_v40 }
 0x2f4   : > { %8701 = vmatpush3.bf16.msra.mxu1 %v9048_v45  ;;  %8752 = vmatprep.subr.bf16.mxu0 %v9058_v30  ;;  %v5580_v21 = vld [vmem:[#allocation3 + $0x182] sm:$0xff]  ;;  %v5932_v45 = vld [vmem:[#allocation3 + $0xb0] sm:$0xff] }
 0x2f5   : > { %8702 = vmatprep.subr.bf16.mxu1 %v9051_v43  ;;  %8753 = vmatpush3.bf16.msra.mxu0 %v9058_v30  ;;  %v5934_v30 = vld [vmem:[#allocation3 + $0xc8] sm:$0xff] }
 0x2f6   : > { %8754 = vmatprep.subr.bf16.mxu0 %v9059_v3 }
 0x2f8   : > { %8703 = vmatpush3.bf16.msra.mxu1 %v9051_v43  ;;  %v6308_v43 = vld [vmem:[#allocation3 + $0xf9] sm:$0xff] }
 0x2f9   : > { %8704 = vmatprep.subr.bf16.mxu1 %v9054_v20  ;;  %8755 = vmatpush3.bf16.msra.mxu0 %v9059_v3 }
 0x2fa   : > { %8625 = vmatmul.mubr.bf16.gmra.mxu1 %v10483_v47  ;;  %8677 = vmatmul.mubr.bf16.gmra.mxu0 %v10429_v7 }
 0x2fb   : > { %8628 = vmatprep.mubr.bf16.mxu1 %v10314_v0  ;;  %8680 = vmatprep.mubr.bf16.mxu0 %v10435_v5  ;;  %v10496_v0 = vld [vmem:[#allocation3 + $0x121] sm:$0xff]  ;;  %v10503_v5 = vpack.c.bf16 %v5581_v49, %v5580_v21  ;;  %v6331_v49 = vpack.c.bf16 %v6308_v43, %v10489_v40 }
 0x2fc   : > { %8705 = vmatpush3.bf16.msra.mxu1 %v9054_v20  ;;  %v5223_v7 = vpack.c.bf16 %v10330_v13, %v10496_v0  ;;  %v5922_v13 = vld [vmem:[#allocation3 + $0x38] sm:$0xff] }
 0x2fd   : > { %8706 = vmatprep.subr.bf16.mxu1 %v9057_v14  ;;  %v6305_v20 = vld [vmem:[#allocation3 + $0xd9] sm:$0xff] }
 0x300   : > { %8707 = vmatpush3.bf16.msra.mxu1 %v9057_v14  ;;  %v5958_v14 = vpack.c.bf16 %v5932_v45, %v5931_v2 }
 0x301   : > { %8788 = vmatprep.subr.bf16.mxu1 %v9060_v50 }
 0x302   : > { %8629 = vmatmul.mubr.bf16.gmra.mxu1 %v5221_v4  ;;  %8681 = vmatmul.mubr.bf16.gmra.mxu0 %v10437_v60  ;;  %v6330_v4 = vpack.c.bf16 %v6306_v38, %v6305_v20  ;;  %v5939_v38 = vld [vmem:[#allocation3 + $0x108] sm:$0xff]  ;;  %v6315_v20 = vld [vmem:[#allocation3 + $0x151] sm:$0xff] }
 0x303   : > { %8632 = vmatprep.mubr.bf16.mxu1 %v10349_v1  ;;  %8684 = vmatprep.mubr.bf16.mxu0 %v10443_v11  ;;  %v5921_v1 = vld [vmem:[#allocation3 + $0x30] sm:$0xff]  ;;  %v9061_v11 = vld [vmem:[#allocation10 + $0x230] sm:$0xff]  }
 0x304   : > { %v5953_v60 = vpack.c.bf16 %v5922_v13, %v5921_v1  ;;  %v9065_v13 = vld [vmem:[#allocation10 + $0x210] sm:$0xff]  }
 0x30a   : > { %8633 = vmatmul.mubr.bf16.gmra.mxu1 %v5223_v7  ;;  %8685 = vmatmul.mubr.bf16.gmra.mxu0 %v10447_v26 }
 0x30b   : > { %8636 = vmatprep.mubr.bf16.mxu1 %v10368_v51  ;;  %8688 = vmatprep.mubr.bf16.mxu0 %v10453_v17 }
 0x312   : > { %8637 = vmatmul.mubr.bf16.gmra.mxu1 %v10364_v37  ;;  %8689 = vmatmul.mubr.bf16.gmra.mxu0 %v10503_v5  ;;  %v5926_v37 = vld [vmem:[#allocation3 + $0x68] sm:$0xff] }
 0x313   : > { %8640 = vmatprep.mubr.bf16.mxu1 %v10380_v33  ;;  %8756 = vmatprep.mubr.bf16.mxu0 %v10458_v8  ;;  %v5925_v33 = vld [vmem:[#allocation3 + $0x60] sm:$0xff] }
 0x314   : > { %v5955_v26 = vpack.c.bf16 %v5926_v37, %v5925_v33  ;;  %v5938_v33 = vld [vmem:[#allocation3 + $0xf8] sm:$0xff] }
 0x31a   : > { %8641 = vmatmul.mubr.bf16.gmra.mxu1 %v10376_v19  ;;  %v8470_v51 = vpop.f32.mrf.mxu0  ;;  %8757 = vmatmul.mubr.bf16.vlgmr.msra.gmra.mxu0 %v10460_v57  ;;  %v5956_v57 = vpack.c.bf16 %v5928_v12, %v5927_v41  ;;  %v9067_v41 = vld [vmem:[#allocation10 + $0x200] sm:$0xff]  }
 0x31b   : > { %8708 = vmatprep.mubr.bf16.mxu1 %v5953_v60  ;;  %8760 = vmatprep.mubr.bf16.mxu0 %v10466_v44  ;;  %v9063_v44 = vld [vmem:[#allocation10 + $0x220] sm:$0xff]  }
 0x31c   : > { %v4217_v22 = vpop.f32.mrf.mxu0 }
 0x31e   : > { %v8471_v10 = vpop.f32.mrf.mxu0 }
 0x320   : > { %v4220_v48 = vpop.f32.mrf.mxu0 }
 0x322   : > { %v8422_v56 = vpop.f32.mrf.mxu1  ;;  %8709 = vmatmul.mubr.bf16.vlgmr.msra.gmra.mxu1 %v5954_v18  ;;  %v8474_v42 = vpop.f32.mrf.mxu0  ;;  %8761 = vmatmul.mubr.bf16.gmra.mxu0 %v10468_v9  ;;  %v9066_v18 = vld [vmem:[#allocation10 + $0x208] sm:$0xff]  }
 0x323   : > { %v10513_v19 = vadd.f32 %v8470_v51, %v8422_v56  ;;  %8712 = vmatprep.mubr.bf16.mxu1 %v5955_v26  ;;  %8789 = vmatpush3.bf16.msra.mxu1 %v9060_v50  ;;  %v5935_v56 = vld [vmem:[#allocation3 + $0xd8] sm:$0xff] }
 0x324   : > { %v3911_v58 = vpop.f32.mrf.mxu1  ;;  %8790 = vmatprep.subr.bf16.mxu1 %v9061_v11  ;;  %8764 = vmatprep.mubr.bf16.mxu0 %v10476_v59  ;;  %v4233_v17 = vpop.f32.mrf.mxu0 }
 0x325   : > { %v10516_v54 = vadd.f32 %v4217_v22, %v3911_v58 }
 0x326   : > { %v8423_v23 = vpop.f32.mrf.mxu1  ;;  %v8475_v16 = vpop.f32.mrf.mxu0 }
 0x327   : > { %v10518_v8 = vadd.f32 %v8471_v10, %v8423_v23  ;;  %8791 = vmatpush3.bf16.msra.mxu1 %v9061_v11  ;;  %v5936_v10 = vld [vmem:[#allocation3 + $0xe0] sm:$0xff]  ;;  %v6312_v11 = vld [vmem:[#allocation3 + $0x129] sm:$0xff] }
 0x328   : > { %v3914_v36 = vpop.f32.mrf.mxu1  ;;  %v4236_v53 = vpop.f32.mrf.mxu0  ;;  %8792 = vmatprep.subr.bf16.mxu1 %v9062_v63 }
 0x329   : > { %v10521_v29 = vadd.f32 %v4220_v48, %v3914_v36 }
 0x32a   : > { %v8426_v62 = vpop.f32.mrf.mxu1  ;;  %8713 = vmatmul.mubr.bf16.gmra.mxu1 %v5956_v57  ;;  %v8478_v27 = vpop.f32.mrf.mxu0  ;;  %8765 = vmatmul.mubr.bf16.gmra.mxu0 %v6328_v39 }
 0x32b   : > { %v10523_v9 = vadd.f32 %v8474_v42, %v8426_v62  ;;  %8716 = vmatprep.mubr.bf16.mxu1 %v5957_v25  ;;  %8768 = vmatprep.mubr.bf16.mxu0 %v10483_v47  ;;  %v5933_v47 = vld [vmem:[#allocation3 + $0xc0] sm:$0xff]  ;;  %v6309_v42 = vld [vmem:[#allocation3 + $0x109] sm:$0xff] }
 0x32c   : > { %v3927_v31 = vpop.f32.mrf.mxu1  ;;  %8793 = vmatpush3.bf16.msra.mxu1 %v9062_v63  ;;  %v4249_v6 = vpop.f32.mrf.mxu0  ;;  %v5959_v21 = vpack.c.bf16 %v5934_v30, %v5933_v47  ;;  %v5937_v63 = vld [vmem:[#allocation3 + $0xf0] sm:$0xff]  ;;  %v6332_v55 = vpack.c.bf16 %v6310_v15, %v6309_v42  ;;  %v6314_v62 = vld [vmem:[#allocation3 + $0x141] sm:$0xff] }
 0x32d   : > { %v10526_v46 = vadd.f32 %v4233_v17, %v3927_v31  ;;  %8794 = vmatprep.subr.bf16.mxu1 %v9063_v44  ;;  %v5960_v17 = vpack.c.bf16 %v5936_v10, %v5935_v56  ;;  %v5961_v61 = vpack.c.bf16 %v5938_v33, %v5937_v63  ;;  %v5946_v10 = vld [vmem:[#allocation3 + $0x158] sm:$0xff]  ;;  %v5945_v42 = vld [vmem:[#allocation3 + $0x150] sm:$0xff]  ;;  %v6319_v63 = vld [vmem:[#allocation3 + $0x181] sm:$0xff] }
 0x32e   : > { %v8427_v59 = vpop.f32.mrf.mxu1  ;;  %v8479_v28 = vpop.f32.mrf.mxu0  ;;  %v5943_v33 = vld [vmem:[#allocation3 + $0x138] sm:$0xff] }
 0x32f   : > { %v10528_v3 = vadd.f32 %v8475_v16, %v8427_v59  ;;  %v6333_v16 = vpack.c.bf16 %v6312_v11, %v10496_v0  ;;  %v5942_v0 = vld [vmem:[#allocation3 + $0x128] sm:$0xff] }
 0x330   : > { %v3930_v24 = vpop.f32.mrf.mxu1  ;;  %v4252_v50 = vpop.f32.mrf.mxu0  ;;  %8795 = vmatpush3.bf16.msra.mxu1 %v9063_v44  ;;  %v5940_v44 = vld [vmem:[#allocation3 + $0x110] sm:$0xff] }
 0x331   : > { %v10530_v7 = vadd.f32 %v4236_v53, %v3930_v24  ;;  %8796 = vmatprep.subr.bf16.mxu1 %v9064_v52  ;;  %v5962_v30 = vpack.c.bf16 %v5940_v44, %v5939_v38 }
 0x332   : > { %v8430_v1 = vpop.f32.mrf.mxu1  ;;  %8717 = vmatmul.mubr.bf16.gmra.mxu1 %v5958_v14  ;;  %v8482_v60 = vpop.f32.mrf.mxu0  ;;  %8769 = vmatmul.mubr.bf16.gmra.mxu0 %v6330_v4 }
 0x333   : > { %v10533_v51 = vadd.f32 %v8478_v27, %v8430_v1  ;;  %8720 = vmatprep.mubr.bf16.mxu1 %v5959_v21  ;;  %8772 = vmatprep.mubr.bf16.mxu0 %v6331_v49 }
 0x334   : > { %v3943_v22 = vpop.f32.mrf.mxu1  ;;  %v4265_v35 = vpop.f32.mrf.mxu0  ;;  %8797 = vmatpush3.bf16.msra.mxu1 %v9064_v52  ;;  %v6313_v52 = vld [vmem:[#allocation3 + $0x139] sm:$0xff] }
 0x335   : > { %v10535_v37 = vadd.f32 %v4249_v6, %v3943_v22  ;;  %8798 = vmatprep.subr.bf16.mxu1 %v9065_v13  ;;  %v6316_v6 = vld [vmem:[#allocation3 + $0x159] sm:$0xff]  ;;  %v6334_v2 = vpack.c.bf16 %v6314_v62, %v6313_v52  ;;  %v6318_v22 = vld [vmem:[#allocation3 + $0x171] sm:$0xff]  ;;  %v5947_v52 = vld [vmem:[#allocation3 + $0x168] sm:$0xff] }
 0x336   : > { %v8431_v40 = vpop.f32.mrf.mxu1  ;;  %v8483_v48 = vpop.f32.mrf.mxu0  ;;  %v6335_v47 = vpack.c.bf16 %v6316_v6, %v6315_v20 }
 0x337   : > { %v10537_v26 = vadd.f32 %v8479_v28, %v8431_v40  ;;  %v5941_v28 = vld [vmem:[#allocation3 + $0x120] sm:$0xff] }
 0x338   : > { %v3946_v58 = vpop.f32.mrf.mxu1  ;;  %v4268_v12 = vpop.f32.mrf.mxu0  ;;  %8799 = vmatpush3.bf16.msra.mxu1 %v9065_v13  ;;  %v5963_v14 = vpack.c.bf16 %v5942_v0, %v5941_v28 }
 0x339   : > { %v10539_v23 = vadd.f32 %v4252_v50, %v3946_v58  ;;  %8800 = vmatprep.subr.bf16.mxu1 %v9066_v18 }
 0x33a   : > { %v8434_v36 = vpop.f32.mrf.mxu1  ;;  %8721 = vmatmul.mubr.bf16.gmra.mxu1 %v5960_v17  ;;  %v8486_v57 = vpop.f32.mrf.mxu0  ;;  %8773 = vmatmul.mubr.bf16.gmra.mxu0 %v6332_v55  ;;  %v5965_v55 = vpack.c.bf16 %v5946_v10, %v5945_v42  ;;  %v6662_v10 = vld [vmem:[#allocation3 + $0x3a] sm:$0xff] }
 0x33b   : > { %v10542_v32 = vadd.f32 %v8482_v60, %v8434_v36  ;;  %8724 = vmatprep.mubr.bf16.mxu1 %v5961_v61  ;;  %8776 = vmatprep.mubr.bf16.mxu0 %v6333_v16  ;;  %v5944_v60 = vld [vmem:[#allocation3 + $0x140] sm:$0xff] }
 0x33c   : > { %v3959_v53 = vpop.f32.mrf.mxu1  ;;  %v4281_v39 = vpop.f32.mrf.mxu0  ;;  %8801 = vmatpush3.bf16.msra.mxu1 %v9066_v18  ;;  %v6320_v18 = vld [vmem:[#allocation3 + $0x189] sm:$0xff]  ;;  %v5964_v56 = vpack.c.bf16 %v5944_v60, %v5943_v33  ;;  %v9069_v60 = vld [vmem:[#allocation2 + $0x8] sm:$0xff] }
 0x33d   : > { %v10544_v25 = vadd.f32 %v4265_v35, %v3959_v53  ;;  %8802 = vmatprep.subr.bf16.mxu1 %v9067_v41  ;;  %v6337_v61 = vpack.c.bf16 %v6320_v18, %v6319_v63  ;;  %v6322_v53 = vld [vmem:[#allocation3 + $0x1a1] sm:$0xff] }
 0x33e   : > { %v8435_v27 = vpop.f32.mrf.mxu1  ;;  %v8487_v31 = vpop.f32.mrf.mxu0 }
 0x33f   : > { %v10546_v45 = vadd.f32 %v8483_v48, %v8435_v27  ;;  %v6317_v48 = vld [vmem:[#allocation3 + $0x169] sm:$0xff] }
 0x340   : > { %v3962_v59 = vpop.f32.mrf.mxu1  ;;  %v4284_v43 = vpop.f32.mrf.mxu0  ;;  %8803 = vmatpush3.bf16.msra.mxu1 %v9067_v41  ;;  %v6336_v17 = vpack.c.bf16 %v6318_v22, %v6317_v48  ;;  %v5948_v27 = vld [vmem:[#allocation3 + $0x170] sm:$0xff] }
 0x341   : > { %v10548_v24 = vadd.f32 %v4268_v12, %v3962_v59 }
 0x342   : > { %v8438_v50 = vpop.f32.mrf.mxu1  ;;  %8725 = vmatmul.mubr.bf16.gmra.mxu1 %v5962_v30  ;;  %v8490_v4 = vpop.f32.mrf.mxu0  ;;  %8777 = vmatmul.mubr.bf16.gmra.mxu0 %v6334_v2  ;;  %v5966_v30 = vpack.c.bf16 %v5948_v27, %v5947_v52 }
 0x343   : > { %v10550_v21 = vadd.f32 %v8486_v57, %v8438_v50  ;;  %8728 = vmatprep.mubr.bf16.mxu1 %v5963_v14  ;;  %8780 = vmatprep.mubr.bf16.mxu0 %v6335_v47  ;;  %v6321_v57 = vld [vmem:[#allocation3 + $0x199] sm:$0xff] }
 0x344   : > { %v3975_v49 = vpop.f32.mrf.mxu1  ;;  %v4297_v13 = vpop.f32.mrf.mxu0  ;;  %v6338_v6 = vpack.c.bf16 %v6322_v53, %v6321_v57  ;;  %v5951_v47 = vld [vmem:[#allocation3 + $0x198] sm:$0xff]  ;;  %v6665_v57 = vld [vmem:[#allocation3 + $0x62] sm:$0xff]  ;;  %v6666_v53 = vld [vmem:[#allocation3 + $0x6a] sm:$0xff] }
 0x345   : > { %v10552_v1 = vadd.f32 %v4281_v39, %v3975_v49  ;;  %v5968_v22 = vpack.c.bf16 %v9069_v60, %v5951_v47  ;;  %v6695_v52 = vpack.c.bf16 %v6666_v53, %v6665_v57 }
 0x346   : > { %v8439_v35 = vpop.f32.mrf.mxu1  ;;  %v8491_v15 = vpop.f32.mrf.mxu0 }
 0x347   : > { %v10554_v40 = vadd.f32 %v8487_v31, %v8439_v35  ;;  %v6661_v35 = vld [vmem:[#allocation3 + $0x32] sm:$0xff] }
 0x348   : > { %v3978_v11 = vpop.f32.mrf.mxu1  ;;  %v4300_v58 = vpop.f32.mrf.mxu0 }
 0x349   : > { %v10556_v12 = vadd.f32 %v4284_v43, %v3978_v11 }
 0x34a   : > { %v8442_v16 = vpop.f32.mrf.mxu1  ;;  %8729 = vmatmul.mubr.bf16.gmra.mxu1 %v5964_v56  ;;  %v8494_v41 = vpop.f32.mrf.mxu0  ;;  %8781 = vmatmul.mubr.bf16.gmra.mxu0 %v6336_v17  ;;  %v6693_v56 = vpack.c.bf16 %v6662_v10, %v6661_v35  ;;  %v6670_v35 = vld [vmem:[#allocation3 + $0x9a] sm:$0xff] }
 0x34b   : > { %v10558_v36 = vadd.f32 %v8490_v4, %v8442_v16  ;;  %8732 = vmatprep.mubr.bf16.mxu1 %v5965_v55  ;;  %8784 = vmatprep.mubr.bf16.mxu0 %v6337_v61  ;;  %v6663_v61 = vld [vmem:[#allocation3 + $0x4a] sm:$0xff]  ;;  %v6664_v16 = vld [vmem:[#allocation3 + $0x52] sm:$0xff] }
 0x34c   : > { %v3991_v39 = vpop.f32.mrf.mxu1  ;;  %v4313_v44 = vpop.f32.mrf.mxu0 }
 0x34d   : > { %v10560_v62 = vadd.f32 %v4297_v13, %v3991_v39 }
 0x34e   : > { %v8443_v0 = vpop.f32.mrf.mxu1  ;;  %v8495_v31 = vpop.f32.mrf.mxu0 }
 0x34f   : > { %v10562_v38 = vadd.f32 %v8491_v15, %v8443_v0  ;;  %v6694_v0 = vpack.c.bf16 %v6664_v16, %v6663_v61 }
 0x350   : > { %v3994_v59 = vpop.f32.mrf.mxu1  ;;  %v4316_v28 = vpop.f32.mrf.mxu0 }
 0x351   : > { %v10564_v43 = vadd.f32 %v4300_v58, %v3994_v59 }
 0x352   : > { %v8446_v2 = vpop.f32.mrf.mxu1  ;;  %8733 = vmatmul.mubr.bf16.gmra.mxu1 %v5966_v30  ;;  %v8498_v20 = vpop.f32.mrf.mxu0  ;;  %8785 = vmatmul.mubr.bf16.gmra.mxu0 %v6338_v6 }
 0x353   : > { %v10566_v14 = vadd.f32 %v8494_v41, %v8446_v2  ;;  %8736 = vmatprep.mubr.bf16.mxu1 %v10445_v34 }
 0x354   : > { %v4007_v50 = vpop.f32.mrf.mxu1  ;;  %v4329_v4 = vpop.f32.mrf.mxu0 }
 0x355   : > { %v10569_v49 = vadd.f32 %v4313_v44, %v4007_v50 }
 0x356   : > { %v8447_v13 = vpop.f32.mrf.mxu1  ;;  %v8499_v15 = vpop.f32.mrf.mxu0 }
 0x357   : > { %v10571_v18 = vadd.f32 %v8495_v31, %v8447_v13  ;;  %v6668_v13 = vld [vmem:[#allocation3 + $0x82] sm:$0xff] }
 0x358   : > { %v4010_v33 = vpop.f32.mrf.mxu1  ;;  %v4332_v48 = vpop.f32.mrf.mxu0 }
 0x359   : > { %v10573_v11 = vadd.f32 %v4316_v28, %v4010_v33 }
 0x35a   : > { %v8450_v42 = vpop.f32.mrf.mxu1  ;;  %8737 = vmatmul.mubr.bf16.gmra.mxu1 %v5968_v22  ;;  %v8566_v34 = vpop.f32.mrf.mxu0  ;;  %v6669_v22 = vld [vmem:[#allocation3 + $0x92] sm:$0xff] }
 0x35b   : > { %v10575_v58 = vadd.f32 %v8498_v20, %v8450_v42  ;;  %8804 = vmatprep.mubr.bf16.mxu1 %v6693_v56 }
 0x35c   : > { %v4023_v17 = vpop.f32.mrf.mxu1  ;;  %v4957_v63 = vpop.f32.mrf.mxu0 }
 0x35d   : > { %v10577_v55 = vadd.f32 %v4329_v4, %v4023_v17  ;;  %v6667_v4 = vld [vmem:[#allocation3 + $0x7a] sm:$0xff]  ;;  %v6697_v17 = vpack.c.bf16 %v6670_v35, %v6669_v22 }
 0x35e   : > { %v8451_v41 = vpop.f32.mrf.mxu1  ;;  %v8567_v39 = vpop.f32.mrf.mxu0  ;;  %v6696_v56 = vpack.c.bf16 %v6668_v13, %v6667_v4 }
 0x35f   : > { %v10579_v44 = vadd.f32 %v8499_v15, %v8451_v41 }
 0x360   : > { %v4026_v27 = vpop.f32.mrf.mxu1  ;;  %v4960_v31 = vpop.f32.mrf.mxu0 }
 0x361   : > { %v10581_v6 = vadd.f32 %v4332_v48, %v4026_v27  ;;  %v6671_v27 = vld [vmem:[#allocation3 + $0xaa] sm:$0xff] }
 0x362   : > { %v8518_v59 = vpop.f32.mrf.mxu1  ;;  %8805 = vmatmul.mubr.bf16.vlgmr.msra.gmra.mxu1 %v6694_v0  ;;  %v8570_v30 = vpop.f32.mrf.mxu0 }
 0x363   : > { %v4748_v28 = vadd.f32 %v8518_v59, %v10513_v19  ;;  %8808 = vmatprep.mubr.bf16.mxu1 %v6695_v52  ;;  %v6673_v52 = vld [vmem:[#allocation3 + $0xc2] sm:$0xff] }
 0x364   : > { %v4587_v2 = vpop.f32.mrf.mxu1  ;;  %v4973_v20 = vpop.f32.mrf.mxu0 }
 0x365   : > { %v10584_v47 = vadd.f32 %v8566_v34, %v4748_v28  ;;  %v4746_v50 = vadd.f32 %v4587_v2, %v10516_v54 }
 0x366   : > { %v8519_v60 = vpop.f32.mrf.mxu1  ;;  %v8571_v10 = vpop.f32.mrf.mxu0 }
 0x367   : > { %v10587_v15 = vadd.f32 %v4957_v63, %v4746_v50  ;;  %v4749_v33 = vadd.f32 %v8519_v60, %v10518_v8 }
 0x368   : > { %v4590_v48 = vpop.f32.mrf.mxu1  ;;  %v4976_v19 = vpop.f32.mrf.mxu0 }
 0x369   : > { %v10590_v42 = vadd.f32 %v8567_v39, %v4749_v33  ;;  %v4747_v34 = vadd.f32 %v4590_v48, %v10521_v29  ;;  %v6672_v39 = vld [vmem:[#allocation3 + $0xb2] sm:$0xff]  ;;  %v6674_v29 = vld [vmem:[#allocation3 + $0xca] sm:$0xff] }
 0x36a   : > { %v8522_v61 = vpop.f32.mrf.mxu1  ;;  %8809 = vmatmul.mubr.bf16.gmra.mxu1 %v6696_v56  ;;  %v8574_v54 = vpop.f32.mrf.mxu0  ;;  %v6698_v50 = vpack.c.bf16 %v6672_v39, %v6671_v27  ;;  %v6699_v13 = vpack.c.bf16 %v6674_v29, %v6673_v52  ;;  %v6675_v56 = vld [vmem:[#allocation3 + $0xda] sm:$0xff] }
 0x36b   : > { %v10593_v16 = vadd.f32 %v4960_v31, %v4747_v34  ;;  %v4752_v41 = vadd.f32 %v8522_v61, %v10523_v9  ;;  %8812 = vmatprep.mubr.bf16.mxu1 %v6697_v17  ;;  %v6677_v17 = vld [vmem:[#allocation3 + $0xf2] sm:$0xff] }
 0x36c   : > { %v4603_v63 = vpop.f32.mrf.mxu1  ;;  %v4989_v57 = vpop.f32.mrf.mxu0 }
 0x36d   : > { %v10596_v53 = vadd.f32 %v8570_v30, %v4752_v41  ;;  %v4750_v8 = vadd.f32 %v4603_v63, %v10526_v46 }
 0x36e   : > { %v8523_v0 = vpop.f32.mrf.mxu1  ;;  %v8575_v59 = vpop.f32.mrf.mxu0 }
 0x36f   : > { %v10599_v28 = vadd.f32 %v4973_v20, %v4750_v8  ;;  %v4753_v31 = vadd.f32 %v8523_v0, %v10528_v3 }
 0x370   : > { %v4606_v2 = vpop.f32.mrf.mxu1  ;;  %v4992_v9 = vpop.f32.mrf.mxu0 }
 0x371   : > { %v10602_v4 = vadd.f32 %v8571_v10, %v4753_v31  ;;  %v4751_v30 = vadd.f32 %v4606_v2, %v10530_v7  ;;  %v6676_v10 = vld [vmem:[#allocation3 + $0xe2] sm:$0xff]  ;;  %v6678_v7 = vld [vmem:[#allocation3 + $0xfa] sm:$0xff] }
 0x372   : > { %v8526_v60 = vpop.f32.mrf.mxu1  ;;  %8813 = vmatmul.mubr.bf16.gmra.mxu1 %v6698_v50  ;;  %v8578_v46 = vpop.f32.mrf.mxu0  ;;  %v6700_v8 = vpack.c.bf16 %v6676_v10, %v6675_v56  ;;  %v6701_v39 = vpack.c.bf16 %v6678_v7, %v6677_v17  ;;  %v6679_v50 = vld [vmem:[#allocation3 + $0x10a] sm:$0xff] }
 0x373   : > { %v10605_v22 = vadd.f32 %v4976_v19, %v4751_v30  ;;  %v4756_v35 = vadd.f32 %v8526_v60, %v10533_v51  ;;  %8816 = vmatprep.mubr.bf16.mxu1 %v6699_v13  ;;  %v6681_v13 = vld [vmem:[#allocation3 + $0x122] sm:$0xff] }
 0x374   : > { %v4619_v20 = vpop.f32.mrf.mxu1  ;;  %v5005_v33 = vpop.f32.mrf.mxu0 }
 0x375   : > { %v10608_v48 = vadd.f32 %v8574_v54, %v4756_v35  ;;  %v4754_v3 = vadd.f32 %v4619_v20, %v10535_v37 }
 0x376   : > { %v8527_v34 = vpop.f32.mrf.mxu1  ;;  %v8579_v61 = vpop.f32.mrf.mxu0 }
 0x377   : > { %v10611_v41 = vadd.f32 %v4989_v57, %v4754_v3  ;;  %v4757_v19 = vadd.f32 %v8527_v34, %v10537_v26 }
 0x378   : > { %v4622_v63 = vpop.f32.mrf.mxu1  ;;  %v5008_v51 = vpop.f32.mrf.mxu0 }
 0x379   : > { %v10614_v27 = vadd.f32 %v8575_v59, %v4757_v19  ;;  %v4755_v54 = vadd.f32 %v4622_v63, %v10539_v23  ;;  %v6680_v59 = vld [vmem:[#allocation3 + $0x112] sm:$0xff]  ;;  %v6682_v23 = vld [vmem:[#allocation3 + $0x12a] sm:$0xff] }
 0x37a   : > { %v8530_v0 = vpop.f32.mrf.mxu1  ;;  %8817 = vmatmul.mubr.bf16.gmra.mxu1 %v6700_v8  ;;  %v8582_v37 = vpop.f32.mrf.mxu0  ;;  %v6702_v3 = vpack.c.bf16 %v6680_v59, %v6679_v50  ;;  %v6703_v10 = vpack.c.bf16 %v6682_v23, %v6681_v13  ;;  %v6683_v8 = vld [vmem:[#allocation3 + $0x13a] sm:$0xff] }
 0x37b   : > { %v10617_v52 = vadd.f32 %v4992_v9, %v4755_v54  ;;  %v4760_v29 = vadd.f32 %v8530_v0, %v10542_v32  ;;  %8820 = vmatprep.mubr.bf16.mxu1 %v6701_v39  ;;  %v6685_v39 = vld [vmem:[#allocation3 + $0x152] sm:$0xff] }
 0x37c   : > { %v4635_v57 = vpop.f32.mrf.mxu1  ;;  %v5021_v31 = vpop.f32.mrf.mxu0 }
 0x37d   : > { %v10620_v2 = vadd.f32 %v8578_v46, %v4760_v29  ;;  %v4758_v26 = vadd.f32 %v4635_v57, %v10544_v25 }
 0x37e   : > { %v8531_v30 = vpop.f32.mrf.mxu1  ;;  %v8583_v60 = vpop.f32.mrf.mxu0 }
 0x37f   : > { %v10623_v35 = vadd.f32 %v5005_v33, %v4758_v26  ;;  %v4761_v9 = vadd.f32 %v8531_v30, %v10546_v45 }
 0x380   : > { %v4638_v20 = vpop.f32.mrf.mxu1  ;;  %v5024_v32 = vpop.f32.mrf.mxu0 }
 0x381   : > { %v10626_v56 = vadd.f32 %v8579_v61, %v4761_v9  ;;  %v4759_v46 = vadd.f32 %v4638_v20, %v10548_v24  ;;  %v6684_v61 = vld [vmem:[#allocation3 + $0x142] sm:$0xff]  ;;  %v6686_v24 = vld [vmem:[#allocation3 + $0x15a] sm:$0xff] }
 0x382   : > { %v8534_v34 = vpop.f32.mrf.mxu1  ;;  %8821 = vmatmul.mubr.bf16.gmra.mxu1 %v6702_v3  ;;  %v8586_v25 = vpop.f32.mrf.mxu0  ;;  %v6704_v26 = vpack.c.bf16 %v6684_v61, %v6683_v8  ;;  %v6705_v59 = vpack.c.bf16 %v6686_v24, %v6685_v39  ;;  %v6687_v3 = vld [vmem:[#allocation3 + $0x16a] sm:$0xff] }
 0x383   : > { %v10629_v17 = vadd.f32 %v5008_v51, %v4759_v46  ;;  %v4764_v7 = vadd.f32 %v8534_v34, %v10550_v21  ;;  %8824 = vmatprep.mubr.bf16.mxu1 %v6703_v10 }
 0x384   : > { %v4651_v33 = vpop.f32.mrf.mxu1  ;;  %v5037_v19 = vpop.f32.mrf.mxu0 }
 0x385   : > { %v10632_v63 = vadd.f32 %v8582_v37, %v4764_v7  ;;  %v4762_v45 = vadd.f32 %v4651_v33, %v10552_v1 }
 0x386   : > { %v8535_v54 = vpop.f32.mrf.mxu1  ;;  %v8587_v0 = vpop.f32.mrf.mxu0 }
 0x387   : > { %v10635_v29 = vadd.f32 %v5021_v31, %v4762_v45  ;;  %v4765_v51 = vadd.f32 %v8535_v54, %v10554_v40  ;;  %v6692_v54 = vld [vmem:[#allocation3 + $0x1a2] sm:$0xff] }
 0x388   : > { %v4654_v57 = vpop.f32.mrf.mxu1  ;;  %v5040_v21 = vpop.f32.mrf.mxu0 }
 0x389   : > { %v10638_v50 = vadd.f32 %v8583_v60, %v4765_v51  ;;  %v4763_v37 = vadd.f32 %v4654_v57, %v10556_v12  ;;  %v6688_v60 = vld [vmem:[#allocation3 + $0x172] sm:$0xff] }
 0x38a   : > { %v8538_v30 = vpop.f32.mrf.mxu1  ;;  %8825 = vmatmul.mubr.bf16.gmra.mxu1 %v6704_v26  ;;  %v8590_v1 = vpop.f32.mrf.mxu0 }
 0x38b   : > { %v10641_v13 = vadd.f32 %v5024_v32, %v4763_v37  ;;  %v4768_v23 = vadd.f32 %v8538_v30, %v10558_v36  ;;  %8828 = vmatprep.mubr.bf16.mxu1 %v6705_v59  ;;  %v6706_v32 = vpack.c.bf16 %v6688_v60, %v6687_v3 }
 0x38c   : > { %v4667_v31 = vpop.f32.mrf.mxu1  ;;  %v5053_v9 = vpop.f32.mrf.mxu0 }
 0x38d   : > { %v10644_v20 = vadd.f32 %v8586_v25, %v4768_v23  ;;  %v4766_v40 = vadd.f32 %v4667_v31, %v10560_v62 }
 0x38e   : > { %v8539_v46 = vpop.f32.mrf.mxu1  ;;  %v8591_v10 = vpop.f32.mrf.mxu0 }
 0x38f   : > { %v10647_v12 = vadd.f32 %v5037_v19, %v4766_v40  ;;  %v4769_v34 = vadd.f32 %v8539_v46, %v10562_v38  ;;  %v6691_v19 = vld [vmem:[#allocation3 + $0x19a] sm:$0xff] }
 0x390   : > { %v4670_v7 = vpop.f32.mrf.mxu1  ;;  %v5056_v33 = vpop.f32.mrf.mxu0  ;;  %v6708_v57 = vpack.c.bf16 %v6692_v54, %v6691_v19 }
 0x391   : > { %v10650_v45 = vadd.f32 %v8587_v0, %v4769_v34  ;;  %v4767_v36 = vadd.f32 %v4670_v7, %v10564_v43 }
 0x392   : > { %v8542_v8 = vpop.f32.mrf.mxu1  ;;  %8829 = vmatmul.mubr.bf16.gmra.mxu1 %v6706_v32  ;;  %v8594_v25 = vpop.f32.mrf.mxu0 }
 0x393   : > { %v10653_v61 = vadd.f32 %v5040_v21, %v4767_v36  ;;  %v4772_v62 = vadd.f32 %v8542_v8, %v10566_v14  ;;  %8832 = vmatprep.mubr.bf16.mxu1 %v10503_v5 }
 0x394   : > { %v4683_v39 = vpop.f32.mrf.mxu1  ;;  %v5069_v38 = vpop.f32.mrf.mxu0 }
 0x395   : > { %v10657_v24 = vadd.f32 %v8590_v1, %v4772_v62  ;;  %v4770_v0 = vadd.f32 %v4683_v39, %v10569_v49 }
 0x396   : > { %v8543_v51 = vpop.f32.mrf.mxu1  ;;  %v8595_v43 = vpop.f32.mrf.mxu0 }
 0x397   : > { %v10660_v26 = vadd.f32 %v5053_v9, %v4770_v0  ;;  %v4773_v21 = vadd.f32 %v8543_v51, %v10571_v18 }
 0x398   : > { %v4686_v37 = vpop.f32.mrf.mxu1  ;;  %v5072_v59 = vpop.f32.mrf.mxu0 }
 0x399   : > { %v10663_v14 = vadd.f32 %v8591_v10, %v4773_v21  ;;  %v4771_v5 = vadd.f32 %v4686_v37, %v10573_v11 }
 0x39a   : > { %v8546_v30 = vpop.f32.mrf.mxu1  ;;  %8833 = vmatmul.mubr.bf16.gmra.mxu1 %v6708_v57  ;;  %v10666_v23 = vpop.f32.mrf.mxu0 }
 0x39b   : > { %v10668_v1 = vadd.f32 %v5056_v33, %v4771_v5  ;;  %v4776_v49 = vadd.f32 %v8546_v30, %v10575_v58 }
 0x39c   : > { %v4699_v31 = vpop.f32.mrf.mxu1  ;;  %v10671_v40 = vpop.f32.mrf.mxu0 }
 0x39d   : > { %v10673_v9 = vadd.f32 %v8594_v25, %v4776_v49  ;;  %v4774_v18 = vadd.f32 %v4699_v31, %v10577_v55 }
 0x39e   : > { %v8547_v3 = vpop.f32.mrf.mxu1  ;;  %v10676_v60 = vpop.f32.mrf.mxu0 }
 0x39f   : > { %v10678_v46 = vadd.f32 %v5069_v38, %v4774_v18  ;;  %v4777_v11 = vadd.f32 %v8547_v3, %v10579_v44 }
 0x3a0   : > { %v4702_v10 = vpop.f32.mrf.mxu1  ;;  %v10681_v34 = vpop.f32.mrf.mxu0 }
 0x3a1   : > { %v10683_v7 = vadd.f32 %v8595_v43, %v4777_v11  ;;  %v4775_v58 = vadd.f32 %v4702_v10, %v10581_v6 }
 0x3a2   : > { %v8614_v32 = vpop.f32.mrf.mxu1  ;;  %v10686_v33 = vpop.f32.mrf.mxu0 }
 0x3a3   : > { %v10688_v36 = vadd.f32 %v5072_v59, %v4775_v58  ;;  %v10691_v55 = vadd.f32 %v8614_v32, %v10584_v47 }
 0x3a4   : > { %v5327_v8 = vpop.f32.mrf.mxu1  ;;  %v10693_v25 = vpop.f32.mrf.mxu0 }
 0x3a5   : > { %v10696_v44 = vadd.f32 %v5327_v8, %v10587_v15 }
 0x3a6   : > { %v8615_v62 = vpop.f32.mrf.mxu1  ;;  %v10698_v19 = vpop.f32.mrf.mxu0 }
 0x3a7   : > { %v10701_v54 = vadd.f32 %v8615_v62, %v10590_v42 }
 0x3a8   : > { %v5330_v6 = vpop.f32.mrf.mxu1  ;;  %v10703_v39 = vpop.f32.mrf.mxu0 }
 0x3a9   : > { %v10706_v38 = vadd.f32 %v5330_v6, %v10593_v16 }
 0x3aa   : > { %v8618_v47 = vpop.f32.mrf.mxu1  ;;  %v10708_v0 = vpop.f32.mrf.mxu0 }
 0x3ab   : > { %v10711_v51 = vadd.f32 %v8618_v47, %v10596_v53 }
 0x3ac   : > { %v5343_v15 = vpop.f32.mrf.mxu1  ;;  %v10713_v57 = vpop.f32.mrf.mxu0 }
 0x3ad   : > { %v10716_v43 = vadd.f32 %v5343_v15, %v10599_v28 }
 0x3ae   : > { %v8619_v42 = vpop.f32.mrf.mxu1  ;;  %v10718_v21 = vpop.f32.mrf.mxu0 }
 0x3af   : > { %v10721_v37 = vadd.f32 %v8619_v42, %v10602_v4 }
 0x3b0   : > { %v5346_v16 = vpop.f32.mrf.mxu1  ;;  %v10723_v59 = vpop.f32.mrf.mxu0 }
 0x3b1   : > { %v10726_v5 = vadd.f32 %v5346_v16, %v10605_v22 }
 0x3b2   : > { %v8622_v53 = vpop.f32.mrf.mxu1  ;;  %v10728_v30 = vpop.f32.mrf.mxu0 }
 0x3b3   : > { %v10731_v49 = vadd.f32 %v8622_v53, %v10608_v48 }
 0x3b4   : > { %v5359_v28 = vpop.f32.mrf.mxu1  ;;  %v10733_v31 = vpop.f32.mrf.mxu0 }
 0x3b5   : > { %v10736_v18 = vadd.f32 %v5359_v28, %v10611_v41 }
 0x3b6   : > { %v8623_v4 = vpop.f32.mrf.mxu1  ;;  %v10738_v3 = vpop.f32.mrf.mxu0 }
 0x3b7   : > { %11317 = vst [vmem:[#allocation21_spill] sm:$0xff] %v10738_v3  ;;  %v10741_v11 = vadd.f32 %v8623_v4, %v10614_v27 }
 0x3b8   : > { %v5362_v22 = vpop.f32.mrf.mxu1  ;;  %v10743_v10 = vpop.f32.mrf.mxu0 }
 0x3b9   : > { %11318 = vst [vmem:[#allocation22_spill] sm:$0xff] %v10743_v10  ;;  %v10746_v58 = vadd.f32 %v5362_v22, %v10617_v52 }
 0x3ba   : > { %v8626_v48 = vpop.f32.mrf.mxu1  ;;  %v10748_v32 = vpop.f32.mrf.mxu0 }
 0x3bb   : > { %11319 = vst [vmem:[#allocation31_spill] sm:$0xff] %v10748_v32  ;;  %v10751_v8 = vadd.f32 %v8626_v48, %v10620_v2 }
 0x3bc   : > { %v5375_v41 = vpop.f32.mrf.mxu1  ;;  %v10753_v62 = vpop.f32.mrf.mxu0 }
 0x3bd   : > { %11320 = vst [vmem:[#allocation32_spill] sm:$0xff] %v10753_v62  ;;  %v10756_v6 = vadd.f32 %v5375_v41, %v10623_v35 }
 0x3be   : > { %v8627_v27 = vpop.f32.mrf.mxu1  ;;  %v10758_v47 = vpop.f32.mrf.mxu0 }
 0x3bf   : > { %11321 = vst [vmem:[#allocation78_spill] sm:$0xff] %v10758_v47  ;;  %v10761_v15 = vadd.f32 %v8627_v27, %v10626_v56 }
 0x3c0   : > { %v5378_v52 = vpop.f32.mrf.mxu1  ;;  %v10763_v42 = vpop.f32.mrf.mxu0 }
 0x3c1   : > { %11322 = vst [vmem:[#allocation72_spill] sm:$0xff] %v10763_v42  ;;  %v10766_v16 = vadd.f32 %v5378_v52, %v10629_v17 }
 0x3c2   : > { %v8630_v2 = vpop.f32.mrf.mxu1  ;;  %v10768_v53 = vpop.f32.mrf.mxu0 }
 0x3c3   : > { %11323 = vst [vmem:[#allocation34_spill] sm:$0xff] %v10766_v16  ;;  %11324 = vst [vmem:[#allocation35_spill] sm:$0xff] %v10768_v53  ;;  %v10771_v28 = vadd.f32 %v8630_v2, %v10632_v63 }
 0x3c4   : > { %v5391_v35 = vpop.f32.mrf.mxu1  ;;  %v10773_v4 = vpop.f32.mrf.mxu0 }
 0x3c5   : > { %11325 = vst [vmem:[#allocation38_spill] sm:$0xff] %v10771_v28  ;;  %11326 = vst [vmem:[#allocation81_spill] sm:$0xff] %v10773_v4  ;;  %v10776_v22 = vadd.f32 %v5391_v35, %v10635_v29 }
 0x3c6   : > { %v8631_v56 = vpop.f32.mrf.mxu1  ;;  %v10778_v48 = vpop.f32.mrf.mxu0 }
 0x3c7   : > { %11327 = vst [vmem:[#allocation73_spill] sm:$0xff] %v10776_v22  ;;  %11328 = vst [vmem:[#allocation23_spill] sm:$0xff] %v10778_v48  ;;  %v10781_v41 = vadd.f32 %v8631_v56, %v10638_v50 }
 0x3c8   : > { %v5394_v17 = vpop.f32.mrf.mxu1  ;;  %v10783_v27 = vpop.f32.mrf.mxu0 }
 0x3c9   : > { %11329 = vst [vmem:[#allocation36_spill] sm:$0xff] %v10781_v41  ;;  %11330 = vst [vmem:[#allocation37_spill] sm:$0xff] %v10783_v27  ;;  %v10786_v52 = vadd.f32 %v5394_v17, %v10641_v13 }
 0x3ca   : > { %v8634_v63 = vpop.f32.mrf.mxu1  ;;  %v10788_v2 = vpop.f32.mrf.mxu0 }
 0x3cb   : > { %11331 = vst [vmem:[#allocation74_spill] sm:$0xff] %v10786_v52  ;;  %11332 = vst [vmem:[#allocation84_spill] sm:$0xff] %v10788_v2  ;;  %v10791_v4 = vadd.f32 %v8634_v63, %v10644_v20 }
 0x3cc   : > { %v5407_v29 = vpop.f32.mrf.mxu1  ;;  %v10793_v35 = vpop.f32.mrf.mxu0 }
 0x3cd   : > { %11333 = vst [vmem:[#allocation15_spill] sm:$0xff] %v10791_v4  ;;  %11334 = vst [vmem:[#allocation16_spill] sm:$0xff] %v10793_v35  ;;  %v10796_v48 = vadd.f32 %v5407_v29, %v10647_v12 }
 0x3ce   : > { %v8635_v50 = vpop.f32.mrf.mxu1  ;;  %v10798_v56 = vpop.f32.mrf.mxu0 }
 0x3cf   : > { %11335 = vst [vmem:[#allocation75_spill] sm:$0xff] %v10796_v48  ;;  %11336 = vst [vmem:[#allocation33_spill] sm:$0xff] %v10798_v56  ;;  %v10801_v27 = vadd.f32 %v8635_v50, %v10650_v45 }
 0x3d0   : > { %v5410_v13 = vpop.f32.mrf.mxu1  ;;  %v10803_v17 = vpop.f32.mrf.mxu0 }
 0x3d1   : > { %11337 = vst [vmem:[#allocation39_spill] sm:$0xff] %v10801_v27  ;;  %11338 = vst [vmem:[#allocation24_spill] sm:$0xff] %v10803_v17  ;;  %v10806_v2 = vadd.f32 %v5410_v13, %v10653_v61 }
 0x3d2   : > { %v8638_v20 = vpop.f32.mrf.mxu1  ;;  %v10808_v63 = vpop.f32.mrf.mxu0 }
 0x3d3   : > { %11339 = vst [vmem:[#allocation25_spill] sm:$0xff] %v10806_v2  ;;  %11340 = vst [vmem:[#allocation40_spill] sm:$0xff] %v10808_v63  ;;  %v10811_v35 = vadd.f32 %v8638_v20, %v10657_v24 }
 0x3d4   : > { %v5423_v12 = vpop.f32.mrf.mxu1  ;;  %v10816_v48 = vpop.f32.mrf.mxu0 }
 0x3d5   : > { %11341 = vst [vmem:[#allocation41_spill] sm:$0xff] %v10811_v35  ;;  %v10814_v29 = vadd.f32 %v5423_v12, %v10660_v26  ;;  %11343 = vst [vmem:[#allocation76_spill] sm:$0xff] %v10816_v48 }
 0x3d6   : > { %v8639_v56 = vpop.f32.mrf.mxu1  ;;  %v10824_v17 = vpop.f32.mrf.mxu0 }
 0x3d7   : > { %11342 = vst [vmem:[#allocation89_spill] sm:$0xff] %v10814_v29  ;;  %v10819_v45 = vadd.f32 %v8639_v56, %v10663_v14  ;;  %11346 = vst [vmem:[#allocation46_spill] sm:$0xff] %v10824_v17 }
 0x3d8   : > { %v5426_v50 = vpop.f32.mrf.mxu1  ;;  %v10832_v63 = vpop.f32.mrf.mxu0 }
 0x3d9   : > { %11344 = vst [vmem:[#allocation42_spill] sm:$0xff] %v10819_v45  ;;  %v10822_v61 = vadd.f32 %v5426_v50, %v10668_v1  ;;  %11349 = vst [vmem:[#allocation44_spill] sm:$0xff] %v10832_v63 }
 0x3da   : > { %v8642_v13 = vpop.f32.mrf.mxu1  ;;  %v8758_v48 = vpop.f32.mrf.mxu0 }
 0x3db   : > { %11345 = vst [vmem:[#allocation43_spill] sm:$0xff] %v10822_v61  ;;  %v10827_v24 = vadd.f32 %v8642_v13, %v10673_v9 }
 0x3dc   : > { %v5439_v20 = vpop.f32.mrf.mxu1  ;;  %v6438_v61 = vpop.f32.mrf.mxu0 }
 0x3dd   : > { %11347 = vst [vmem:[#allocation92_spill] sm:$0xff] %v10827_v24  ;;  %v10830_v26 = vadd.f32 %v5439_v20, %v10678_v46 }
 0x3de   : > { %v8643_v12 = vpop.f32.mrf.mxu1  ;;  %v8759_v24 = vpop.f32.mrf.mxu0 }
 0x3df   : > { %11348 = vst [vmem:[#allocation77_spill] sm:$0xff] %v10830_v26  ;;  %v10835_v14 = vadd.f32 %v8643_v12, %v10683_v7 }
 0x3e0   : > { %v5442_v56 = vpop.f32.mrf.mxu1  ;;  %v10842_v20 = vpop.f32.mrf.mxu0 }
 0x3e1   : > { %11350 = vst [vmem:[#allocation45_spill] sm:$0xff] %v10835_v14  ;;  %v10838_v1 = vadd.f32 %v5442_v56, %v10688_v36 }
 0x3e2   : > { %v8710_v50 = vpop.f32.mrf.mxu1  ;;  %v10848_v12 = vpop.f32.mrf.mxu0 }
 0x3e3   : > { %11351 = vst [vmem:[#allocation79_spill] sm:$0xff] %v10838_v1 }
 0x3e4   : > { %v6068_v17 = vpop.f32.mrf.mxu1  ;;  %v10854_v1 = vpop.f32.mrf.mxu0 }
 0x3e6   : > { %v8711_v9 = vpop.f32.mrf.mxu1  ;;  %v10860_v29 = vpop.f32.mrf.mxu0 }
 0x3e8   : > { %v6071_v13 = vpop.f32.mrf.mxu1  ;;  %v10866_v27 = vpop.f32.mrf.mxu0 }
 0x3ea   : > { %v8714_v45 = vpop.f32.mrf.mxu1  ;;  %v10872_v42 = vpop.f32.mrf.mxu0 }
 0x3ec   : > { %v10840_v46 = vpop.f32.mrf.mxu1  ;;  %v10878_v41 = vpop.f32.mrf.mxu0 }
 0x3ee   : > { %v10844_v63 = vpop.f32.mrf.mxu1  ;;  %v10884_v32 = vpop.f32.mrf.mxu0 }
 0x3f0   : > { %v10846_v7 = vpop.f32.mrf.mxu1 }
 0x3f2   : > { %v10850_v36 = vpop.f32.mrf.mxu1 }
 0x3f4   : > { %v10852_v56 = vpop.f32.mrf.mxu1 }
 0x3f6   : > { %v10856_v14 = vpop.f32.mrf.mxu1 }
 0x3f8   : > { %v10858_v26 = vpop.f32.mrf.mxu1 }
 0x3fa   : > { %v10862_v35 = vpop.f32.mrf.mxu1 }
 0x3fc   : > { %v10864_v2 = vpop.f32.mrf.mxu1 }
 0x3fd   : > { %11352 = vst [vmem:[#allocation17_spill] sm:$0xff] %v10864_v2 }
 0x3fe   : > { %v10868_v53 = vpop.f32.mrf.mxu1 }
 0x3ff   : > { %11353 = vst [vmem:[#allocation18_spill] sm:$0xff] %v10868_v53  ;;  %v10890_v53 = vpop.f32.mrf.mxu0 }
 0x400   : > { %v10870_v4 = vpop.f32.mrf.mxu1 }
 0x401   : > { %11354 = vst [vmem:[#allocation26_spill] sm:$0xff] %v10870_v4 }
 0x402   : > { %v10874_v52 = vpop.f32.mrf.mxu1 }
 0x403   : > { %11355 = vst [vmem:[#allocation80_spill] sm:$0xff] %v10874_v52  ;;  %v10896_v52 = vpop.f32.mrf.mxu0 }
 0x404   : > { %v10876_v47 = vpop.f32.mrf.mxu1  ;;  %11363 = vst [vmem:[#allocation54_spill] sm:$0xff] %v10896_v52 }
 0x405   : > { %11356 = vst [vmem:[#allocation47_spill] sm:$0xff] %v10876_v47 }
 0x406   : > { %v10880_v62 = vpop.f32.mrf.mxu1 }
 0x407   : > { %11357 = vst [vmem:[#allocation27_spill] sm:$0xff] %v10880_v62  ;;  %v10902_v62 = vpop.f32.mrf.mxu0 }
 0x408   : > { %v10882_v22 = vpop.f32.mrf.mxu1  ;;  %11366 = vst [vmem:[#allocation53_spill] sm:$0xff] %v10902_v62 }
 0x409   : > { %11358 = vst [vmem:[#allocation48_spill] sm:$0xff] %v10882_v22 }
 0x40a   : > { %v10886_v28 = vpop.f32.mrf.mxu1 }
 0x40b   : > { %11359 = vst [vmem:[#allocation49_spill] sm:$0xff] %v10886_v28  ;;  %v10908_v28 = vpop.f32.mrf.mxu0 }
 0x40c   : > { %v10888_v10 = vpop.f32.mrf.mxu1  ;;  %11369 = vst [vmem:[#allocation20_spill] sm:$0xff] %v10908_v28 }
 0x40d   : > { %11360 = vst [vmem:[#allocation82_spill] sm:$0xff] %v10888_v10  ;;  %v10918_v52 = vpop.f32.mrf.mxu0 }
 0x40e   : > { %v10892_v4 = vpop.f32.mrf.mxu1  ;;  %11372 = vst [vmem:[#allocation55_spill] sm:$0xff] %v10918_v52 }
 0x40f   : > { %11361 = vst [vmem:[#allocation50_spill] sm:$0xff] %v10892_v4  ;;  %v5858_v4 = vadd.f32 %v10666_v23, %v10691_v55  ;;  %v5857_v23 = vadd.f32 %v10681_v34, %v10706_v38 }
 0x410   : > { %v10894_v16 = vpop.f32.mrf.mxu1 }
 0x411   : > { %11362 = vst [vmem:[#allocation51_spill] sm:$0xff] %v10894_v16 }
 0x412   : > { %v10898_v47 = vpop.f32.mrf.mxu1 }
 0x413   : > { %11364 = vst [vmem:[#allocation83_spill] sm:$0xff] %v10898_v47  ;;  %v5856_v47 = vadd.f32 %v10671_v40, %v10696_v44  ;;  %v5862_v40 = vadd.f32 %v10686_v33, %v10711_v51  ;;  %v10930_v44 = vpop.f32.mrf.mxu0  ;;  %v5863_v33 = vadd.f32 %v10698_v19, %v10721_v37 }
 0x414   : > { %v10900_v2 = vpop.f32.mrf.mxu1 }
 0x415   : > { %11365 = vst [vmem:[#allocation52_spill] sm:$0xff] %v10900_v2  ;;  %v6229_v2 = vadd.f32 %v8710_v50, %v5858_v4  ;;  %v7033_v50 = vld [vmem:[#allocation2 + $0x31] sm:$0xff]  ;;  %v6234_v19 = vadd.f32 %v10844_v63, %v5863_v33 }
 0x416   : > { %v10904_v22 = vpop.f32.mrf.mxu1 }
 0x417   : > { %11367 = vst [vmem:[#allocation85_spill] sm:$0xff] %v10904_v22  ;;  %v6227_v22 = vadd.f32 %v6068_v17, %v5856_v47  ;;  %v6599_v55 = vadd.f32 %v8758_v48, %v6229_v2  ;;  %v7031_v17 = vld [vmem:[#allocation2 + $0x19] sm:$0xff]  ;;  %v10938_v48 = vpop.f32.mrf.mxu0 }
 0x418   : > { %v10906_v3 = vpop.f32.mrf.mxu1  ;;  %v7034_v2 = vld [vmem:[#allocation2 + $0x39] sm:$0xff] }
 0x419   : > { %11368 = vst [vmem:[#allocation19_spill] sm:$0xff] %v10906_v3  ;;  %v5859_v3 = vadd.f32 %v10676_v60, %v10701_v54  ;;  %v5860_v60 = vadd.f32 %v10693_v25, %v10716_v43  ;;  %v6233_v54 = vadd.f32 %v8714_v45, %v5862_v40  ;;  %v5861_v43 = vadd.f32 %v10703_v39, %v10726_v5  ;;  %v10951_v5 = vpop.f32.mrf.mxu0 }
 0x41a   : > { %v10910_v10 = vpop.f32.mrf.mxu1  ;;  %v5864_v40 = vadd.f32 %v10713_v57, %v10736_v18  ;;  %v7038_v57 = vld [vmem:[#allocation2 + $0x69] sm:$0xff] }
 0x41b   : > { %11370 = vst [vmem:[#allocation28_spill] sm:$0xff] %v10910_v10  ;;  %v6597_v10 = vadd.f32 %v6438_v61, %v6227_v22  ;;  %v6231_v51 = vadd.f32 %v10840_v46, %v5860_v60  ;;  %v6232_v63 = vadd.f32 %v10846_v7, %v5861_v43  ;;  %v5867_v7 = vadd.f32 %v10718_v21, %v10741_v11  ;;  %v7036_v21 = vld [vmem:[#allocation2 + $0x51] sm:$0xff] }
 0x41c   : > { %v10914_v16 = vpop.f32.mrf.mxu1  ;;  %v5868_v43 = vadd.f32 %v10733_v31, %v10756_v6  ;;  %v7042_v31 = vld [vmem:[#allocation2 + $0x99] sm:$0xff] }
 0x41d   : > { %11371 = vst [vmem:[#allocation86_spill] sm:$0xff] %v10914_v16  ;;  %v6230_v16 = vadd.f32 %v8711_v9, %v5859_v3  ;;  %v6601_v39 = vadd.f32 %v10854_v1, %v6231_v51  ;;  %v6602_v18 = vadd.f32 %v10866_v27, %v6232_v63  ;;  %v6238_v11 = vadd.f32 %v10856_v14, %v5867_v7  ;;  %v11377_v63 = vld [vmem:[#allocation22_spill] sm:$0xff]  ;;  %v11382_v7 = vld [vmem:[#allocation53_spill] sm:$0xff] }
 0x41e   : > { %v10920_v62 = vpop.f32.mrf.mxu1  ;;  %v5870_v27 = vadd.f32 %v10728_v30, %v10751_v8  ;;  %v7039_v30 = vld [vmem:[#allocation2 + $0x79] sm:$0xff] }
 0x41f   : > { %11373 = vst [vmem:[#allocation29_spill] sm:$0xff] %v10920_v62  ;;  %v6228_v62 = vadd.f32 %v6071_v13, %v5857_v23  ;;  %v6600_v34 = vadd.f32 %v8759_v24, %v6230_v16  ;;  %v6603_v16 = vadd.f32 %v10848_v12, %v6233_v54  ;;  %v5866_v24 = vadd.f32 %v10708_v0, %v10731_v49  ;;  %v7035_v0 = vld [vmem:[#allocation2 + $0x49] sm:$0xff] }
 0x420   : > { %v10924_v28 = vpop.f32.mrf.mxu1  ;;  %v6604_v49 = vadd.f32 %v10860_v29, %v6234_v19  ;;  %v6608_v8 = vadd.f32 %v10884_v32, %v6238_v11 }
 0x421   : > { %v6598_v61 = vadd.f32 %v10842_v20, %v6228_v62  ;;  %v7037_v20 = vld [vmem:[#allocation2 + $0x61] sm:$0xff] }
 0x422   : > { %v8806_v4 = vpop.f32.mrf.mxu1 }
 0x423   : > { %v6969_v52 = vadd.f32 %v8806_v4, %v6599_v55  ;;  %v6237_v4 = vadd.f32 %v10850_v36, %v5866_v24 }
 0x424   : > { %v6808_v47 = vpop.f32.mrf.mxu1 }
 0x425   : > { %v7097_v38 = vadd.f32 %v7033_v50, %v6969_v52  ;;  %v6967_v3 = vadd.f32 %v6808_v47, %v6597_v10  ;;  %v7032_v52 = vld [vmem:[#allocation2 + $0x21] sm:$0xff]  ;;  %v6235_v47 = vadd.f32 %v10852_v56, %v5864_v40  ;;  %v6607_v33 = vadd.f32 %v10872_v42, %v6237_v4  ;;  %v11379_v4 = vld [vmem:[#allocation18_spill] sm:$0xff] }
 0x426   : > { %v8807_v22 = vpop.f32.mrf.mxu1 }
 0x427   : > { %v7129_v9 = vmax.f32 %v7097_v38, 0.0  ;;  %v7095_v13 = vadd.f32 %v7031_v17, %v6967_v3  ;;  %v6970_v25 = vadd.f32 %v8807_v22, %v6600_v34  ;;  %v10963_v17 = vpop.f32.mrf.mxu0  ;;  %v5865_v3 = vadd.f32 %v10723_v59, %v10746_v58  ;;  %v7041_v59 = vld [vmem:[#allocation2 + $0x91] sm:$0xff] }
 0x428   : > { %v6811_v10 = vpop.f32.mrf.mxu1 }
 0x429   : > { %7161 = vst [vmem:[%s10945_s20 + $0x10] sm:$0xff] %v7129_v9  ;;  %v7127_v37 = vmax.f32 %v7095_v13, 0.0  ;;  %v7098_v45 = vadd.f32 %v7034_v2, %v6970_v25  ;;  %v6968_v62 = vadd.f32 %v6811_v10, %v6598_v61  ;;  %v6605_v61 = vadd.f32 %v10878_v41, %v6235_v47  ;;  %v10975_v9 = vpop.f32.mrf.mxu0 }
 0x42a   : > { %v8810_v46 = vpop.f32.mrf.mxu1  ;;  %v6236_v58 = vadd.f32 %v10858_v26, %v5865_v3  ;;  %v11374_v26 = vld [vmem:[#allocation21_spill] sm:$0xff] }
 0x42b   : > { %7159 = vst [vmem:[%s10945_s20] sm:$0xff] %v7127_v37  ;;  %v7130_v12 = vmax.f32 %v7098_v45, 0.0  ;;  %v7096_v23 = vadd.f32 %v7032_v52, %v6968_v62  ;;  %v6973_v55 = vadd.f32 %v8810_v46, %v6603_v16  ;;  %v6241_v16 = vadd.f32 %v10862_v35, %v5870_v27  ;;  %v11375_v45 = vld [vmem:[#allocation17_spill] sm:$0xff]  ;;  %v10987_v24 = vpop.f32.mrf.mxu0 }
 0x42c   : > { %v6824_v50 = vpop.f32.mrf.mxu1  ;;  %v5871_v37 = vadd.f32 %v11374_v26, %v10761_v15  ;;  %v6239_v62 = vadd.f32 %v11375_v45, %v5868_v43  ;;  %v6606_v6 = vadd.f32 %v10890_v53, %v6236_v58  ;;  %v7040_v15 = vld [vmem:[#allocation2 + $0x81] sm:$0xff]  ;;  %v7043_v27 = vld [vmem:[#allocation2 + $0xa9] sm:$0xff] }
 0x42d   : > { %7162 = vst [vmem:[%s10945_s20 + $0x18] sm:$0xff] %v7130_v12  ;;  %v7128_v1 = vmax.f32 %v7096_v23, 0.0  ;;  %v7101_v60 = vadd.f32 %v7037_v20, %v6973_v55  ;;  %v6971_v54 = vadd.f32 %v6824_v50, %v6601_v39  ;;  %v11376_v20 = vld [vmem:[#allocation34_spill] sm:$0xff]  ;;  %v11381_v53 = vld [vmem:[#allocation31_spill] sm:$0xff] }
 0x42e   : > { %v8811_v34 = vpop.f32.mrf.mxu1  ;;  %v5869_v12 = vadd.f32 %v11377_v63, %v11376_v20  ;;  %v11378_v23 = vld [vmem:[#allocation54_spill] sm:$0xff]  ;;  %v6242_v50 = vadd.f32 %v11379_v4, %v5871_v37  ;;  %v6609_v47 = vadd.f32 %v11382_v7, %v6239_v62  ;;  %v11398_v7 = vld [vmem:[#allocation75_spill] sm:$0xff] }
 0x42f   : > { %7160 = vst [vmem:[%s10945_s20 + $0x8] sm:$0xff] %v7128_v1  ;;  %v7133_v36 = vmax.f32 %v7101_v60, 0.0  ;;  %v7099_v38 = vadd.f32 %v7035_v0, %v6971_v54  ;;  %v6974_v29 = vadd.f32 %v8811_v34, %v6604_v49  ;;  %v6611_v55 = vadd.f32 %v11378_v23, %v6241_v16  ;;  %v11380_v60 = vld [vmem:[#allocation38_spill] sm:$0xff]  ;;  %v10999_v34 = vpop.f32.mrf.mxu0  ;;  %v11390_v16 = vld [vmem:[#allocation47_spill] sm:$0xff] }
 0x430   : > { %v6827_v51 = vpop.f32.mrf.mxu1  ;;  %v5874_v54 = vadd.f32 %v11381_v53, %v11380_v60  ;;  %v11392_v62 = vld [vmem:[#allocation74_spill] sm:$0xff] }
 0x431   : > { %7165 = vst [vmem:[%s10945_s20 + $0x30] sm:$0xff] %v7133_v36  ;;  %v7131_v56 = vmax.f32 %v7099_v38, 0.0  ;;  %v7102_v22 = vadd.f32 %v7038_v57, %v6974_v29  ;;  %v6972_v2 = vadd.f32 %v6827_v51, %v6602_v18  ;;  %v7045_v18 = vld [vmem:[#allocation2 + $0xc1] sm:$0xff]  ;;  %v11383_v36 = vld [vmem:[#allocation26_spill] sm:$0xff]  ;;  %v11384_v51 = vld [vmem:[#allocation73_spill] sm:$0xff] }
 0x432   : > { %v8814_v13 = vpop.f32.mrf.mxu1  ;;  %v6240_v38 = vadd.f32 %v11383_v36, %v5869_v12 }
 0x433   : > { %7163 = vst [vmem:[%s10945_s20 + $0x20] sm:$0xff] %v7131_v56  ;;  %v7134_v42 = vmax.f32 %v7102_v22, 0.0  ;;  %v7100_v25 = vadd.f32 %v7036_v21, %v6972_v2  ;;  %v6977_v14 = vadd.f32 %v8814_v13, %v6607_v33  ;;  %v11385_v21 = vld [vmem:[#allocation32_spill] sm:$0xff] }
 0x434   : > { %v6840_v10 = vpop.f32.mrf.mxu1  ;;  %v5872_v11 = vadd.f32 %v11385_v21, %v11384_v51  ;;  %v11386_v56 = vld [vmem:[#allocation80_spill] sm:$0xff]  ;;  %v11401_v21 = vld [vmem:[#allocation39_spill] sm:$0xff] }
 0x435   : > { %7166 = vst [vmem:[%s10945_s20 + $0x38] sm:$0xff] %v7134_v42  ;;  %v7132_v41 = vmax.f32 %v7100_v25, 0.0  ;;  %v7105_v52 = vadd.f32 %v7041_v59, %v6977_v14  ;;  %v6975_v19 = vadd.f32 %v6840_v10, %v6605_v61  ;;  %v6245_v22 = vadd.f32 %v11386_v56, %v5874_v54  ;;  %v11387_v61 = vld [vmem:[#allocation20_spill] sm:$0xff]  ;;  %v11389_v14 = vld [vmem:[#allocation78_spill] sm:$0xff] }
 0x436   : > { %v8815_v39 = vpop.f32.mrf.mxu1  ;;  %v6612_v13 = vadd.f32 %v11387_v61, %v6242_v50  ;;  %v11388_v25 = vld [vmem:[#allocation36_spill] sm:$0xff]  ;;  %v6243_v10 = vadd.f32 %v11390_v16, %v5872_v11  ;;  %v11402_v11 = vld [vmem:[#allocation23_spill] sm:$0xff] }
 0x437   : > { %7164 = vst [vmem:[%s10945_s20 + $0x28] sm:$0xff] %v7132_v41  ;;  %v7137_v35 = vmax.f32 %v7105_v52, 0.0  ;;  %v7103_v46 = vadd.f32 %v7039_v30, %v6975_v19  ;;  %v6978_v32 = vadd.f32 %v8815_v39, %v6608_v8  ;;  %v5875_v43 = vadd.f32 %v11389_v14, %v11388_v25  ;;  %v11011_v30 = vpop.f32.mrf.mxu0  ;;  %v7046_v41 = vld [vmem:[#allocation2 + $0xc9] sm:$0xff]  ;;  %v11391_v52 = vld [vmem:[#allocation55_spill] sm:$0xff] }
 0x438   : > { %v6843_v40 = vpop.f32.mrf.mxu1  ;;  %v6610_v19 = vadd.f32 %v11391_v52, %v6240_v38  ;;  %v11393_v39 = vld [vmem:[#allocation72_spill] sm:$0xff]  ;;  %v6613_v4 = vadd.f32 %v10938_v48, %v6243_v10  ;;  %v5879_v56 = vadd.f32 %v11402_v11, %v11401_v21  ;;  %v11405_v14 = vld [vmem:[#allocation37_spill] sm:$0xff] }
 0x439   : > { %7169 = vst [vmem:[%s10945_s20 + $0x50] sm:$0xff] %v7137_v35  ;;  %v7135_v0 = vmax.f32 %v7103_v46, 0.0  ;;  %v7106_v49 = vadd.f32 %v7042_v31, %v6978_v32  ;;  %v6976_v1 = vadd.f32 %v6843_v40, %v6606_v6  ;;  %v5873_v31 = vadd.f32 %v11393_v39, %v11392_v62  ;;  %v7044_v46 = vld [vmem:[#allocation2 + $0xb1] sm:$0xff]  ;;  %v11394_v32 = vld [vmem:[#allocation27_spill] sm:$0xff]  ;;  %v11023_v50 = vpop.f32.mrf.mxu0 }
 0x43a   : > { %v8818_v57 = vpop.f32.mrf.mxu1  ;;  %v6615_v6 = vadd.f32 %v10930_v44, %v6245_v22  ;;  %v6246_v20 = vadd.f32 %v11394_v32, %v5875_v43  ;;  %v11396_v40 = vld [vmem:[#allocation35_spill] sm:$0xff]  ;;  %v11403_v22 = vld [vmem:[#allocation82_spill] sm:$0xff] }
 0x43b   : > { %7167 = vst [vmem:[%s10945_s20 + $0x40] sm:$0xff] %v7135_v0  ;;  %v7138_v29 = vmax.f32 %v7106_v49, 0.0  ;;  %v7104_v3 = vadd.f32 %v7040_v15, %v6976_v1  ;;  %v6981_v33 = vadd.f32 %v8818_v57, %v6611_v55  ;;  %v11395_v55 = vld [vmem:[#allocation15_spill] sm:$0xff]  ;;  %v7049_v49 = vld [vmem:[#allocation2 + $0xf1] sm:$0xff]  ;;  %v11397_v1 = vld [vmem:[#allocation48_spill] sm:$0xff] }
 0x43c   : > { %v6856_v2 = vpop.f32.mrf.mxu1  ;;  %v5878_v15 = vadd.f32 %v11396_v40, %v11395_v55  ;;  %v6244_v44 = vadd.f32 %v11397_v1, %v5873_v31  ;;  %v6616_v48 = vadd.f32 %v10951_v5, %v6246_v20  ;;  %v11404_v5 = vld [vmem:[#allocation25_spill] sm:$0xff]  ;;  %v11412_v40 = vld [vmem:[#allocation83_spill] sm:$0xff] }
 0x43d   : > { %7170 = vst [vmem:[%s10945_s20 + $0x58] sm:$0xff] %v7138_v29  ;;  %v7136_v59 = vmax.f32 %v7104_v3, 0.0  ;;  %v7109_v58 = vadd.f32 %v7045_v18, %v6981_v33  ;;  %v6979_v42 = vadd.f32 %v6856_v2, %v6609_v47  ;;  %v11399_v47 = vld [vmem:[#allocation81_spill] sm:$0xff]  ;;  %v7047_v29 = vld [vmem:[#allocation2 + $0xd9] sm:$0xff]  ;;  %v5877_v43 = vadd.f32 %v11405_v14, %v11404_v5 }
 0x43e   : > { %v8819_v8 = vpop.f32.mrf.mxu1  ;;  %v5876_v57 = vadd.f32 %v11399_v47, %v11398_v7  ;;  %v11400_v18 = vld [vmem:[#allocation49_spill] sm:$0xff]  ;;  %v11415_v7 = vld [vmem:[#allocation52_spill] sm:$0xff] }
 0x43f   : > { %7168 = vst [vmem:[%s10945_s20 + $0x48] sm:$0xff] %v7136_v59  ;;  %v7141_v26 = vmax.f32 %v7109_v58, 0.0  ;;  %v7107_v37 = vadd.f32 %v7043_v27, %v6979_v42  ;;  %v6982_v45 = vadd.f32 %v8819_v8, %v6612_v13  ;;  %v6249_v36 = vadd.f32 %v11400_v18, %v5878_v15  ;;  %v6534_v27 = vpop.f32.mrf.mxu0  ;;  %v7050_v13 = vld [vmem:[#allocation2 + $0xf9] sm:$0xff]  ;;  %v7048_v8 = vld [vmem:[#allocation2 + $0xe1] sm:$0xff] }
 0x440   : > { %v6859_v35 = vpop.f32.mrf.mxu1  ;;  %v6247_v2 = vadd.f32 %v11403_v22, %v5876_v57  ;;  %v6614_v59 = vadd.f32 %v10963_v17, %v6244_v44  ;;  %v11408_v17 = vld [vmem:[#allocation84_spill] sm:$0xff]  ;;  %v7052_v22 = vld [vmem:[#allocation2 + $0x111] sm:$0xff] }
 0x441   : > { %7173 = vst [vmem:[%s10945_s20 + $0x70] sm:$0xff] %v7141_v26  ;;  %v7139_v63 = vmax.f32 %v7107_v37, 0.0  ;;  %v7110_v12 = vadd.f32 %v7046_v41, %v6982_v45  ;;  %v6980_v23 = vadd.f32 %v6859_v35, %v6610_v19  ;;  %v6619_v16 = vadd.f32 %v10975_v9, %v6249_v36  ;;  %v11406_v41 = vld [vmem:[#allocation50_spill] sm:$0xff]  ;;  %v11407_v45 = vld [vmem:[#allocation41_spill] sm:$0xff]  ;;  %v8783_v31 = vpop.f32.mrf.mxu0  ;;  %v7053_v35 = vld [vmem:[#allocation2 + $0x121] sm:$0xff] }
 0x442   : > { %v8822_v0 = vpop.f32.mrf.mxu1  ;;  %v6250_v52 = vadd.f32 %v11406_v41, %v5879_v56  ;;  %v5882_v62 = vadd.f32 %v11408_v17, %v11407_v45  ;;  %v6617_v39 = vadd.f32 %v10987_v24, %v6247_v2  ;;  %v7054_v36 = vld [vmem:[#allocation2 + $0x129] sm:$0xff] }
 0x443   : > { %7171 = vst [vmem:[%s10945_s20 + $0x60] sm:$0xff] %v7139_v63  ;;  %v7142_v60 = vmax.f32 %v7110_v12, 0.0  ;;  %v7108_v53 = vadd.f32 %v7044_v46, %v6980_v23  ;;  %v6985_v54 = vadd.f32 %v8822_v0, %v6615_v6  ;;  %v11409_v46 = vld [vmem:[#allocation51_spill] sm:$0xff]  ;;  %v11410_v12 = vld [vmem:[#allocation89_spill] sm:$0xff]  ;;  %v11411_v23 = vld [vmem:[#allocation16_spill] sm:$0xff]  ;;  %v6537_v57 = vpop.f32.mrf.mxu0 }
 0x444   : > { %v6872_v38 = vpop.f32.mrf.mxu1  ;;  %v6248_v32 = vadd.f32 %v11409_v46, %v5877_v43  ;;  %v5880_v55 = vadd.f32 %v11411_v23, %v11410_v12  ;;  %v6253_v15 = vadd.f32 %v11412_v40, %v5882_v62  ;;  %v7051_v0 = vld [vmem:[#allocation2 + $0x109] sm:$0xff]  ;;  %v7057_v43 = vld [vmem:[#allocation2 + $0x151] sm:$0xff] }
 0x445   : > { %7174 = vst [vmem:[%s10945_s20 + $0x78] sm:$0xff] %v7142_v60  ;;  %v7140_v3 = vmax.f32 %v7108_v53, 0.0  ;;  %v7113_v33 = vadd.f32 %v7049_v49, %v6985_v54  ;;  %v6983_v51 = vadd.f32 %v6872_v38, %v6613_v4  ;;  %v6620_v49 = vadd.f32 %v10999_v34, %v6250_v52  ;;  %v11413_v60 = vld [vmem:[#allocation42_spill] sm:$0xff]  ;;  %v11414_v53 = vld [vmem:[#allocation33_spill] sm:$0xff]  ;;  %v11416_v34 = vld [vmem:[#allocation43_spill] sm:$0xff]  ;;  %v8786_v11 = vpop.f32.mrf.mxu0 }
 0x446   : > { %v8823_v61 = vpop.f32.mrf.mxu1  ;;  %v5883_v54 = vadd.f32 %v11414_v53, %v11413_v60  ;;  %v6251_v47 = vadd.f32 %v11415_v7, %v5880_v55  ;;  %v6618_v38 = vadd.f32 %v11011_v30, %v6248_v32  ;;  %v6623_v21 = vadd.f32 %v11023_v50, %v6253_v15  ;;  %v11418_v2 = vld [vmem:[#allocation85_spill] sm:$0xff]  ;;  %v11419_v30 = vld [vmem:[#allocation92_spill] sm:$0xff]  ;;  %v7058_v55 = vld [vmem:[#allocation2 + $0x159] sm:$0xff] }
 0x447   : > { %7172 = vst [vmem:[%s10945_s20 + $0x68] sm:$0xff] %v7140_v3  ;;  %v7145_v58 = vmax.f32 %v7113_v33, 0.0  ;;  %v7111_v42 = vadd.f32 %v7047_v29, %v6983_v51  ;;  %v6986_v25 = vadd.f32 %v8823_v61, %v6616_v48  ;;  %v11417_v33 = vld [vmem:[#allocation24_spill] sm:$0xff]  ;;  %v11422_v52 = vld [vmem:[#allocation77_spill] sm:$0xff]  ;;  %v6550_v17 = vpop.f32.mrf.mxu0 }
 0x448   : > { %v6875_v10 = vpop.f32.mrf.mxu1  ;;  %v5881_v51 = vadd.f32 %v11417_v33, %v11416_v34  ;;  %v6254_v61 = vadd.f32 %v11418_v2, %v5883_v54  ;;  %v6621_v5 = vadd.f32 %v6534_v27, %v6251_v47  ;;  %v11425_v32 = vld [vmem:[#allocation45_spill] sm:$0xff]  ;;  %v7056_v53 = vld [vmem:[#allocation2 + $0x141] sm:$0xff] }
 0x449   : > { %7177 = vst [vmem:[%s10945_s20 + $0x90] sm:$0xff] %v7145_v58  ;;  %v7143_v19 = vmax.f32 %v7111_v42, 0.0  ;;  %v7114_v26 = vadd.f32 %v7050_v13, %v6986_v25  ;;  %v6984_v37 = vadd.f32 %v6875_v10, %v6614_v59  ;;  %v11420_v42 = vld [vmem:[#allocation40_spill] sm:$0xff]  ;;  %v11430_v54 = vld [vmem:[#allocation29_spill] sm:$0xff] }
 0x44a   : > { %v8826_v6 = vpop.f32.mrf.mxu1  ;;  %v5886_v25 = vadd.f32 %v11420_v42, %v11419_v30 }
 0x44b   : > { %7175 = vst [vmem:[%s10945_s20 + $0x80] sm:$0xff] %v7143_v19  ;;  %v7146_v9 = vmax.f32 %v7114_v26, 0.0  ;;  %v7112_v20 = vadd.f32 %v7048_v8, %v6984_v37  ;;  %v6989_v63 = vadd.f32 %v8826_v6, %v6619_v16  ;;  %v11421_v16 = vld [vmem:[#allocation19_spill] sm:$0xff]  ;;  %v11423_v19 = vld [vmem:[#allocation76_spill] sm:$0xff]  ;;  %v6624_v6 = vadd.f32 %v8783_v31, %v6254_v61 }
 0x44c   : > { %v6888_v4 = vpop.f32.mrf.mxu1  ;;  %v6252_v10 = vadd.f32 %v11421_v16, %v5881_v51  ;;  %v5884_v26 = vadd.f32 %v11423_v19, %v11422_v52  ;;  %v11424_v37 = vld [vmem:[#allocation28_spill] sm:$0xff] }
 0x44d   : > { %7178 = vst [vmem:[%s10945_s20 + $0x98] sm:$0xff] %v7146_v9  ;;  %v7144_v24 = vmax.f32 %v7112_v20, 0.0  ;;  %v7117_v1 = vadd.f32 %v7053_v35, %v6989_v63  ;;  %v6987_v44 = vadd.f32 %v6888_v4, %v6617_v39  ;;  %v6257_v45 = vadd.f32 %v11424_v37, %v5886_v25  ;;  %v7055_v39 = vld [vmem:[#allocation2 + $0x139] sm:$0xff]  ;;  %v11429_v31 = vld [vmem:[#allocation44_spill] sm:$0xff] }
 0x44e   : > { %v8827_v18 = vpop.f32.mrf.mxu1  ;;  %v11426_v9 = vld [vmem:[#allocation46_spill] sm:$0xff]  ;;  %v6622_v40 = vadd.f32 %v6537_v57, %v6252_v10 }
 0x44f   : > { %7176 = vst [vmem:[%s10945_s20 + $0x88] sm:$0xff] %v7144_v24  ;;  %v7149_v29 = vmax.f32 %v7117_v1, 0.0  ;;  %v7115_v48 = vadd.f32 %v7051_v0, %v6987_v44  ;;  %v6990_v3 = vadd.f32 %v8827_v18, %v6620_v49  ;;  %v5887_v20 = vadd.f32 %v11426_v9, %v11425_v32  ;;  %v11427_v63 = vld [vmem:[#allocation86_spill] sm:$0xff]  ;;  %v11428_v49 = vld [vmem:[#allocation79_spill] sm:$0xff]  ;;  %v8787_v44 = vpop.f32.mrf.mxu0 }
 0x450   : > { %v6891_v56 = vpop.f32.mrf.mxu1  ;;  %v6255_v12 = vadd.f32 %v11427_v63, %v5884_v26  ;;  %v5885_v24 = vadd.f32 %v11429_v31, %v11428_v49  ;;  %v6627_v1 = vadd.f32 %v8786_v11, %v6257_v45  ;;  %v7059_v11 = vld [vmem:[#allocation2 + $0x169] sm:$0xff] }
 0x451   : > { %7181 = vst [vmem:[%s10945_s20 + $0xb0] sm:$0xff] %v7149_v29  ;;  %v7147_v13 = vmax.f32 %v7115_v48, 0.0  ;;  %v7118_v59 = vadd.f32 %v7054_v36, %v6990_v3  ;;  %v6988_v58 = vadd.f32 %v6891_v56, %v6618_v38  ;;  %v6258_v7 = vadd.f32 %v11430_v54, %v5887_v20  ;;  %v7061_v29 = vld [vmem:[#allocation2 + $0x181] sm:$0xff]  ;;  %v6553_v51 = vpop.f32.mrf.mxu0 }
 0x452   : > { %v8830_v14 = vpop.f32.mrf.mxu1  ;;  %v6625_v57 = vadd.f32 %v6550_v17, %v6255_v12  ;;  %v6256_v48 = vadd.f32 %v10924_v28, %v5885_v24 }
 0x453   : > { %7179 = vst [vmem:[%s10945_s20 + $0xa0] sm:$0xff] %v7147_v13  ;;  %v7150_v50 = vmax.f32 %v7118_v59, 0.0  ;;  %v7116_v8 = vadd.f32 %v7052_v22, %v6988_v58  ;;  %v6993_v41 = vadd.f32 %v8830_v14, %v6623_v21  ;;  %v6628_v56 = vadd.f32 %v8787_v44, %v6258_v7  ;;  %v7062_v59 = vld [vmem:[#allocation2 + $0x189] sm:$0xff] }
 0x454   : > { %v6904_v62 = vpop.f32.mrf.mxu1  ;;  %v6626_v28 = vadd.f32 %v6553_v51, %v6256_v48 }
 0x455   : > { %7182 = vst [vmem:[%s10945_s20 + $0xb8] sm:$0xff] %v7150_v50  ;;  %v7148_v27 = vmax.f32 %v7116_v8, 0.0  ;;  %v7121_v35 = vadd.f32 %v7057_v43, %v6993_v41  ;;  %v6991_v46 = vadd.f32 %v6904_v62, %v6621_v5  ;;  %v7060_v5 = vld [vmem:[#allocation2 + $0x171] sm:$0xff] }
 0x456   : > { %v8831_v23 = vpop.f32.mrf.mxu1 }
 0x457   : > { %7180 = vst [vmem:[%s10945_s20 + $0xa8] sm:$0xff] %v7148_v27  ;;  %v7153_v15 = vmax.f32 %v7121_v35, 0.0  ;;  %v7119_v4 = vadd.f32 %v7055_v39, %v6991_v46  ;;  %v6994_v0 = vadd.f32 %v8831_v23, %v6624_v6 }
 0x458   : > { %v6907_v60 = vpop.f32.mrf.mxu1 }
 0x459   : > { %7185 = vst [vmem:[%s10945_s20 + $0xd0] sm:$0xff] %v7153_v15  ;;  %v7151_v47 = vmax.f32 %v7119_v4, 0.0  ;;  %v7122_v18 = vadd.f32 %v7058_v55, %v6994_v0  ;;  %v6992_v36 = vadd.f32 %v6907_v60, %v6622_v40 }
 0x45a   : > { %v8834_v38 = vpop.f32.mrf.mxu1 }
 0x45b   : > { %7183 = vst [vmem:[%s10945_s20 + $0xc0] sm:$0xff] %v7151_v47  ;;  %v7154_v3 = vmax.f32 %v7122_v18, 0.0  ;;  %v7120_v34 = vadd.f32 %v7056_v53, %v6992_v36  ;;  %v6997_v33 = vadd.f32 %v8834_v38, %v6627_v1 }
 0x45c   : > { %v6920_v21 = vpop.f32.mrf.mxu1 }
 0x45d   : > { %7186 = vst [vmem:[%s10945_s20 + $0xd8] sm:$0xff] %v7154_v3  ;;  %v7152_v22 = vmax.f32 %v7120_v34, 0.0  ;;  %v7125_v2 = vadd.f32 %v7061_v29, %v6997_v33  ;;  %v6995_v61 = vadd.f32 %v6920_v21, %v6625_v57 }
 0x45e   : > { %v8835_v13 = vpop.f32.mrf.mxu1 }
 0x45f   : > { %7184 = vst [vmem:[%s10945_s20 + $0xc8] sm:$0xff] %v7152_v22  ;;  %v7157_v58 = vmax.f32 %v7125_v2, 0.0  ;;  %v7123_v30 = vadd.f32 %v7059_v11, %v6995_v61  ;;  %v6998_v42 = vadd.f32 %v8835_v13, %v6628_v56 }
 0x460   : > { %v6923_v25 = vpop.f32.mrf.mxu1 }
 0x461   : > { %7189 = vst [vmem:[%s10945_s20 + $0xf0] sm:$0xff] %v7157_v58  ;;  %v7155_v14 = vmax.f32 %v7123_v30, 0.0  ;;  %v7126_v43 = vadd.f32 %v7062_v59, %v6998_v42  ;;  %v6996_v16 = vadd.f32 %v6923_v25, %v6626_v28 }
 0x463   : > { %7187 = vst [vmem:[%s10945_s20 + $0xe0] sm:$0xff] %v7155_v14  ;;  %v7158_v10 = vmax.f32 %v7126_v43, 0.0  ;;  %v7124_v50 = vadd.f32 %v7060_v5, %v6996_v16 }
 0x465   : > { %7190 = vst [vmem:[%s10945_s20 + $0xf8] sm:$0xff] %v7158_v10  ;;  %v7156_v8 = vmax.f32 %v7124_v50, 0.0 }
 0x467   : > { %7188 = vst [vmem:[%s10945_s20 + $0xe8] sm:$0xff] %v7156_v8 }
 0x468   : > { %9163 = shalt.err (!%p9160_p3)
}
 0x469   : > { %s9164_s23 = scalar_lea.hbm %s11089_s30, 4096  ;;  %s9168_s6 = scalar_lea.hbm %s11139_s3, 8192 }
 0x46a   : > { %p9165_p11 = scmp.ne.s32.totalorder %s11089_s30, %s9164_s23  ;;  %p9169_p4 = scmp.lt.s32.totalorder %s11089_s30, %s11139_s3 }
 0x46b   : > { %p9170_p6 = scmp.lt.s32.totalorder %s9168_s6, %s9164_s23 }
 0x46c   : > { %p9166_p9 = pnand %p9165_p11, %p11431_p2 }
 0x46d   : > { %p9171_p8 = por %p9170_p6, %p9169_p4 }
 0x46e   : > { %p9167_p1 = pneg %p9166_p9 }
 0x470   : > { %p9172_p5 = pnand %p9171_p8, %p9167_p1 }
 0x472   : > { %9175 = shalt.err (!%p9172_p5)
}
 0x473   : > { %s9227_s18 = smov 128   ;;  %s9228_s20 = smov 8  }
 0x474   : > { %8846 = dma.vmem_to_hbm [thread:$0]  (%p11431_p2), %s11091_s28, 4096, %s11089_s30, %s7192_s4, %s9227_s18, %s9227_s18, %s9228_s20  }
 0x475 PF: > { %s7220_s27 = sand.u32 1, %s9206_s12   ;;  %p11432_p7 = scmp.ne.s32.totalorder %s11146_s19, 0 }
 0x476   : > { %p11433_p12 = scmp.ge.s32.totalorder %s9218_s15, 2  ;;  %s7221_s25 = scalar_lea.sflag [#allocation7], %s7220_s27 }
 0x478   : > { %p8860_p13 = pnand %p11433_p12, %p11432_p7 }
 0x47a   : > { %p8861_p0 = pneg %p8860_p13 }
 0x47c   : > { %9201 = dma.done.wait (%p8861_p0), %s7221_s25, 4096  }
 0x47d   : > { %9203 = vsyncadd (%p8861_p0), %s7221_s25, 4294963200  ;;  %p17_p10 = scmp.ge.s32.totalorder %s9327_s7, 4   ;;  %s11434_s12 = smov %s9210_s13 }
 0x47e   : > { %s11435_s13 = smov %s9214_s14  ;;  %s11436_s14 = smov %s9343_s11 }
 0x47f   : > { %s11437_s15 = smov %s9327_s7  ;;  %19 = sbr.rel (!%p17_p10) target bundleno = 6 (0x6), region = 107 }
 0x484   :  { %7226 = vsyncpa [#allocation6], 1 }
 0x485   :  { %7228 = vsyncpa [#allocation6 + $0x1], 1 }
 0x486   :  { %7229 = vsyncpa [#allocation9], 1 }
 0x487   :  { %7230 = vsyncpa [#allocation7], 1 }
 0x488   :  { %7232 = vsyncpa [#allocation7 + $0x1], 1 }

</bundles_post_ra>
